<compile_context>
chip_gen: v6e
topology: v6e:2x2x1
jax: 0.10.0
libtpu: 0.0.40
codegen_flags: <defaults>
</compile_context>

<pallas_src>
import jax
import jax.numpy as jnp
from jax.experimental import pallas as pl
from jax.experimental.pallas import tpu as pltpu

STRIDES = (8, 16, 32)
IN_CHANNELS = (16, 32, 64)   # small synthetic YOLOv8-"n"-ish channels
EMBED_DIM = 32
NUM_CLASSES = 8
REG_MAX = 16

HEAD_N = EMBED_DIM + 4 * REG_MAX      # 96 real head columns
SLAB_N = 128                          # lane-dense output width (padded)
COL_DIST = HEAD_N                     # 96..99  : DFL distances
COL_SCORE = HEAD_N + 4                # 100     : max similarity
COL_CID = HEAD_N + 5                  # 101     : class id (as float)

TILE_M_MAX = 512                      # safe for v7x 64 MiB VMEM w/ double buffering


def _round_up(x, m):
    return (x + m - 1) // m * m


def _dfl_matrix():
    """(4*reg_max, 8): cols 0..3 = per-group bin index, cols 4..7 = group mask."""
    idx = jnp.arange(4 * REG_MAX)
    g = idx // REG_MAX
    j = (idx % REG_MAX).astype(jnp.float32)
    m = jnp.zeros((4 * REG_MAX, 8), jnp.float32)
    m = m.at[idx, g].set(j)
    m = m.at[idx, 4 + g].set(1.0)
    return m


# ---------------------------------------------------------------------------
# Pallas kernels
# ---------------------------------------------------------------------------
def _text_kernel(vocab_ref, w_ref, b_ref, txt_ref, txtn_ref):
    # linear text projection + L2 normalization (done ONCE, reused per level)
    t = (
        jnp.dot(vocab_ref[...], w_ref[...], preferred_element_type=jnp.float32)
        + b_ref[...]
    )
    txt_ref[...] = t
    inv = 1.0 / jnp.maximum(jnp.sqrt(jnp.sum(t * t, axis=-1, keepdims=True)), 1e-8)
    txtn_ref[...] = t * inv


def _level_kernel(x_ref, w1_ref, b1_ref, w2_ref, b2_ref, txtn_ref, dfl_ref, out_ref):
    # backbone (+ folded linear neck): (TM, Kp) @ (Kp, C) + b  -> f32 in VMEM
    feat = (
        jnp.dot(x_ref[...], w1_ref[...], preferred_element_type=jnp.float32)
        + b1_ref[...]
    )
    # fused heads: (TM, C) @ (C, 128) + b  (cols 96:128 are zero padding)
    head = (
        jnp.dot(feat.astype(jnp.bfloat16), w2_ref[...],
                preferred_element_type=jnp.float32)
        + b2_ref[...]
    )
    out_ref[...] = head                                     # lane-dense slab

    # --- contrastive: cosine similarity + max/argmax over classes ----------
    obj = head[:, :EMBED_DIM]
    inv = 1.0 / jnp.maximum(
        jnp.sqrt(jnp.sum(obj * obj, axis=-1, keepdims=True)), 1e-8)
    obj_n = obj * inv
    txt_n = txtn_ref[...]                                   # (C, E) prenormalized
    sim = jax.lax.dot_general(
        obj_n, txt_n, (((1,), (1,)), ((), ())),
        preferred_element_type=jnp.float32)                 # (TM, num_classes)
    mx = jnp.max(sim, axis=-1, keepdims=True)
    ncls = sim.shape[-1]
    ids = jax.lax.broadcasted_iota(jnp.int32, sim.shape, 1)
    cid = jnp.min(jnp.where(sim >= mx, ids, ncls), axis=-1, keepdims=True)

    # --- DFL softmax-expectation over 4 groups of reg_max bins (matmul trick)
    logits = head[:, EMBED_DIM:HEAD_N]                      # (TM, 4*reg_max)
    e = jnp.exp(logits - jnp.max(logits, axis=-1, keepdims=True))
    nd = jnp.dot(e, dfl_ref[...], preferred_element_type=jnp.float32)  # (TM, 8)
    dist = nd[:, :4] / nd[:, 4:]                            # (TM, 4)

    out_ref[:, COL_DIST:COL_DIST + 4] = dist
    out_ref[:, COL_SCORE:COL_SCORE + 1] = mx
    out_ref[:, COL_CID:COL_CID + 1] = cid.astype(jnp.float32)


# ---------------------------------------------------------------------------
# Pallas wrappers
# ---------------------------------------------------------------------------
def text_project(vocab, w, b):
    c, e = vocab.shape
    return pl.pallas_call(
        _text_kernel,
        grid=(1,),
        in_specs=[
            pl.BlockSpec((c, e), lambda i: (0, 0)),
            pl.BlockSpec((e, e), lambda i: (0, 0)),
            pl.BlockSpec((1, e), lambda i: (0, 0)),
        ],
        out_specs=(
            pl.BlockSpec((c, e), lambda i: (0, 0)),
            pl.BlockSpec((c, e), lambda i: (0, 0)),
        ),
        out_shape=(
            jax.ShapeDtypeStruct((c, e), jnp.float32),
            jax.ShapeDtypeStruct((c, e), jnp.float32),
        ),
    )(vocab.astype(jnp.float32), w.astype(jnp.float32),
      b.reshape(1, e).astype(jnp.float32))


def fused_level(x, w1, b1, w2, b2, txt_n, dfl_mat):
    """One pallas_call per level: backbone(+neck) -> heads -> sim/argmax -> DFL."""
    rows, kp = x.shape
    cl = w1.shape[1]
    ncls, ed = txt_n.shape
    tile_m = min(TILE_M_MAX, _round_up(rows, 8))
    rows_pad = _round_up(rows, tile_m)
    if rows_pad != rows:
        x = jnp.pad(x, ((0, rows_pad - rows), (0, 0)))

    slab = pl.pallas_call(
        _level_kernel,
        grid=(rows_pad // tile_m,),
        in_specs=[
            pl.BlockSpec((tile_m, kp), lambda i: (i, 0)),        # activations (tiled)
            pl.BlockSpec((kp, cl), lambda i: (0, 0)),            # folded backbone+neck W
            pl.BlockSpec((1, cl), lambda i: (0, 0)),             # folded bias
            pl.BlockSpec((cl, SLAB_N), lambda i: (0, 0)),        # fused head W (padded)
            pl.BlockSpec((1, SLAB_N), lambda i: (0, 0)),         # fused head bias
            pl.BlockSpec((ncls, ed), lambda i: (0, 0)),          # normalized text emb
            pl.BlockSpec((4 * REG_MAX, 8), lambda i: (0, 0)),    # DFL projection
        ],
        out_specs=pl.BlockSpec((tile_m, SLAB_N), lambda i: (i, 0)),
        out_shape=jax.ShapeDtypeStruct((rows_pad, SLAB_N), jnp.float32),
        compiler_params=pltpu.CompilerParams(
            dimension_semantics=("parallel",),
            vmem_limit_bytes=64 * 1024 * 1024,
        ),
    )(
        x.astype(jnp.bfloat16),
        w1.astype(jnp.bfloat16),
        b1.reshape(1, cl).astype(jnp.float32),
        w2.astype(jnp.bfloat16),
        b2.reshape(1, SLAB_N).astype(jnp.float32),
        txt_n.astype(jnp.float32),
        dfl_mat.astype(jnp.float32),
    )
    return slab[:rows]


# ---------------------------------------------------------------------------
# Parameters (deterministic, synthetic)
# ---------------------------------------------------------------------------
def init_params(key):
    keys = iter(jax.random.split(key, 32))

    def w(shape):
        return 0.02 * jax.random.normal(next(keys), shape, jnp.float32)

    params = {
        "backbone": [
            {"w": w((3 * s * s, c)), "b": w((c,))}
            for s, c in zip(STRIDES, IN_CHANNELS)
        ],
        "neck": [{"w": w((c, c)), "b": w((c,))} for c in IN_CHANNELS],
        "text_proj": {"w": w((EMBED_DIM, EMBED_DIM)), "b": w((EMBED_DIM,))},
        "contrastive": [
            {"w": w((c, EMBED_DIM)), "b": w((EMBED_DIM,))} for c in IN_CHANNELS
        ],
        "box": [
            {"w": w((c, 4 * REG_MAX)), "b": w((4 * REG_MAX,))} for c in IN_CHANNELS
        ],
    }
    return params


# ---------------------------------------------------------------------------
# YOLO-CLIP forward (offline vocabulary mode)
# ---------------------------------------------------------------------------
def yolo_clip_forward(params, images, offline_vocabulary):
    B, cin, H, W = images.shape
    ncls = offline_vocabulary.shape[0]

    # text pathway: linear projection + normalization (once), broadcast over batch
    txt, txt_n = text_project(
        offline_vocabulary, params["text_proj"]["w"], params["text_proj"]["b"])
    updated_text = jnp.broadcast_to(txt[None], (B, ncls, EMBED_DIM))

    images_nhwc = jnp.transpose(images, (0, 2, 3, 1))   # single NHWC copy, reused
    dfl_mat = _dfl_matrix()

    boxes_all, scores_all, cids_all, objemb_all, box_preds = [], [], [], [], []

    for lvl, s in enumerate(STRIDES):
        hs, ws = H // s, W // s
        m = hs * ws
        rows = B * m

        # patchify (kernel == stride conv) from the shared NHWC copy
        x = images_nhwc.reshape(B, hs, s, ws, s, cin)
        x = jnp.transpose(x, (0, 1, 3, 2, 4, 5)).reshape(rows, s * s * cin)

        # fold linear neck into backbone (exact), concat + zero-pad head weights
        w1 = params["backbone"][lvl]["w"] @ params["neck"][lvl]["w"]
        b1 = (params["backbone"][lvl]["b"] @ params["neck"][lvl]["w"]
              + params["neck"][lvl]["b"])
        cl = w1.shape[1]
        w2 = jnp.concatenate(
            [params["contrastive"][lvl]["w"], params["box"][lvl]["w"],
             jnp.zeros((cl, SLAB_N - HEAD_N), jnp.float32)], axis=1)
        b2 = jnp.concatenate(
            [params["contrastive"][lvl]["b"], params["box"][lvl]["b"],
             jnp.zeros((SLAB_N - HEAD_N,), jnp.float32)])

        slab = fused_level(x, w1, b1, w2, b2, txt_n, dfl_mat)   # (rows, 128)

        obj_b = slab[:, :EMBED_DIM].reshape(B, m, EMBED_DIM)
        bp = slab[:, EMBED_DIM:HEAD_N]                           # (rows, 4*reg_max)
        dist = slab[:, COL_DIST:COL_DIST + 4].reshape(B, m, 4)
        score = slab[:, COL_SCORE].reshape(B, m)
        cid = slab[:, COL_CID].astype(jnp.int32).reshape(B, m)

        # box decode (glue): anchor centers + ltrb -> xyxy in image coords
        ys = (jnp.arange(hs, dtype=jnp.float32) + 0.5) * s
        xs = (jnp.arange(ws, dtype=jnp.float32) + 0.5) * s
        cy, cx = jnp.meshgrid(ys, xs, indexing="ij")
        cx = cx.reshape(1, m)
        cy = cy.reshape(1, m)
        l, t, r, bd = dist[..., 0], dist[..., 1], dist[..., 2], dist[..., 3]
        boxes = jnp.stack(
            [cx - l * s, cy - t * s, cx + r * s, cy + bd * s], axis=-1)

        boxes_all.append(boxes)
        scores_all.append(score)
        cids_all.append(cid)
        objemb_all.append(obj_b)
        # box_preds returned in torch layout (B, 4*reg_max, H, W)
        box_preds.append(
            jnp.transpose(bp.reshape(B, hs, ws, 4 * REG_MAX), (0, 3, 1, 2)))

    return {
        "boxes": jnp.concatenate(boxes_all, axis=1),
        "scores": jnp.concatenate(scores_all, axis=1),
        "class_ids": jnp.concatenate(cids_all, axis=1),
        "obj_embeddings": jnp.concatenate(objemb_all, axis=1),
        "text_embeddings": updated_text,
        "box_preds": box_preds,
    }


if __name__ == "__main__":
    key = jax.random.PRNGKey(0)
    kp, ki, kv = jax.random.split(key, 3)
    params = init_params(kp)

    # small deterministic inputs: batch=2, 3x64x64 images (NCHW), 8-class vocab
    images = jax.random.normal(ki, (2, 3, 64, 64), jnp.float32)
    offline_vocab = jax.random.normal(kv, (NUM_CLASSES, EMBED_DIM), jnp.float32)

    fwd = jax.jit(yolo_clip_forward)
    out = fwd(params, images, offline_vocab)
    jax.block_until_ready(out)
    print("KERNEL_OK")
</pallas_src>

<mosaic_0001>
module attributes {stable_mosaic.version = 11 : i64} {
  func.func @_text_kernel(%arg0: i32, %arg1: memref<8x32xf32, #tpu.memory_space<vmem>>, %arg2: memref<32x32xf32, #tpu.memory_space<vmem>>, %arg3: memref<1x32xf32, #tpu.memory_space<vmem>>, %arg4: memref<8x32xf32, #tpu.memory_space<vmem>>, %arg5: memref<8x32xf32, #tpu.memory_space<vmem>>) attributes {dimension_semantics = [#tpu.dimension_semantics<arbitrary>], iteration_bounds = array<i64: 1>, scalar_prefetch = 0 : i64, scratch_operands = 0 : i64, tpu.core_type = #tpu.core_type<tc>, window_params = [{pipeline_mode = #tpu.pipeline_mode<synchronous>, transform_indices = @transform_0, window_bounds = array<i64: 8, 32>}, {pipeline_mode = #tpu.pipeline_mode<synchronous>, transform_indices = @transform_1, window_bounds = array<i64: 32, 32>}, {pipeline_mode = #tpu.pipeline_mode<synchronous>, transform_indices = @transform_2, window_bounds = array<i64: 1, 32>}, {pipeline_mode = #tpu.pipeline_mode<synchronous>, transform_indices = @transform_3, window_bounds = array<i64: 8, 32>}, {pipeline_mode = #tpu.pipeline_mode<synchronous>, transform_indices = @transform_4, window_bounds = array<i64: 8, 32>}]} {
    %c0 = arith.constant 0 : index
    %c0_0 = arith.constant 0 : index
    %0 = vector.load %arg1[%c0, %c0_0] : memref<8x32xf32, #tpu.memory_space<vmem>>, vector<8x32xf32>
    %c0_1 = arith.constant 0 : index
    %c0_2 = arith.constant 0 : index
    %1 = vector.load %arg2[%c0_1, %c0_2] : memref<32x32xf32, #tpu.memory_space<vmem>>, vector<32x32xf32>
    %cst = arith.constant dense<0.000000e+00> : vector<8x32xf32>
    %2 = tpu.matmul %0, %1, %cst {dimension_numbers = #tpu.dot_dimension_numbers<[1], [0], [0], [1], [0, 0, 1, 1], [], []>} : vector<8x32xf32>, vector<32x32xf32>, vector<8x32xf32> -> vector<8x32xf32>
    %c0_3 = arith.constant 0 : index
    %c0_4 = arith.constant 0 : index
    %3 = vector.load %arg3[%c0_3, %c0_4] : memref<1x32xf32, #tpu.memory_space<vmem>>, vector<1x32xf32>
    %4 = vector.broadcast %3 : vector<1x32xf32> to vector<8x32xf32>
    %5 = arith.addf %2, %4 : vector<8x32xf32>
    %c0_5 = arith.constant 0 : index
    %c0_6 = arith.constant 0 : index
    %6 = vector.load %arg4[%c0_5, %c0_6] : memref<8x32xf32, #tpu.memory_space<vmem>>, vector<8x32xf32>
    tpu.vector_store %arg4[%c0_5, %c0_6], %5 {strides = array<i32>} : memref<8x32xf32, #tpu.memory_space<vmem>>, vector<8x32xf32>,
    %7 = arith.mulf %5, %5 : vector<8x32xf32>
    %cst_7 = arith.constant dense<0.000000e+00> : vector<8xf32>
    %8 = vector.multi_reduction <add>, %7, %cst_7 [1] : vector<8x32xf32> to vector<8xf32>
    %9 = vector.shape_cast %8 : vector<8xf32> to vector<8x1xf32>
    %10 = math.sqrt %9 : vector<8x1xf32>
    %cst_8 = arith.constant 9.99999993E-9 : f32
    %11 = vector.broadcast %cst_8 : f32 to vector<8x1xf32>
    %12 = arith.maximumf %10, %11 : vector<8x1xf32>
    %cst_9 = arith.constant 1.000000e+00 : f32
    %13 = vector.broadcast %cst_9 : f32 to vector<8x1xf32>
    %14 = arith.divf %13, %12 : vector<8x1xf32>
    %15 = vector.broadcast %14 : vector<8x1xf32> to vector<8x32xf32>
    %16 = arith.mulf %5, %15 : vector<8x32xf32>
    %c0_10 = arith.constant 0 : index
    %c0_11 = arith.constant 0 : index
    %17 = vector.load %arg5[%c0_10, %c0_11] : memref<8x32xf32, #tpu.memory_space<vmem>>, vector<8x32xf32>
    tpu.vector_store %arg5[%c0_10, %c0_11], %16 {strides = array<i32>} : memref<8x32xf32, #tpu.memory_space<vmem>>, vector<8x32xf32>,
    return
  }
  func.func @transform_0(%arg0: i32) -> (i32, i32) {
    %c0_i32 = arith.constant 0 : i32
    %c0_i32_0 = arith.constant 0 : i32
    %c0_i32_1 = arith.constant 0 : i32
    return %c0_i32, %c0_i32_0 : i32, i32
  }
  func.func @transform_1(%arg0: i32) -> (i32, i32) {
    %c0_i32 = arith.constant 0 : i32
    %c0_i32_0 = arith.constant 0 : i32
    %c0_i32_1 = arith.constant 0 : i32
    return %c0_i32, %c0_i32_0 : i32, i32
  }
  func.func @transform_2(%arg0: i32) -> (i32, i32) {
    %c0_i32 = arith.constant 0 : i32
    %c0_i32_0 = arith.constant 0 : i32
    %c0_i32_1 = arith.constant 0 : i32
    return %c0_i32, %c0_i32_0 : i32, i32
  }
  func.func @transform_3(%arg0: i32) -> (i32, i32) {
    %c0_i32 = arith.constant 0 : i32
    %c0_i32_0 = arith.constant 0 : i32
    %c0_i32_1 = arith.constant 0 : i32
    return %c0_i32, %c0_i32_0 : i32, i32
  }
  func.func @transform_4(%arg0: i32) -> (i32, i32) {
    %c0_i32 = arith.constant 0 : i32
    %c0_i32_0 = arith.constant 0 : i32
    %c0_i32_1 = arith.constant 0 : i32
    return %c0_i32, %c0_i32_0 : i32, i32
  }
}

module attributes {stable_mosaic.version = 11 : i64} {
  func.func @_level_kernel(%arg0: i32, %arg1: memref<32x768xbf16, #tpu.memory_space<vmem>>, %arg2: memref<768x32xbf16, #tpu.memory_space<vmem>>, %arg3: memref<1x32xf32, #tpu.memory_space<vmem>>, %arg4: memref<32x128xbf16, #tpu.memory_space<vmem>>, %arg5: memref<1x128xf32, #tpu.memory_space<vmem>>, %arg6: memref<8x32xf32, #tpu.memory_space<vmem>>, %arg7: memref<64x8xf32, #tpu.memory_space<vmem>>, %arg8: memref<32x128xf32, #tpu.memory_space<vmem>>) attributes {dimension_semantics = [#tpu.dimension_semantics<parallel>], iteration_bounds = array<i64: 1>, scalar_prefetch = 0 : i64, scratch_operands = 0 : i64, tpu.core_type = #tpu.core_type<tc>, window_params = [{transform_indices = @transform_0, window_bounds = array<i64: 32, 768>}, {pipeline_mode = #tpu.pipeline_mode<synchronous>, transform_indices = @transform_1, window_bounds = array<i64: 768, 32>}, {pipeline_mode = #tpu.pipeline_mode<synchronous>, transform_indices = @transform_2, window_bounds = array<i64: 1, 32>}, {pipeline_mode = #tpu.pipeline_mode<synchronous>, transform_indices = @transform_3, window_bounds = array<i64: 32, 128>}, {pipeline_mode = #tpu.pipeline_mode<synchronous>, transform_indices = @transform_4, window_bounds = array<i64: 1, 128>}, {pipeline_mode = #tpu.pipeline_mode<synchronous>, transform_indices = @transform_5, window_bounds = array<i64: 8, 32>}, {pipeline_mode = #tpu.pipeline_mode<synchronous>, transform_indices = @transform_6, window_bounds = array<i64: 64, 8>}, {transform_indices = @transform_7, window_bounds = array<i64: 32, 128>}]} {
    %c0 = arith.constant 0 : index
    %c0_0 = arith.constant 0 : index
    %0 = vector.load %arg1[%c0, %c0_0] : memref<32x768xbf16, #tpu.memory_space<vmem>>, vector<32x768xbf16>
    %c0_1 = arith.constant 0 : index
    %c0_2 = arith.constant 0 : index
    %1 = vector.load %arg2[%c0_1, %c0_2] : memref<768x32xbf16, #tpu.memory_space<vmem>>, vector<768x32xbf16>
    %cst = arith.constant dense<0.000000e+00> : vector<32x32xf32>
    %2 = tpu.matmul %0, %1, %cst {dimension_numbers = #tpu.dot_dimension_numbers<[1], [0], [0], [1], [0, 0, 1, 1], [], []>} : vector<32x768xbf16>, vector<768x32xbf16>, vector<32x32xf32> -> vector<32x32xf32>
    %c0_3 = arith.constant 0 : index
    %c0_4 = arith.constant 0 : index
    %3 = vector.load %arg3[%c0_3, %c0_4] : memref<1x32xf32, #tpu.memory_space<vmem>>, vector<1x32xf32>
    %4 = vector.broadcast %3 : vector<1x32xf32> to vector<32x32xf32>
    %5 = arith.addf %2, %4 : vector<32x32xf32>
    %6 = arith.truncf %5 : vector<32x32xf32> to vector<32x32xbf16>
    %c0_5 = arith.constant 0 : index
    %c0_6 = arith.constant 0 : index
    %7 = vector.load %arg4[%c0_5, %c0_6] : memref<32x128xbf16, #tpu.memory_space<vmem>>, vector<32x128xbf16>
    %cst_7 = arith.constant dense<0.000000e+00> : vector<32x128xf32>
    %8 = tpu.matmul %6, %7, %cst_7 {dimension_numbers = #tpu.dot_dimension_numbers<[1], [0], [0], [1], [0, 0, 1, 1], [], []>} : vector<32x32xbf16>, vector<32x128xbf16>, vector<32x128xf32> -> vector<32x128xf32>
    %c0_8 = arith.constant 0 : index
    %c0_9 = arith.constant 0 : index
    %9 = vector.load %arg5[%c0_8, %c0_9] : memref<1x128xf32, #tpu.memory_space<vmem>>, vector<1x128xf32>
    %10 = vector.broadcast %9 : vector<1x128xf32> to vector<32x128xf32>
    %11 = arith.addf %8, %10 : vector<32x128xf32>
    %c0_10 = arith.constant 0 : index
    %c0_11 = arith.constant 0 : index
    %12 = vector.load %arg8[%c0_10, %c0_11] : memref<32x128xf32, #tpu.memory_space<vmem>>, vector<32x128xf32>
    tpu.vector_store %arg8[%c0_10, %c0_11], %11 {strides = array<i32>} : memref<32x128xf32, #tpu.memory_space<vmem>>, vector<32x128xf32>,
    %13 = vector.extract_strided_slice %11 {offsets = [0, 0], sizes = [32, 32], strides = [1, 1]} : vector<32x128xf32> to vector<32x32xf32>
    %14 = arith.mulf %13, %13 : vector<32x32xf32>
    %cst_12 = arith.constant dense<0.000000e+00> : vector<32xf32>
    %15 = vector.multi_reduction <add>, %14, %cst_12 [1] : vector<32x32xf32> to vector<32xf32>
    %16 = vector.shape_cast %15 : vector<32xf32> to vector<32x1xf32>
    %17 = math.sqrt %16 : vector<32x1xf32>
    %cst_13 = arith.constant 9.99999993E-9 : f32
    %18 = vector.broadcast %cst_13 : f32 to vector<32x1xf32>
    %19 = arith.maximumf %17, %18 : vector<32x1xf32>
    %cst_14 = arith.constant 1.000000e+00 : f32
    %20 = vector.broadcast %cst_14 : f32 to vector<32x1xf32>
    %21 = arith.divf %20, %19 : vector<32x1xf32>
    %22 = vector.broadcast %21 : vector<32x1xf32> to vector<32x32xf32>
    %23 = arith.mulf %13, %22 : vector<32x32xf32>
    %c0_15 = arith.constant 0 : index
    %c0_16 = arith.constant 0 : index
    %24 = vector.load %arg6[%c0_15, %c0_16] : memref<8x32xf32, #tpu.memory_space<vmem>>, vector<8x32xf32>
    %cst_17 = arith.constant dense<0.000000e+00> : vector<32x8xf32>
    %25 = tpu.matmul %23, %24, %cst_17 {dimension_numbers = #tpu.dot_dimension_numbers<[1], [1], [0], [0], [0, 0, 1, 0], [], []>} : vector<32x32xf32>, vector<8x32xf32>, vector<32x8xf32> -> vector<32x8xf32>
    %cst_18 = arith.constant dense<0xFF800000> : vector<32xf32>
    %26 = vector.multi_reduction <maximumf>, %25, %cst_18 [1] : vector<32x8xf32> to vector<32xf32>
    %27 = vector.shape_cast %26 : vector<32xf32> to vector<32x1xf32>
    %28 = tpu.iota {dimensions = array<i32: 1>} : vector<32x8xi32>
    %29 = vector.broadcast %27 : vector<32x1xf32> to vector<32x8xf32>
    %30 = arith.cmpf oge, %25, %29 : vector<32x8xf32>
    %c8_i32 = arith.constant 8 : i32
    %31 = vector.broadcast %c8_i32 : i32 to vector<32x8xi32>
    %32 = arith.select %30, %28, %31 : vector<32x8xi1>, vector<32x8xi32>
    %cst_19 = arith.constant dense<2147483647> : vector<32xi32>
    %33 = vector.multi_reduction <minsi>, %32, %cst_19 [1] : vector<32x8xi32> to vector<32xi32>
    %34 = vector.shape_cast %33 : vector<32xi32> to vector<32x1xi32>
    %35 = vector.extract_strided_slice %11 {offsets = [0, 32], sizes = [32, 64], strides = [1, 1]} : vector<32x128xf32> to vector<32x64xf32>
    %cst_20 = arith.constant dense<0xFF800000> : vector<32xf32>
    %36 = vector.multi_reduction <maximumf>, %35, %cst_20 [1] : vector<32x64xf32> to vector<32xf32>
    %37 = vector.shape_cast %36 : vector<32xf32> to vector<32x1xf32>
    %38 = vector.broadcast %37 : vector<32x1xf32> to vector<32x64xf32>
    %39 = arith.subf %35, %38 : vector<32x64xf32>
    %40 = math.exp %39 : vector<32x64xf32>
    %c0_21 = arith.constant 0 : index
    %c0_22 = arith.constant 0 : index
    %41 = vector.load %arg7[%c0_21, %c0_22] : memref<64x8xf32, #tpu.memory_space<vmem>>, vector<64x8xf32>
    %cst_23 = arith.constant dense<0.000000e+00> : vector<32x8xf32>
    %42 = tpu.matmul %40, %41, %cst_23 {dimension_numbers = #tpu.dot_dimension_numbers<[1], [0], [0], [1], [0, 0, 1, 1], [], []>} : vector<32x64xf32>, vector<64x8xf32>, vector<32x8xf32> -> vector<32x8xf32>
    %43 = vector.extract_strided_slice %42 {offsets = [0, 0], sizes = [32, 4], strides = [1, 1]} : vector<32x8xf32> to vector<32x4xf32>
    %44 = vector.extract_strided_slice %42 {offsets = [0, 4], sizes = [32, 4], strides = [1, 1]} : vector<32x8xf32> to vector<32x4xf32>
    %45 = arith.divf %43, %44 : vector<32x4xf32>
    %c0_24 = arith.constant 0 : index
    %c96 = arith.constant 96 : index
    %46 = vector.load %arg8[%c0_24, %c96] : memref<32x128xf32, #tpu.memory_space<vmem>>, vector<32x4xf32>
    tpu.vector_store %arg8[%c0_24, %c96], %45 {strides = array<i32>} : memref<32x128xf32, #tpu.memory_space<vmem>>, vector<32x4xf32>,
    %c0_25 = arith.constant 0 : index
    %c100 = arith.constant 100 : index
    %47 = vector.load %arg8[%c0_25, %c100] : memref<32x128xf32, #tpu.memory_space<vmem>>, vector<32x1xf32>
    tpu.vector_store %arg8[%c0_25, %c100], %27 {strides = array<i32>} : memref<32x128xf32, #tpu.memory_space<vmem>>, vector<32x1xf32>,
    %48 = arith.sitofp %34 : vector<32x1xi32> to vector<32x1xf32>
    %c0_26 = arith.constant 0 : index
    %c101 = arith.constant 101 : index
    %49 = vector.load %arg8[%c0_26, %c101] : memref<32x128xf32, #tpu.memory_space<vmem>>, vector<32x1xf32>
    tpu.vector_store %arg8[%c0_26, %c101], %48 {strides = array<i32>} : memref<32x128xf32, #tpu.memory_space<vmem>>, vector<32x1xf32>,
    return
  }
  func.func @transform_0(%arg0: i32) -> (i32, i32) {
    %c0_i32 = arith.constant 0 : i32
    %c0_i32_0 = arith.constant 0 : i32
    return %arg0, %c0_i32 : i32, i32
  }
  func.func @transform_1(%arg0: i32) -> (i32, i32) {
    %c0_i32 = arith.constant 0 : i32
    %c0_i32_0 = arith.constant 0 : i32
    %c0_i32_1 = arith.constant 0 : i32
    return %c0_i32, %c0_i32_0 : i32, i32
  }
  func.func @transform_2(%arg0: i32) -> (i32, i32) {
    %c0_i32 = arith.constant 0 : i32
    %c0_i32_0 = arith.constant 0 : i32
    %c0_i32_1 = arith.constant 0 : i32
    return %c0_i32, %c0_i32_0 : i32, i32
  }
  func.func @transform_3(%arg0: i32) -> (i32, i32) {
    %c0_i32 = arith.constant 0 : i32
    %c0_i32_0 = arith.constant 0 : i32
    %c0_i32_1 = arith.constant 0 : i32
    return %c0_i32, %c0_i32_0 : i32, i32
  }
  func.func @transform_4(%arg0: i32) -> (i32, i32) {
    %c0_i32 = arith.constant 0 : i32
    %c0_i32_0 = arith.constant 0 : i32
    %c0_i32_1 = arith.constant 0 : i32
    return %c0_i32, %c0_i32_0 : i32, i32
  }
  func.func @transform_5(%arg0: i32) -> (i32, i32) {
    %c0_i32 = arith.constant 0 : i32
    %c0_i32_0 = arith.constant 0 : i32
    %c0_i32_1 = arith.constant 0 : i32
    return %c0_i32, %c0_i32_0 : i32, i32
  }
  func.func @transform_6(%arg0: i32) -> (i32, i32) {
    %c0_i32 = arith.constant 0 : i32
    %c0_i32_0 = arith.constant 0 : i32
    %c0_i32_1 = arith.constant 0 : i32
    return %c0_i32, %c0_i32_0 : i32, i32
  }
  func.func @transform_7(%arg0: i32) -> (i32, i32) {
    %c0_i32 = arith.constant 0 : i32
    %c0_i32_0 = arith.constant 0 : i32
    return %arg0, %c0_i32 : i32, i32
  }
}

module attributes {stable_mosaic.version = 11 : i64} {
  func.func @_level_kernel(%arg0: i32, %arg1: memref<8x3072xbf16, #tpu.memory_space<vmem>>, %arg2: memref<3072x64xbf16, #tpu.memory_space<vmem>>, %arg3: memref<1x64xf32, #tpu.memory_space<vmem>>, %arg4: memref<64x128xbf16, #tpu.memory_space<vmem>>, %arg5: memref<1x128xf32, #tpu.memory_space<vmem>>, %arg6: memref<8x32xf32, #tpu.memory_space<vmem>>, %arg7: memref<64x8xf32, #tpu.memory_space<vmem>>, %arg8: memref<8x128xf32, #tpu.memory_space<vmem>>) attributes {dimension_semantics = [#tpu.dimension_semantics<parallel>], iteration_bounds = array<i64: 1>, scalar_prefetch = 0 : i64, scratch_operands = 0 : i64, tpu.core_type = #tpu.core_type<tc>, window_params = [{transform_indices = @transform_0, window_bounds = array<i64: 8, 3072>}, {pipeline_mode = #tpu.pipeline_mode<synchronous>, transform_indices = @transform_1, window_bounds = array<i64: 3072, 64>}, {pipeline_mode = #tpu.pipeline_mode<synchronous>, transform_indices = @transform_2, window_bounds = array<i64: 1, 64>}, {pipeline_mode = #tpu.pipeline_mode<synchronous>, transform_indices = @transform_3, window_bounds = array<i64: 64, 128>}, {pipeline_mode = #tpu.pipeline_mode<synchronous>, transform_indices = @transform_4, window_bounds = array<i64: 1, 128>}, {pipeline_mode = #tpu.pipeline_mode<synchronous>, transform_indices = @transform_5, window_bounds = array<i64: 8, 32>}, {pipeline_mode = #tpu.pipeline_mode<synchronous>, transform_indices = @transform_6, window_bounds = array<i64: 64, 8>}, {transform_indices = @transform_7, window_bounds = array<i64: 8, 128>}]} {
    %c0 = arith.constant 0 : index
    %c0_0 = arith.constant 0 : index
    %0 = vector.load %arg1[%c0, %c0_0] : memref<8x3072xbf16, #tpu.memory_space<vmem>>, vector<8x3072xbf16>
    %c0_1 = arith.constant 0 : index
    %c0_2 = arith.constant 0 : index
    %1 = vector.load %arg2[%c0_1, %c0_2] : memref<3072x64xbf16, #tpu.memory_space<vmem>>, vector<3072x64xbf16>
    %cst = arith.constant dense<0.000000e+00> : vector<8x64xf32>
    %2 = tpu.matmul %0, %1, %cst {dimension_numbers = #tpu.dot_dimension_numbers<[1], [0], [0], [1], [0, 0, 1, 1], [], []>} : vector<8x3072xbf16>, vector<3072x64xbf16>, vector<8x64xf32> -> vector<8x64xf32>
    %c0_3 = arith.constant 0 : index
    %c0_4 = arith.constant 0 : index
    %3 = vector.load %arg3[%c0_3, %c0_4] : memref<1x64xf32, #tpu.memory_space<vmem>>, vector<1x64xf32>
    %4 = vector.broadcast %3 : vector<1x64xf32> to vector<8x64xf32>
    %5 = arith.addf %2, %4 : vector<8x64xf32>
    %6 = arith.truncf %5 : vector<8x64xf32> to vector<8x64xbf16>
    %c0_5 = arith.constant 0 : index
    %c0_6 = arith.constant 0 : index
    %7 = vector.load %arg4[%c0_5, %c0_6] : memref<64x128xbf16, #tpu.memory_space<vmem>>, vector<64x128xbf16>
    %cst_7 = arith.constant dense<0.000000e+00> : vector<8x128xf32>
    %8 = tpu.matmul %6, %7, %cst_7 {dimension_numbers = #tpu.dot_dimension_numbers<[1], [0], [0], [1], [0, 0, 1, 1], [], []>} : vector<8x64xbf16>, vector<64x128xbf16>, vector<8x128xf32> -> vector<8x128xf32>
    %c0_8 = arith.constant 0 : index
    %c0_9 = arith.constant 0 : index
    %9 = vector.load %arg5[%c0_8, %c0_9] : memref<1x128xf32, #tpu.memory_space<vmem>>, vector<1x128xf32>
    %10 = vector.broadcast %9 : vector<1x128xf32> to vector<8x128xf32>
    %11 = arith.addf %8, %10 : vector<8x128xf32>
    %c0_10 = arith.constant 0 : index
    %c0_11 = arith.constant 0 : index
    %12 = vector.load %arg8[%c0_10, %c0_11] : memref<8x128xf32, #tpu.memory_space<vmem>>, vector<8x128xf32>
    tpu.vector_store %arg8[%c0_10, %c0_11], %11 {strides = array<i32>} : memref<8x128xf32, #tpu.memory_space<vmem>>, vector<8x128xf32>,
    %13 = vector.extract_strided_slice %11 {offsets = [0, 0], sizes = [8, 32], strides = [1, 1]} : vector<8x128xf32> to vector<8x32xf32>
    %14 = arith.mulf %13, %13 : vector<8x32xf32>
    %cst_12 = arith.constant dense<0.000000e+00> : vector<8xf32>
    %15 = vector.multi_reduction <add>, %14, %cst_12 [1] : vector<8x32xf32> to vector<8xf32>
    %16 = vector.shape_cast %15 : vector<8xf32> to vector<8x1xf32>
    %17 = math.sqrt %16 : vector<8x1xf32>
    %cst_13 = arith.constant 9.99999993E-9 : f32
    %18 = vector.broadcast %cst_13 : f32 to vector<8x1xf32>
    %19 = arith.maximumf %17, %18 : vector<8x1xf32>
    %cst_14 = arith.constant 1.000000e+00 : f32
    %20 = vector.broadcast %cst_14 : f32 to vector<8x1xf32>
    %21 = arith.divf %20, %19 : vector<8x1xf32>
    %22 = vector.broadcast %21 : vector<8x1xf32> to vector<8x32xf32>
    %23 = arith.mulf %13, %22 : vector<8x32xf32>
    %c0_15 = arith.constant 0 : index
    %c0_16 = arith.constant 0 : index
    %24 = vector.load %arg6[%c0_15, %c0_16] : memref<8x32xf32, #tpu.memory_space<vmem>>, vector<8x32xf32>
    %cst_17 = arith.constant dense<0.000000e+00> : vector<8x8xf32>
    %25 = tpu.matmul %23, %24, %cst_17 {dimension_numbers = #tpu.dot_dimension_numbers<[1], [1], [0], [0], [0, 0, 1, 0], [], []>} : vector<8x32xf32>, vector<8x32xf32>, vector<8x8xf32> -> vector<8x8xf32>
    %cst_18 = arith.constant dense<0xFF800000> : vector<8xf32>
    %26 = vector.multi_reduction <maximumf>, %25, %cst_18 [1] : vector<8x8xf32> to vector<8xf32>
    %27 = vector.shape_cast %26 : vector<8xf32> to vector<8x1xf32>
    %28 = tpu.iota {dimensions = array<i32: 1>} : vector<8x8xi32>
    %29 = vector.broadcast %27 : vector<8x1xf32> to vector<8x8xf32>
    %30 = arith.cmpf oge, %25, %29 : vector<8x8xf32>
    %c8_i32 = arith.constant 8 : i32
    %31 = vector.broadcast %c8_i32 : i32 to vector<8x8xi32>
    %32 = arith.select %30, %28, %31 : vector<8x8xi1>, vector<8x8xi32>
    %cst_19 = arith.constant dense<2147483647> : vector<8xi32>
    %33 = vector.multi_reduction <minsi>, %32, %cst_19 [1] : vector<8x8xi32> to vector<8xi32>
    %34 = vector.shape_cast %33 : vector<8xi32> to vector<8x1xi32>
    %35 = vector.extract_strided_slice %11 {offsets = [0, 32], sizes = [8, 64], strides = [1, 1]} : vector<8x128xf32> to vector<8x64xf32>
    %cst_20 = arith.constant dense<0xFF800000> : vector<8xf32>
    %36 = vector.multi_reduction <maximumf>, %35, %cst_20 [1] : vector<8x64xf32> to vector<8xf32>
    %37 = vector.shape_cast %36 : vector<8xf32> to vector<8x1xf32>
    %38 = vector.broadcast %37 : vector<8x1xf32> to vector<8x64xf32>
    %39 = arith.subf %35, %38 : vector<8x64xf32>
    %40 = math.exp %39 : vector<8x64xf32>
    %c0_21 = arith.constant 0 : index
    %c0_22 = arith.constant 0 : index
    %41 = vector.load %arg7[%c0_21, %c0_22] : memref<64x8xf32, #tpu.memory_space<vmem>>, vector<64x8xf32>
    %cst_23 = arith.constant dense<0.000000e+00> : vector<8x8xf32>
    %42 = tpu.matmul %40, %41, %cst_23 {dimension_numbers = #tpu.dot_dimension_numbers<[1], [0], [0], [1], [0, 0, 1, 1], [], []>} : vector<8x64xf32>, vector<64x8xf32>, vector<8x8xf32> -> vector<8x8xf32>
    %43 = vector.extract_strided_slice %42 {offsets = [0, 0], sizes = [8, 4], strides = [1, 1]} : vector<8x8xf32> to vector<8x4xf32>
    %44 = vector.extract_strided_slice %42 {offsets = [0, 4], sizes = [8, 4], strides = [1, 1]} : vector<8x8xf32> to vector<8x4xf32>
    %45 = arith.divf %43, %44 : vector<8x4xf32>
    %c0_24 = arith.constant 0 : index
    %c96 = arith.constant 96 : index
    %46 = vector.load %arg8[%c0_24, %c96] : memref<8x128xf32, #tpu.memory_space<vmem>>, vector<8x4xf32>
    tpu.vector_store %arg8[%c0_24, %c96], %45 {strides = array<i32>} : memref<8x128xf32, #tpu.memory_space<vmem>>, vector<8x4xf32>,
    %c0_25 = arith.constant 0 : index
    %c100 = arith.constant 100 : index
    %47 = vector.load %arg8[%c0_25, %c100] : memref<8x128xf32, #tpu.memory_space<vmem>>, vector<8x1xf32>
    tpu.vector_store %arg8[%c0_25, %c100], %27 {strides = array<i32>} : memref<8x128xf32, #tpu.memory_space<vmem>>, vector<8x1xf32>,
    %48 = arith.sitofp %34 : vector<8x1xi32> to vector<8x1xf32>
    %c0_26 = arith.constant 0 : index
    %c101 = arith.constant 101 : index
    %49 = vector.load %arg8[%c0_26, %c101] : memref<8x128xf32, #tpu.memory_space<vmem>>, vector<8x1xf32>
    tpu.vector_store %arg8[%c0_26, %c101], %48 {strides = array<i32>} : memref<8x128xf32, #tpu.memory_space<vmem>>, vector<8x1xf32>,
    return
  }
  func.func @transform_0(%arg0: i32) -> (i32, i32) {
    %c0_i32 = arith.constant 0 : i32
    %c0_i32_0 = arith.constant 0 : i32
    return %arg0, %c0_i32 : i32, i32
  }
  func.func @transform_1(%arg0: i32) -> (i32, i32) {
    %c0_i32 = arith.constant 0 : i32
    %c0_i32_0 = arith.constant 0 : i32
    %c0_i32_1 = arith.constant 0 : i32
    return %c0_i32, %c0_i32_0 : i32, i32
  }
  func.func @transform_2(%arg0: i32) -> (i32, i32) {
    %c0_i32 = arith.constant 0 : i32
    %c0_i32_0 = arith.constant 0 : i32
    %c0_i32_1 = arith.constant 0 : i32
    return %c0_i32, %c0_i32_0 : i32, i32
  }
  func.func @transform_3(%arg0: i32) -> (i32, i32) {
    %c0_i32 = arith.constant 0 : i32
    %c0_i32_0 = arith.constant 0 : i32
    %c0_i32_1 = arith.constant 0 : i32
    return %c0_i32, %c0_i32_0 : i32, i32
  }
  func.func @transform_4(%arg0: i32) -> (i32, i32) {
    %c0_i32 = arith.constant 0 : i32
    %c0_i32_0 = arith.constant 0 : i32
    %c0_i32_1 = arith.constant 0 : i32
    return %c0_i32, %c0_i32_0 : i32, i32
  }
  func.func @transform_5(%arg0: i32) -> (i32, i32) {
    %c0_i32 = arith.constant 0 : i32
    %c0_i32_0 = arith.constant 0 : i32
    %c0_i32_1 = arith.constant 0 : i32
    return %c0_i32, %c0_i32_0 : i32, i32
  }
  func.func @transform_6(%arg0: i32) -> (i32, i32) {
    %c0_i32 = arith.constant 0 : i32
    %c0_i32_0 = arith.constant 0 : i32
    %c0_i32_1 = arith.constant 0 : i32
    return %c0_i32, %c0_i32_0 : i32, i32
  }
  func.func @transform_7(%arg0: i32) -> (i32, i32) {
    %c0_i32 = arith.constant 0 : i32
    %c0_i32_0 = arith.constant 0 : i32
    return %arg0, %c0_i32 : i32, i32
  }
}

module attributes {stable_mosaic.version = 11 : i64} {
  func.func @_level_kernel(%arg0: i32, %arg1: memref<128x192xbf16, #tpu.memory_space<vmem>>, %arg2: memref<192x16xbf16, #tpu.memory_space<vmem>>, %arg3: memref<1x16xf32, #tpu.memory_space<vmem>>, %arg4: memref<16x128xbf16, #tpu.memory_space<vmem>>, %arg5: memref<1x128xf32, #tpu.memory_space<vmem>>, %arg6: memref<8x32xf32, #tpu.memory_space<vmem>>, %arg7: memref<64x8xf32, #tpu.memory_space<vmem>>, %arg8: memref<128x128xf32, #tpu.memory_space<vmem>>) attributes {dimension_semantics = [#tpu.dimension_semantics<parallel>], iteration_bounds = array<i64: 1>, scalar_prefetch = 0 : i64, scratch_operands = 0 : i64, tpu.core_type = #tpu.core_type<tc>, window_params = [{transform_indices = @transform_0, window_bounds = array<i64: 128, 192>}, {pipeline_mode = #tpu.pipeline_mode<synchronous>, transform_indices = @transform_1, window_bounds = array<i64: 192, 16>}, {pipeline_mode = #tpu.pipeline_mode<synchronous>, transform_indices = @transform_2, window_bounds = array<i64: 1, 16>}, {pipeline_mode = #tpu.pipeline_mode<synchronous>, transform_indices = @transform_3, window_bounds = array<i64: 16, 128>}, {pipeline_mode = #tpu.pipeline_mode<synchronous>, transform_indices = @transform_4, window_bounds = array<i64: 1, 128>}, {pipeline_mode = #tpu.pipeline_mode<synchronous>, transform_indices = @transform_5, window_bounds = array<i64: 8, 32>}, {pipeline_mode = #tpu.pipeline_mode<synchronous>, transform_indices = @transform_6, window_bounds = array<i64: 64, 8>}, {transform_indices = @transform_7, window_bounds = array<i64: 128, 128>}]} {
    %c0 = arith.constant 0 : index
    %c0_0 = arith.constant 0 : index
    %0 = vector.load %arg1[%c0, %c0_0] : memref<128x192xbf16, #tpu.memory_space<vmem>>, vector<128x192xbf16>
    %c0_1 = arith.constant 0 : index
    %c0_2 = arith.constant 0 : index
    %1 = vector.load %arg2[%c0_1, %c0_2] : memref<192x16xbf16, #tpu.memory_space<vmem>>, vector<192x16xbf16>
    %cst = arith.constant dense<0.000000e+00> : vector<128x16xf32>
    %2 = tpu.matmul %0, %1, %cst {dimension_numbers = #tpu.dot_dimension_numbers<[1], [0], [0], [1], [0, 0, 1, 1], [], []>} : vector<128x192xbf16>, vector<192x16xbf16>, vector<128x16xf32> -> vector<128x16xf32>
    %c0_3 = arith.constant 0 : index
    %c0_4 = arith.constant 0 : index
    %3 = vector.load %arg3[%c0_3, %c0_4] : memref<1x16xf32, #tpu.memory_space<vmem>>, vector<1x16xf32>
    %4 = vector.broadcast %3 : vector<1x16xf32> to vector<128x16xf32>
    %5 = arith.addf %2, %4 : vector<128x16xf32>
    %6 = arith.truncf %5 : vector<128x16xf32> to vector<128x16xbf16>
    %c0_5 = arith.constant 0 : index
    %c0_6 = arith.constant 0 : index
    %7 = vector.load %arg4[%c0_5, %c0_6] : memref<16x128xbf16, #tpu.memory_space<vmem>>, vector<16x128xbf16>
    %cst_7 = arith.constant dense<0.000000e+00> : vector<128x128xf32>
    %8 = tpu.matmul %6, %7, %cst_7 {dimension_numbers = #tpu.dot_dimension_numbers<[1], [0], [0], [1], [0, 0, 1, 1], [], []>} : vector<128x16xbf16>, vector<16x128xbf16>, vector<128x128xf32> -> vector<128x128xf32>
    %c0_8 = arith.constant 0 : index
    %c0_9 = arith.constant 0 : index
    %9 = vector.load %arg5[%c0_8, %c0_9] : memref<1x128xf32, #tpu.memory_space<vmem>>, vector<1x128xf32>
    %10 = vector.broadcast %9 : vector<1x128xf32> to vector<128x128xf32>
    %11 = arith.addf %8, %10 : vector<128x128xf32>
    %c0_10 = arith.constant 0 : index
    %c0_11 = arith.constant 0 : index
    %12 = vector.load %arg8[%c0_10, %c0_11] : memref<128x128xf32, #tpu.memory_space<vmem>>, vector<128x128xf32>
    tpu.vector_store %arg8[%c0_10, %c0_11], %11 {strides = array<i32>} : memref<128x128xf32, #tpu.memory_space<vmem>>, vector<128x128xf32>,
    %13 = vector.extract_strided_slice %11 {offsets = [0, 0], sizes = [128, 32], strides = [1, 1]} : vector<128x128xf32> to vector<128x32xf32>
    %14 = arith.mulf %13, %13 : vector<128x32xf32>
    %cst_12 = arith.constant dense<0.000000e+00> : vector<128xf32>
    %15 = vector.multi_reduction <add>, %14, %cst_12 [1] : vector<128x32xf32> to vector<128xf32>
    %16 = vector.shape_cast %15 : vector<128xf32> to vector<128x1xf32>
    %17 = math.sqrt %16 : vector<128x1xf32>
    %cst_13 = arith.constant 9.99999993E-9 : f32
    %18 = vector.broadcast %cst_13 : f32 to vector<128x1xf32>
    %19 = arith.maximumf %17, %18 : vector<128x1xf32>
    %cst_14 = arith.constant 1.000000e+00 : f32
    %20 = vector.broadcast %cst_14 : f32 to vector<128x1xf32>
    %21 = arith.divf %20, %19 : vector<128x1xf32>
    %22 = vector.broadcast %21 : vector<128x1xf32> to vector<128x32xf32>
    %23 = arith.mulf %13, %22 : vector<128x32xf32>
    %c0_15 = arith.constant 0 : index
    %c0_16 = arith.constant 0 : index
    %24 = vector.load %arg6[%c0_15, %c0_16] : memref<8x32xf32, #tpu.memory_space<vmem>>, vector<8x32xf32>
    %cst_17 = arith.constant dense<0.000000e+00> : vector<128x8xf32>
    %25 = tpu.matmul %23, %24, %cst_17 {dimension_numbers = #tpu.dot_dimension_numbers<[1], [1], [0], [0], [0, 0, 1, 0], [], []>} : vector<128x32xf32>, vector<8x32xf32>, vector<128x8xf32> -> vector<128x8xf32>
    %cst_18 = arith.constant dense<0xFF800000> : vector<128xf32>
    %26 = vector.multi_reduction <maximumf>, %25, %cst_18 [1] : vector<128x8xf32> to vector<128xf32>
    %27 = vector.shape_cast %26 : vector<128xf32> to vector<128x1xf32>
    %28 = tpu.iota {dimensions = array<i32: 1>} : vector<128x8xi32>
    %29 = vector.broadcast %27 : vector<128x1xf32> to vector<128x8xf32>
    %30 = arith.cmpf oge, %25, %29 : vector<128x8xf32>
    %c8_i32 = arith.constant 8 : i32
    %31 = vector.broadcast %c8_i32 : i32 to vector<128x8xi32>
    %32 = arith.select %30, %28, %31 : vector<128x8xi1>, vector<128x8xi32>
    %cst_19 = arith.constant dense<2147483647> : vector<128xi32>
    %33 = vector.multi_reduction <minsi>, %32, %cst_19 [1] : vector<128x8xi32> to vector<128xi32>
    %34 = vector.shape_cast %33 : vector<128xi32> to vector<128x1xi32>
    %35 = vector.extract_strided_slice %11 {offsets = [0, 32], sizes = [128, 64], strides = [1, 1]} : vector<128x128xf32> to vector<128x64xf32>
    %cst_20 = arith.constant dense<0xFF800000> : vector<128xf32>
    %36 = vector.multi_reduction <maximumf>, %35, %cst_20 [1] : vector<128x64xf32> to vector<128xf32>
    %37 = vector.shape_cast %36 : vector<128xf32> to vector<128x1xf32>
    %38 = vector.broadcast %37 : vector<128x1xf32> to vector<128x64xf32>
    %39 = arith.subf %35, %38 : vector<128x64xf32>
    %40 = math.exp %39 : vector<128x64xf32>
    %c0_21 = arith.constant 0 : index
    %c0_22 = arith.constant 0 : index
    %41 = vector.load %arg7[%c0_21, %c0_22] : memref<64x8xf32, #tpu.memory_space<vmem>>, vector<64x8xf32>
    %cst_23 = arith.constant dense<0.000000e+00> : vector<128x8xf32>
    %42 = tpu.matmul %40, %41, %cst_23 {dimension_numbers = #tpu.dot_dimension_numbers<[1], [0], [0], [1], [0, 0, 1, 1], [], []>} : vector<128x64xf32>, vector<64x8xf32>, vector<128x8xf32> -> vector<128x8xf32>
    %43 = vector.extract_strided_slice %42 {offsets = [0, 0], sizes = [128, 4], strides = [1, 1]} : vector<128x8xf32> to vector<128x4xf32>
    %44 = vector.extract_strided_slice %42 {offsets = [0, 4], sizes = [128, 4], strides = [1, 1]} : vector<128x8xf32> to vector<128x4xf32>
    %45 = arith.divf %43, %44 : vector<128x4xf32>
    %c0_24 = arith.constant 0 : index
    %c96 = arith.constant 96 : index
    %46 = vector.load %arg8[%c0_24, %c96] : memref<128x128xf32, #tpu.memory_space<vmem>>, vector<128x4xf32>
    tpu.vector_store %arg8[%c0_24, %c96], %45 {strides = array<i32>} : memref<128x128xf32, #tpu.memory_space<vmem>>, vector<128x4xf32>,
    %c0_25 = arith.constant 0 : index
    %c100 = arith.constant 100 : index
    %47 = vector.load %arg8[%c0_25, %c100] : memref<128x128xf32, #tpu.memory_space<vmem>>, vector<128x1xf32>
    tpu.vector_store %arg8[%c0_25, %c100], %27 {strides = array<i32>} : memref<128x128xf32, #tpu.memory_space<vmem>>, vector<128x1xf32>,
    %48 = arith.sitofp %34 : vector<128x1xi32> to vector<128x1xf32>
    %c0_26 = arith.constant 0 : index
    %c101 = arith.constant 101 : index
    %49 = vector.load %arg8[%c0_26, %c101] : memref<128x128xf32, #tpu.memory_space<vmem>>, vector<128x1xf32>
    tpu.vector_store %arg8[%c0_26, %c101], %48 {strides = array<i32>} : memref<128x128xf32, #tpu.memory_space<vmem>>, vector<128x1xf32>,
    return
  }
  func.func @transform_0(%arg0: i32) -> (i32, i32) {
    %c0_i32 = arith.constant 0 : i32
    %c0_i32_0 = arith.constant 0 : i32
    return %arg0, %c0_i32 : i32, i32
  }
  func.func @transform_1(%arg0: i32) -> (i32, i32) {
    %c0_i32 = arith.constant 0 : i32
    %c0_i32_0 = arith.constant 0 : i32
    %c0_i32_1 = arith.constant 0 : i32
    return %c0_i32, %c0_i32_0 : i32, i32
  }
  func.func @transform_2(%arg0: i32) -> (i32, i32) {
    %c0_i32 = arith.constant 0 : i32
    %c0_i32_0 = arith.constant 0 : i32
    %c0_i32_1 = arith.constant 0 : i32
    return %c0_i32, %c0_i32_0 : i32, i32
  }
  func.func @transform_3(%arg0: i32) -> (i32, i32) {
    %c0_i32 = arith.constant 0 : i32
    %c0_i32_0 = arith.constant 0 : i32
    %c0_i32_1 = arith.constant 0 : i32
    return %c0_i32, %c0_i32_0 : i32, i32
  }
  func.func @transform_4(%arg0: i32) -> (i32, i32) {
    %c0_i32 = arith.constant 0 : i32
    %c0_i32_0 = arith.constant 0 : i32
    %c0_i32_1 = arith.constant 0 : i32
    return %c0_i32, %c0_i32_0 : i32, i32
  }
  func.func @transform_5(%arg0: i32) -> (i32, i32) {
    %c0_i32 = arith.constant 0 : i32
    %c0_i32_0 = arith.constant 0 : i32
    %c0_i32_1 = arith.constant 0 : i32
    return %c0_i32, %c0_i32_0 : i32, i32
  }
  func.func @transform_6(%arg0: i32) -> (i32, i32) {
    %c0_i32 = arith.constant 0 : i32
    %c0_i32_0 = arith.constant 0 : i32
    %c0_i32_1 = arith.constant 0 : i32
    return %c0_i32, %c0_i32_0 : i32, i32
  }
  func.func @transform_7(%arg0: i32) -> (i32, i32) {
    %c0_i32 = arith.constant 0 : i32
    %c0_i32_0 = arith.constant 0 : i32
    return %arg0, %c0_i32 : i32, i32
  }
}

</mosaic_0001>

<bundles_post_ra>
// kernel: yolo_clip_forward.4
= control target key start
LH: loop header
LB: loop body
LE: loop exit
PB: predicated region body
PF: predicated region fallthrough
CT: control target
= control target key end

     0   :  { %10 = vsyncpa [#allocation3], 0  ;;  %s310_s0 = inlined_call_operand.hbm [shape: f32[8,32], index: 0, kind: input, shape index: {}]   ;;  %s311_s1 = inlined_call_operand.hbm [shape: f32[32,32], index: 1, kind: input, shape index: {}]   ;;  %s312_s2 = inlined_call_operand.hbm [shape: f32[1,32], index: 2, kind: input, shape index: {}]   ;;  %s313_s3 = inlined_call_operand.vmem [shape: f32[8,32], index: 3, kind: output, shape index: {0}]   ;;  %s314_s4 = inlined_call_operand.vmem [shape: f32[8,32], index: 4, kind: output, shape index: {1}]  }
   0x1   :  { %11 = vsyncpa [#allocation5], 0  ;;  %s259_s15 = smov [#allocation4]  }
   0x2   :  { %s27_s16 = sshll.u32 %s259_s15, 4  ;;  %s28_s16 = int_to_ptr.vmem [resolvable:$true] %s27_s16 }
   0x3   :  { %s203_s17 = scalar_lea.vmem %s28_s16, 512  ;;  %p208_p1 = scmp.lt.s32.totalorder %s28_s16, %s28_s16 }
   0x4   :  { %p204_p0 = scmp.ne.s32.totalorder %s28_s16, %s203_s17  ;;  %p209_p2 = scmp.lt.s32.totalorder %s203_s17, %s203_s17 }
   0x6   :  { %p210_p3 = por %p209_p2, %p208_p1 }
   0x8   :  { %p211_p4 = pnand %p210_p3, %p204_p0 }
   0xa   :  { %214 = shalt.err (!%p211_p4)
}
   0xb   :  { %s260_s18 = smov 128   ;;  %s261_s19 = smov 8  }
   0xc   :  { %33 = dma.hbm_to_vmem [thread:$0]  %s311_s1, 512, %s28_s16, [#allocation5], %s260_s18, %s260_s18, %s261_s19  }
   0xd   :  { %s262_s22 = smov [#allocation2]   ;;  %s263_s24 = smov [#allocation6]  }
   0xe   :  { %s18_s23 = sshll.u32 %s262_s22, 4  ;;  %s40_s25 = sshll.u32 %s263_s24, 4  ;;  %s19_s23 = int_to_ptr.vmem [resolvable:$true] %s18_s23  ;;  %s41_s25 = int_to_ptr.vmem [resolvable:$true] %s40_s25 }
   0xf   :  { %s223_s26 = scalar_lea.vmem %s19_s23, 128  ;;  %p228_p6 = scmp.lt.s32.totalorder %s19_s23, %s19_s23 }
  0x10   :  { %p224_p5 = scmp.ne.s32.totalorder %s19_s23, %s223_s26  ;;  %p229_p7 = scmp.lt.s32.totalorder %s223_s26, %s223_s26 }
  0x12   :  { %p230_p8 = por %p229_p7, %p228_p6 }
  0x14   :  { %p231_p9 = pnand %p230_p8, %p224_p5 }
  0x16   :  { %234 = shalt.err (!%p231_p9)
}
  0x17   :  { %21 = dma.hbm_to_vmem [thread:$0]  %s310_s0, 128, %s19_s23, [#allocation3]  }
  0x18   :  { %s243_s29 = scalar_lea.vmem %s41_s25, 16  ;;  %s247_s1 = scalar_lea.vmem %s41_s25, 32 }
  0x19   :  { %p244_p10 = scmp.ne.s32.totalorder %s41_s25, %s243_s29  ;;  %p248_p11 = scmp.lt.s32.totalorder %s41_s25, %s41_s25 }
  0x1a   :  { %p249_p12 = scmp.lt.s32.totalorder %s247_s1, %s243_s29 }
  0x1c   :  { %p250_p13 = por %p249_p12, %p248_p11 }
  0x1e   :  { %p251_p0 = pnand %p250_p13, %p244_p10 }
  0x20   :  { %254 = shalt.err (!%p251_p0)
}
  0x21   :  { %43 = dma.hbm_to_vmem [thread:$0]  %s312_s2, 16, %s41_s25, [#allocation5]  }
  0x22   :  { %255 = dma.done.wait [#allocation3], 128  }
  0x23   :  { %256 = vsyncadd [#allocation3], 4294967168 }
  0x24   :  { %257 = dma.done.wait [#allocation5], 528  }
  0x25   :  { %258 = vsyncadd [#allocation5], 4294966768  ;;  %v264_v0 = vmov 0.0   ;;  %vm265_vm0 = vmmov 0   ;;  %v57_v1 = vld [vmem:[#allocation4 + $0x18] sm:$0xff]  ;;  %v56_v2 = vld [vmem:[#allocation4 + $0x10] sm:$0xff] }
  0x26   :  { %173 = vmatprep.subr.mxu0 %v264_v0  ;;  %181 = vmatprep.mubr.msk.f32.mxu0 %vm265_vm0, %v264_v0  ;;  %v55_v3 = vld [vmem:[#allocation4 + $0x8] sm:$0xff]  ;;  %v54_v4 = vld [vmem:[#allocation4] sm:$0xff]  ;;  %v53_v5 = vld [vmem:[#allocation2] sm:$0xff]  ;;  %vm65_vm1 = vcmask 261120  }
  0x27   :  { %174 = vmatpush3.msra.mxu0 %v57_v1  ;;  %v166_v6 = vld [vmem:[#allocation6] ss:$0 sm:$0xff] }
  0x28   :  { %175 = vmatprep.subr.mxu0 %v264_v0 }
  0x29   :  { %176 = vmatpush3.msra.mxu0 %v56_v2 }
  0x2a   :  { %177 = vmatprep.subr.mxu0 %v264_v0 }
  0x2b   :  { %178 = vmatpush3.msra.mxu0 %v55_v3 }
  0x2c   :  { %179 = vmatprep.subr.mxu0 %v264_v0 }
  0x2d   :  { %180 = vmatpush3.msra.mxu0 %v54_v4 }
  0x2e   :  { %182 = vmatmul.mubr.msk.f32.vlgmr.msra.gmra.mxu0 %vm65_vm1, %v53_v5 }
  0xee   :  { %v135_v7 = vpop.f32.mrf.mxu0 }
  0xef   :  { %v136_v8 = vadd.f32 %v166_v6, %v135_v7 }
  0xf0   :  { %v183_v9 = vpop.f32.mrf.mxu0 }
  0xf1   :  { %139 = vst.msk [vmem:[%s313_s3] sm:$0xff] %vm65_vm1, %v136_v8  ;;  %v140_v10 = vmul.f32 %v136_v8, %v136_v8 }
  0xf3   :  { %v141_v11 = vsel %vm65_vm1, %v140_v10, 0.0 }
  0xf4   :  { %142 = vadd.xlane.f32.xlu0 %v141_v11 }
 0x17d   :  { %v143_v12 = vpop.xlane.xlu0 %142 }
 0x17e   :  { %191 = vrsqrt.f32 %v143_v12  ;;  %vm146_vm2 = vcmp.eq.f32.partialorder %v143_v12, inf  ;;  %v149_v15 = vand.u32 2147483648, %v143_v12  ;;  %vm148_vm3 = vcmp.eq.f32.partialorder %v143_v12, 0.0 }
 0x18b   :  { %v192_v13 = vpop.eup %191 }
 0x18c   :  { %v145_v14 = vmul.f32 %v192_v13, %v143_v12 }
 0x18e   :  { %v147_v16 = vsel %vm146_vm2, %v143_v12, %v145_v14 }
 0x18f   :  { %v150_v17 = vsel %vm148_vm3, %v149_v15, %v147_v16 }
 0x190   :  { %v151_v18 = vmax.f32 %v150_v17, 1e-08 }
 0x192   :  { %193 = vrcp.f32 %v151_v18 }
 0x19f   :  { %v194_v19 = vpop.eup %193 }
 0x1a0   :  { %v154_v20 = vmul.f32 %v194_v19, %v136_v8 }
 0x1a2   :  { %155 = vst.msk [vmem:[%s314_s4] sm:$0xff] %vm65_vm1, %v154_v20 }
 0x1a3   :  { %164 = vsyncpa [#allocation3], 1 }
 0x1a4   :  { %165 = vsyncpa [#allocation5], 1 }

// kernel: yolo_clip_forward.6
= control target key start
LH: loop header
LB: loop body
LE: loop exit
PB: predicated region body
PF: predicated region fallthrough
CT: control target
= control target key end

     0   :  { %vm662_vm0 = vcmask 261120   ;;  %vm966_vm1 = vcmask 785664   ;;  %vm1011_vm10 = vcmask 523264   ;;  %vm883_vm11 = vcmask 64512   ;;  %s1893_s1 = inlined_call_operand.vmem [shape: bf16[768,32], index: 1, kind: input, shape index: {}]   ;;  %s1894_s0 = inlined_call_operand.vmem [shape: bf16[32,768], index: 0, kind: input, shape index: {}]   ;;  %s1895_s3 = inlined_call_operand.vmem [shape: bf16[32,128], index: 3, kind: input, shape index: {}]   ;;  %s1896_s2 = inlined_call_operand.vmem [shape: f32[1,32], index: 2, kind: input, shape index: {}]   ;;  %s1897_s4 = inlined_call_operand.vmem [shape: f32[1,128], index: 4, kind: input, shape index: {}]   ;;  %s1898_s7 = inlined_call_operand.vmem [shape: f32[32,128], index: 7, kind: output, shape index: {}]   ;;  %s1899_s5 = inlined_call_operand.vmem [shape: f32[8,32], index: 5, kind: input, shape index: {}]   ;;  %s1900_s6 = inlined_call_operand.vmem [shape: f32[64,8], index: 6, kind: input, shape index: {}]  }
   0x1   :  { %v1388_v0 = vld [vmem:[%s1893_s1 + $0x78] sm:$0xff]   ;;  %v1392_v4 = vld [vmem:[%s1893_s1 + $0x70] sm:$0xff]   ;;  %v1396_v8 = vld [vmem:[%s1893_s1 + $0x68] sm:$0xff]  }
   0x2   :  { %v1389_v1 = vld [vmem:[%s1893_s1 + $0x38] sm:$0xff]   ;;  %1243 = vmatprep.subr.bf16.mxu0 %v1388_v0  ;;  %v1393_v5 = vld [vmem:[%s1893_s1 + $0x30] sm:$0xff]   ;;  %v1397_v9 = vld [vmem:[%s1893_s1 + $0x28] sm:$0xff]  }
   0x3   :  { %v1390_v2 = vld [vmem:[%s1893_s1 + $0xf8] sm:$0xff]   ;;  %1244 = vmatpush3.bf16.msra.mxu0 %v1389_v1  ;;  %v1394_v6 = vld [vmem:[%s1893_s1 + $0xf0] sm:$0xff]   ;;  %v1398_v10 = vld [vmem:[%s1893_s1 + $0xe8] sm:$0xff]  }
   0x4   :  { %v1391_v3 = vld [vmem:[%s1893_s1 + $0xb8] sm:$0xff]   ;;  %1271 = vmatprep.subr.bf16.mxu1 %v1390_v2  ;;  %1245 = vmatprep.subr.bf16.mxu0 %v1392_v4  ;;  %v1395_v7 = vld [vmem:[%s1893_s1 + $0xb0] sm:$0xff]   ;;  %v1399_v11 = vld [vmem:[%s1893_s1 + $0xa8] sm:$0xff]  }
   0x5   :  { %1272 = vmatpush3.bf16.msra.mxu1 %v1391_v3  ;;  %v1400_v12 = vld [vmem:[%s1893_s1 + $0x60] sm:$0xff]   ;;  %v1404_v16 = vld [vmem:[%s1893_s1 + $0x58] sm:$0xff]   ;;  %v1408_v20 = vld [vmem:[%s1893_s1 + $0x50] sm:$0xff]  }
   0x6   :  { %1273 = vmatprep.subr.bf16.mxu1 %v1394_v6  ;;  %v1401_v13 = vld [vmem:[%s1893_s1 + $0x20] sm:$0xff]   ;;  %v1405_v17 = vld [vmem:[%s1893_s1 + $0x18] sm:$0xff]   ;;  %v1409_v21 = vld [vmem:[%s1893_s1 + $0x10] sm:$0xff]  }
   0x7   :  { %1246 = vmatpush3.bf16.msra.mxu0 %v1393_v5  ;;  %v1402_v14 = vld [vmem:[%s1893_s1 + $0xe0] sm:$0xff]   ;;  %v1406_v18 = vld [vmem:[%s1893_s1 + $0xd8] sm:$0xff]   ;;  %v1410_v22 = vld [vmem:[%s1893_s1 + $0xd0] sm:$0xff]  }
   0x8   :  { %1247 = vmatprep.subr.bf16.mxu0 %v1396_v8  ;;  %v1403_v15 = vld [vmem:[%s1893_s1 + $0xa0] sm:$0xff]   ;;  %v1407_v19 = vld [vmem:[%s1893_s1 + $0x98] sm:$0xff]   ;;  %v1411_v23 = vld [vmem:[%s1893_s1 + $0x90] sm:$0xff]  }
   0x9   :  { %1274 = vmatpush3.bf16.msra.mxu1 %v1395_v7  ;;  %v1412_v24 = vld [vmem:[%s1893_s1 + $0x48] sm:$0xff]   ;;  %v1416_v28 = vld [vmem:[%s1893_s1 + $0x40] sm:$0xff]   ;;  %v1423_v34 = vld [vmem:[%s1893_s1 + $0x178] sm:$0xff]  }
   0xa   :  { %1275 = vmatprep.subr.bf16.mxu1 %v1398_v10  ;;  %v1413_v25 = vld [vmem:[%s1893_s1 + $0x8] sm:$0xff]   ;;  %v1417_v29 = vld [vmem:[%s1893_s1] sm:$0xff]   ;;  %v1427_v37 = vld [vmem:[%s1893_s1 + $0x138] sm:$0xff]  }
   0xb   :  { %1248 = vmatpush3.bf16.msra.mxu0 %v1397_v9  ;;  %v1414_v26 = vld [vmem:[%s1893_s1 + $0xc8] sm:$0xff]   ;;  %v1418_v30 = vld [vmem:[%s1893_s1 + $0xc0] sm:$0xff]   ;;  %v1428_v38 = vld [vmem:[%s1893_s1 + $0x170] sm:$0xff]  }
   0xc   :  { %1249 = vmatprep.subr.bf16.mxu0 %v1400_v12  ;;  %v1415_v27 = vld [vmem:[%s1893_s1 + $0x88] sm:$0xff]   ;;  %v1419_v31 = vld [vmem:[%s1894_s0] ss:$24 sps:$4 sm:$0xff]   ;;  %v1421_v32 = vld [vmem:[%s1894_s0 + $0x4] ss:$24 sps:$4 sm:$0xff]  }
   0xd   :  { %1276 = vmatpush3.bf16.msra.mxu1 %v1399_v11  ;;  %v1422_v33 = vld [vmem:[%s1893_s1 + $0x80] sm:$0xff]   ;;  %522 = vmatprep.mubr.bf16.mxu0 %v1421_v32  ;;  %v1429_v39 = vld [vmem:[%s1893_s1 + $0x130] sm:$0xff]   ;;  %v1430_v40 = vld [vmem:[%s1893_s1 + $0x168] sm:$0xff]  }
   0xe   :  { %1277 = vmatprep.subr.bf16.mxu1 %v1402_v14  ;;  %v1424_v35 = vld [vmem:[%s1894_s0 + $0x8] ss:$24 sps:$4 sm:$0xff]   ;;  %v1426_v36 = vld [vmem:[%s1894_s0 + $0xc] ss:$24 sps:$4 sm:$0xff]   ;;  %v1434_v45 = vld [vmem:[%s1893_s1 + $0x158] sm:$0xff]  }
   0xf   :  { %1250 = vmatpush3.bf16.msra.mxu0 %v1401_v13  ;;  %571 = vmatprep.mubr.bf16.mxu1 %v1426_v36  ;;  %v1431_v41 = vld [vmem:[%s1893_s1 + $0x128] sm:$0xff]   ;;  %v1432_v42 = vld [vmem:[%s1893_s1 + $0x160] sm:$0xff]   ;;  %v1439_v47 = vld [vmem:[%s1894_s0 + $0x3c] ss:$24 sps:$4 sm:$0xff]  }
  0x10   :  { %1251 = vmatprep.subr.bf16.mxu0 %v1404_v16  ;;  %v1433_v43 = vld [vmem:[%s1893_s1 + $0x120] sm:$0xff]   ;;  %v1435_v44 = vld [vmem:[%s1894_s0 + $0x34] ss:$24 sps:$4 sm:$0xff]   ;;  %v1438_v46 = vld [vmem:[%s1894_s0 + $0x30] ss:$24 sps:$4 sm:$0xff]  }
  0x11   :  { %1278 = vmatpush3.bf16.msra.mxu1 %v1403_v15  ;;  %v1441_v48 = vld [vmem:[%s1894_s0 + $0x38] ss:$24 sps:$4 sm:$0xff]   ;;  %v1450_v52 = vld [vmem:[%s1894_s0 + $0x14] ss:$24 sps:$4 sm:$0xff]   ;;  %v1446_v55 = vld [vmem:[%s1893_s1 + $0x140] sm:$0xff]  }
  0x12   :  { %1279 = vmatprep.subr.bf16.mxu1 %v1406_v18  ;;  %v1437_v49 = vld [vmem:[%s1893_s1 + $0x118] sm:$0xff]   ;;  %v1442_v50 = vld [vmem:[%s1893_s1 + $0x150] sm:$0xff]   ;;  %v1444_v53 = vld [vmem:[%s1893_s1 + $0x148] sm:$0xff]  }
  0x13   :  { %1252 = vmatpush3.bf16.msra.mxu0 %v1405_v17  ;;  %v1443_v51 = vld [vmem:[%s1893_s1 + $0x110] sm:$0xff]   ;;  %v1445_v54 = vld [vmem:[%s1893_s1 + $0x108] sm:$0xff]   ;;  %v1447_v56 = vld [vmem:[%s1893_s1 + $0x100] sm:$0xff]  }
  0x14   :  { %1253 = vmatprep.subr.bf16.mxu0 %v1408_v20  ;;  %v1448_v57 = vld [vmem:[%s1894_s0 + $0x10] ss:$24 sps:$4 sm:$0xff]   ;;  %v1451_v58 = vld [vmem:[%s1894_s0 + $0x44] ss:$24 sps:$4 sm:$0xff]   ;;  %v1453_v59 = vld [vmem:[%s1894_s0 + $0x40] ss:$24 sps:$4 sm:$0xff]  }
  0x15   :  { %1280 = vmatpush3.bf16.msra.mxu1 %v1407_v19  ;;  %v1454_v60 = vld [vmem:[%s1895_s3 + $0x8] sm:$0xff]   ;;  %v1455_v61 = vld [vmem:[%s1895_s3] sm:$0xff]  }
  0x16   :  { %1281 = vmatprep.subr.bf16.mxu1 %v1410_v22  ;;  %v1168_v13 = vld [vmem:[%s1896_s2] ss:$0 sm:$0xff] }
  0x17   :  { %1254 = vmatpush3.bf16.msra.mxu0 %v1409_v21 }
  0x18   :  { %1255 = vmatprep.subr.bf16.mxu0 %v1412_v24 }
  0x19   :  { %1282 = vmatpush3.bf16.msra.mxu1 %v1411_v23 }
  0x1a   :  { %1283 = vmatprep.subr.bf16.mxu1 %v1414_v26 }
  0x1b   :  { %1256 = vmatpush3.bf16.msra.mxu0 %v1413_v25 }
  0x1c   :  { %1257 = vmatprep.subr.bf16.mxu0 %v1416_v28 }
  0x1d   :  { %1284 = vmatpush3.bf16.msra.mxu1 %v1415_v27 }
  0x1e   :  { %1285 = vmatprep.subr.bf16.mxu1 %v1418_v30 }
  0x1f   :  { %1258 = vmatpush3.bf16.msra.mxu0 %v1417_v29 }
  0x20   :  { %1299 = vmatprep.subr.bf16.mxu0 %v1423_v34 }
  0x21   :  { %1286 = vmatpush3.bf16.msra.mxu1 %v1422_v33 }
  0x22   :  { %523 = vmatmul.mubr.bf16.vlgmr.msra.gmra.mxu0 %v1419_v31  ;;  %1348 = vmatprep.subr.bf16.mxu1 %v1454_v60 }
  0x23   :  { %1300 = vmatpush3.bf16.msra.mxu0 %v1427_v37  ;;  %530 = vmatprep.mubr.bf16.mxu0 %v1435_v44 }
  0x24   :  { %572 = vmatmul.mubr.bf16.vlgmr.msra.gmra.mxu1 %v1424_v35  ;;  %1301 = vmatprep.subr.bf16.mxu0 %v1428_v38 }
  0x25   :  { %579 = vmatprep.mubr.bf16.mxu1 %v1439_v47  ;;  %1349 = vmatpush3.bf16.msra.mxu1 %v1454_v60 }
  0x26   :  { %1350 = vmatprep.subr.bf16.mxu1 %v1455_v61 }
  0x27   :  { %1302 = vmatpush3.bf16.msra.mxu0 %v1429_v39 }
  0x28   :  { %1303 = vmatprep.subr.bf16.mxu0 %v1430_v40 }
  0x29   :  { %1351 = vmatpush3.bf16.msra.mxu1 %v1455_v61 }
  0x2a   :  { %531 = vmatmul.mubr.bf16.gmra.mxu0 %v1438_v46 }
  0x2b   :  { %1304 = vmatpush3.bf16.msra.mxu0 %v1431_v41  ;;  %620 = vmatprep.mubr.bf16.mxu0 %v1450_v52 }
  0x2c   :  { %1305 = vmatprep.subr.bf16.mxu0 %v1432_v42  ;;  %580 = vmatmul.mubr.bf16.gmra.mxu1 %v1441_v48 }
  0x2f   :  { %1306 = vmatpush3.bf16.msra.mxu0 %v1433_v43 }
  0x30   :  { %1307 = vmatprep.subr.bf16.mxu0 %v1434_v45 }
  0x33   :  { %1308 = vmatpush3.bf16.msra.mxu0 %v1437_v49  ;;  %v1229_v49 = vld [vmem:[%s1897_s4] ss:$0 sm:$0xff] }
  0x34   :  { %1309 = vmatprep.subr.bf16.mxu0 %v1442_v50 }
  0x37   :  { %1310 = vmatpush3.bf16.msra.mxu0 %v1443_v51 }
  0x38   :  { %1311 = vmatprep.subr.bf16.mxu0 %v1444_v53 }
  0x3b   :  { %1312 = vmatpush3.bf16.msra.mxu0 %v1445_v54 }
  0x3c   :  { %1313 = vmatprep.subr.bf16.mxu0 %v1446_v55 }
  0x3f   :  { %1314 = vmatpush3.bf16.msra.mxu0 %v1447_v56 }
  0x42   :  { %621 = vmatmul.mubr.bf16.vlgmr.msra.gmra.mxu0 %v1448_v57 }
  0x43   :  { %628 = vmatprep.mubr.bf16.mxu0 %v1451_v58 }
  0x4a   :  { %629 = vmatmul.mubr.bf16.gmra.mxu0 %v1453_v59 }
  0xe2   :  { %v1259_v62 = vpop.f32.mrf.mxu0 }
  0xe4   :  { %v1260_v63 = vpop.f32.mrf.mxu0  ;;  %v1287_v1 = vpop.f32.mrf.mxu1 }
  0xe5   :  { %v1261_v11 = vadd.f32 %v1260_v63, %v1259_v62 }
  0xe6   :  { %v1262_v0 = vpop.f32.mrf.mxu0  ;;  %v1288_v3 = vpop.f32.mrf.mxu1 }
  0xe7   :  { %v525_v17 = vadd.f32 %v1261_v11, %v1168_v13  ;;  %v1289_v18 = vadd.f32 %v1288_v3, %v1287_v1 }
  0xe8   :  { %v1263_v2 = vpop.f32.mrf.mxu0  ;;  %v1290_v5 = vpop.f32.mrf.mxu1 }
  0xe9   :  { %v1264_v12 = vadd.f32 %v1263_v2, %v1262_v0  ;;  %v574_v26 = vadd.f32 %v1289_v18, %v525_v17 }
  0xea   :  { %v1265_v4 = vpop.f32.mrf.mxu0  ;;  %v1291_v7 = vpop.f32.mrf.mxu1 }
  0xeb   :  { %v528_v19 = vadd.f32 %v1264_v12, %v1168_v13  ;;  %v1292_v20 = vadd.f32 %v1291_v7, %v1290_v5  ;;  %v1772_v7 = vld [vmem:[%s1900_s6 + $0x38] sm:$0xff] }
  0xec   :  { %v1266_v6 = vpop.f32.mrf.mxu0  ;;  %v1293_v9 = vpop.f32.mrf.mxu1 }
  0xed   :  { %v1267_v24 = vadd.f32 %v1266_v6, %v1265_v4  ;;  %v577_v27 = vadd.f32 %v1292_v20, %v528_v19  ;;  %v782_v6 = vld [vmem:[%s1899_s5] sm:$0xff]  ;;  %s1488_s5 = smov 96  }
  0xee   :  { %v1268_v8 = vpop.f32.mrf.mxu0  ;;  %v1294_v14 = vpop.f32.mrf.mxu1  ;;  %1356 = vmatprep.subr.msk.mxu1 %vm662_vm0, %v782_v6 }
  0xef   :  { %v533_v34 = vadd.f32 %v1267_v24, %v1168_v13  ;;  %v1295_v36 = vadd.f32 %v1294_v14, %v1293_v9 }
  0xf0   :  { %v1269_v10 = vpop.f32.mrf.mxu0  ;;  %v1296_v21 = vpop.f32.mrf.mxu1 }
  0xf1   :  { %v1270_v28 = vadd.f32 %v1269_v10, %v1268_v8  ;;  %v582_v43 = vadd.f32 %v1295_v36, %v533_v34 }
  0xf2   :  { %v1297_v30 = vpop.f32.mrf.mxu1 }
  0xf3   :  { %v536_v37 = vadd.f32 %v1270_v28, %v1168_v13  ;;  %v1298_v38 = vadd.f32 %v1297_v30, %v1296_v21 }
  0xf5   :  { %v585_v44 = vadd.f32 %v1298_v38, %v536_v37 }
 0x102   :  { %v1315_v15 = vpop.f32.mrf.mxu0 }
 0x104   :  { %v1316_v16 = vpop.f32.mrf.mxu0 }
 0x105   :  { %v1317_v23 = vadd.f32 %v1316_v16, %v1315_v15 }
 0x106   :  { %v1318_v22 = vpop.f32.mrf.mxu0 }
 0x107   :  { %v623_v32 = vadd.f32 %v1317_v23, %v574_v26 }
 0x108   :  { %v1319_v25 = vpop.f32.mrf.mxu0 }
 0x109   :  { %v1320_v29 = vadd.f32 %v1319_v25, %v1318_v22 }
 0x10a   :  { %v1321_v31 = vpop.f32.mrf.mxu0 }
 0x10b   :  { %v626_v33 = vadd.f32 %v1320_v29, %v577_v27 }
 0x10c   :  { %v1322_v35 = vpop.f32.mrf.mxu0 }
 0x10d   :  { %v637_v39 = vpack.c.bf16 %v626_v33, %v623_v32  ;;  %v1323_v41 = vadd.f32 %v1322_v35, %v1321_v31 }
 0x10e   :  { %v1324_v40 = vpop.f32.mrf.mxu0 }
 0x10f   :  { %1352 = vmatprep.mubr.msk.bf16.mxu1 %vm662_vm0, %v637_v39  ;;  %v631_v46 = vadd.f32 %v1323_v41, %v582_v43 }
 0x110   :  { %v1325_v42 = vpop.f32.mrf.mxu0 }
 0x111   :  { %v1326_v45 = vadd.f32 %v1325_v42, %v1324_v40 }
 0x113   :  { %v634_v47 = vadd.f32 %v1326_v45, %v585_v44 }
 0x115   :  { %v638_v48 = vpack.c.bf16 %v634_v47, %v631_v46 }
 0x117   :  { %1353 = vmatmul.mubr.msk.bf16.vlgmr.msra.gmra.mxu1 %vm662_vm0, %v638_v48 }
 0x118   :  { %1357 = vmatpush3.xpose.msk.msra.mxu1 %vm662_vm0, %v782_v6 }
 0x119   :  { %1364 = vmatprep.subr.mxu1 %v1772_v7 }
 0x1d7   :  { %v1354_v50 = vpop.f32.mrf.mxu1 }
 0x1d8   :  { %v1724_v51 = vadd.f32 %v1354_v50, %v1229_v49 }
 0x1d9   :  { %v703_v52 = vpop.f32.mrf.mxu1 }
 0x1da   :  { %v1726_v53 = vadd.f32 %v1229_v49, %v703_v52  ;;  %v724_v54 = vmul.f32 %v1724_v51, %v1724_v51  ;;  %720 = vst [vmem:[%s1898_s7 + $0x10] sm:$0xff] %v1724_v51  ;;  %v973_v5 = vsel %vm966_vm1, %v1724_v51, -inf }
 0x1db   :  { %v1355_v55 = vpop.f32.mrf.mxu1 }
 0x1dc   :  { %v1734_v56 = vadd.f32 %v1355_v55, %v1229_v49  ;;  %v732_v57 = vsel %vm662_vm0, %v724_v54, 0.0  ;;  %v722_v58 = vmul.f32 %v1726_v53, %v1726_v53  ;;  %718 = vst [vmem:[%s1898_s7] sm:$0xff] %v1726_v53  ;;  %v967_v3 = vsel %vm966_vm1, %v1726_v53, -inf }
 0x1dd   :  { %733 = vadd.xlane.f32.xlu1 %v732_v57  ;;  %v706_v59 = vpop.f32.mrf.mxu1 }
 0x1de   :  { %v1743_v60 = vadd.f32 %v1229_v49, %v706_v59  ;;  %v726_v61 = vsel %vm662_vm0, %v722_v58, 0.0  ;;  %v725_v62 = vmul.f32 %v1734_v56, %v1734_v56  ;;  %721 = vst [vmem:[%s1898_s7 + $0x18] sm:$0xff] %v1734_v56  ;;  %v976_v4 = vsel %vm966_vm1, %v1734_v56, -inf }
 0x1df   :  { %727 = vadd.xlane.f32.xlu0 %v726_v61 }
 0x1e0   :  { %v735_v63 = vsel %vm662_vm0, %v725_v62, 0.0  ;;  %v723_v0 = vmul.f32 %v1743_v60, %v1743_v60  ;;  %719 = vst [vmem:[%s1898_s7 + $0x8] sm:$0xff] %v1743_v60  ;;  %v970_v2 = vsel %vm966_vm1, %v1743_v60, -inf }
 0x1e1   :  { %736 = vadd.xlane.f32.xlu1 %v735_v63  ;;  %v997_v63 = vld [vmem:[%s1900_s6 + $0x30] sm:$0xff] }
 0x1e2   :  { %v729_v1 = vsel %vm662_vm0, %v723_v0, 0.0 }
 0x1e3   :  { %730 = vadd.xlane.f32.xlu0 %v729_v1  ;;  %v992_v1 = vld [vmem:[%s1900_s6 + $0x8] sm:$0xff] }
 0x1e5   :  { %971 = vmax.xlane.f32.xlu1 %v970_v2  ;;  %v991_v2 = vld [vmem:[%s1900_s6] sm:$0xff] }
 0x1e7   :  { %968 = vmax.xlane.f32.xlu0 %v967_v3 }
 0x1e9   :  { %977 = vmax.xlane.f32.xlu1 %v976_v4 }
 0x1eb   :  { %974 = vmax.xlane.f32.xlu0 %v973_v5 }
 0x266   :  { %v734_v8 = vpop.xlane.xlu1 %733 }
 0x267   :  { %1456 = vrsqrt.f32 %v734_v8  ;;  %vm754_vm2 = vcmp.eq.f32.partialorder %v734_v8, inf  ;;  %vm756_vm3 = vcmp.eq.f32.partialorder %v734_v8, 0.0  ;;  %v757_v23 = vand.u32 2147483648, %v734_v8 }
 0x268   :  { %v728_v9 = vpop.xlane.xlu0 %727 }
 0x269   :  { %1458 = vrsqrt.f32 %v728_v9  ;;  %vm740_vm4 = vcmp.eq.f32.partialorder %v728_v9, inf  ;;  %vm742_vm5 = vcmp.eq.f32.partialorder %v728_v9, 0.0  ;;  %v743_v29 = vand.u32 2147483648, %v728_v9 }
 0x26a   :  { %v737_v10 = vpop.xlane.xlu1 %736 }
 0x26b   :  { %1460 = vrsqrt.f32 %v737_v10  ;;  %vm761_vm6 = vcmp.eq.f32.partialorder %v737_v10, inf  ;;  %vm763_vm7 = vcmp.eq.f32.partialorder %v737_v10, 0.0  ;;  %v764_v36 = vand.u32 2147483648, %v737_v10 }
 0x26c   :  { %v731_v11 = vpop.xlane.xlu0 %730 }
 0x26d   :  { %1462 = vrsqrt.f32 %v731_v11  ;;  %vm747_vm8 = vcmp.eq.f32.partialorder %v731_v11, inf  ;;  %v750_v43 = vand.u32 2147483648, %v731_v11  ;;  %vm749_vm9 = vcmp.eq.f32.partialorder %v731_v11, 0.0 }
 0x26e   :  { %v972_v12 = vpop.xlane.xlu1 %971 }
 0x26f   :  { %v980_v17 = vsub.f32 %v1743_v60, %v972_v12 }
 0x270   :  { %v969_v13 = vpop.xlane.xlu0 %968 }
 0x271   :  { %v979_v14 = vsub.f32 %v1726_v53, %v969_v13  ;;  %v985_v30 = vmul.f32 1.442695, %v980_v17 }
 0x272   :  { %v978_v18 = vpop.xlane.xlu1 %977 }
 0x273   :  { %v983_v15 = vmul.f32 1.442695, %v979_v14  ;;  %v982_v26 = vsub.f32 %v1734_v56, %v978_v18 }
 0x274   :  { %v1457_v16 = vpop.eup %1456  ;;  %v975_v19 = vpop.xlane.xlu0 %974 }
 0x275   :  { %v753_v20 = vmul.f32 %v1457_v16, %v734_v8  ;;  %1464 = vpow2.f32 %v983_v15  ;;  %v981_v21 = vsub.f32 %v1724_v51, %v975_v19  ;;  %v989_v40 = vmul.f32 1.442695, %v982_v26 }
 0x276   :  { %v1459_v22 = vpop.eup %1458  ;;  %v896_v15 = vlaneseq }
 0x277   :  { %v755_v24 = vsel %vm754_vm2, %v734_v8, %v753_v20  ;;  %v739_v25 = vmul.f32 %v1459_v22, %v728_v9  ;;  %v987_v27 = vmul.f32 1.442695, %v981_v21 }
 0x278   :  { %v1461_v28 = vpop.eup %1460  ;;  %v758_v31 = vsel %vm756_vm3, %v757_v23, %v755_v24  ;;  %v897_v16 = vand.u32 127, %v896_v15 }
 0x279   :  { %v741_v32 = vsel %vm740_vm4, %v728_v9, %v739_v25  ;;  %v760_v33 = vmul.f32 %v1461_v28, %v737_v10  ;;  %1466 = vpow2.f32 %v987_v27  ;;  %v768_v41 = vmax.f32 %v758_v31, 1e-08 }
 0x27a   :  { %v1463_v34 = vpop.eup %1462  ;;  %v744_v35 = vsel %vm742_vm5, %v743_v29, %v741_v32  ;;  %1468 = vpow2.f32 %v985_v30  ;;  %vm1145_vm4 = vcmask 818944   ;;  %vm1150_vm5 = vcmask 827168  }
 0x27b   :  { %v766_v37 = vmax.f32 %v744_v35, 1e-08  ;;  %v762_v38 = vsel %vm761_vm6, %v737_v10, %v760_v33  ;;  %v746_v39 = vmul.f32 %v1463_v34, %v731_v11  ;;  %vm1159_vm6 = vcmask 835368  }
 0x27c   :  { %v765_v42 = vsel %vm763_vm7, %v764_v36, %v762_v38 }
 0x27d   :  { %1470 = vrcp.f32 %v766_v37  ;;  %v748_v44 = vsel %vm747_vm8, %v731_v11, %v746_v39  ;;  %v769_v46 = vmax.f32 %v765_v42, 1e-08 }
 0x27e   :  { %v751_v45 = vsel %vm749_vm9, %v750_v43, %v748_v44  ;;  %1472 = vpow2.f32 %v989_v40 }
 0x27f   :  { %v767_v47 = vmax.f32 %v751_v45, 1e-08  ;;  %1474 = vrcp.f32 %v768_v41 }
 0x281   :  { %1476 = vrcp.f32 %v767_v47 }
 0x282   :  { %v1465_v48 = vpop.eup %1464  ;;  %1478 = vrcp.f32 %v769_v46 }
 0x283   :  { %1003 = vrot.lane.b32.xlu0 %v1465_v48, %s1488_s5 }
 0x286   :  { %v1467_v49 = vpop.eup %1466 }
 0x287   :  { %1007 = vrot.lane.b32.xlu1 %v1467_v49, %s1488_s5  ;;  %v1469_v50 = vpop.eup %1468 }
 0x28a   :  { %v1471_v52 = vpop.eup %1470 }
 0x28b   :  { %1005 = vrot.lane.b32.xlu1 %v1469_v50, %s1488_s5  ;;  %v778_v54 = vmul.f32 %v1471_v52, %v1726_v53  ;;  %v1473_v55 = vpop.eup %1472  ;;  %v996_v53 = vld [vmem:[%s1900_s6 + $0x28] sm:$0xff] }
 0x28c   :  { %v1475_v57 = vpop.eup %1474 }
 0x28d   :  { %1358 = vmatprep.mubr.msk.f32.mxu1 %vm662_vm0, %v778_v54  ;;  %v780_v62 = vmul.f32 %v1475_v57, %v1724_v51  ;;  %v995_v51 = vld [vmem:[%s1900_s6 + $0x20] sm:$0xff] }
 0x28e   :  { %v1477_v58 = vpop.eup %1476 }
 0x28f   :  { %1009 = vrot.lane.b32.xlu1 %v1473_v55, %s1488_s5  ;;  %v779_v59 = vmul.f32 %v1477_v58, %v1743_v60  ;;  %v1479_v61 = vpop.eup %1478  ;;  %v994_v60 = vld [vmem:[%s1900_s6 + $0x18] sm:$0xff] }
 0x290   :  { %v781_v0 = vmul.f32 %v1479_v61, %v1734_v56  ;;  %v993_v56 = vld [vmem:[%s1900_s6 + $0x10] sm:$0xff]  ;;  %s1489_s6 = smov 124  }
 0x291   :  { %1359 = vmatmul.mubr.msk.f32.vlgmr.msra.gmra.mxu1 %vm662_vm0, %v779_v59 }
 0x292   :  { %1361 = vmatprep.mubr.msk.f32.mxu1 %vm662_vm0, %v780_v62  ;;  %1365 = vmatpush3.msra.mxu1 %v1772_v7 }
 0x293   :  { %1366 = vmatprep.subr.mxu1 %v997_v63 }
 0x294   :  { %1367 = vmatpush3.msra.mxu1 %v997_v63 }
 0x295   :  { %1362 = vmatmul.mubr.msk.f32.gmra.mxu1 %vm662_vm0, %v781_v0  ;;  %1368 = vmatprep.subr.mxu1 %v996_v53 }
 0x296   :  { %1369 = vmatpush3.msra.mxu1 %v996_v53 }
 0x297   :  { %1370 = vmatprep.subr.mxu1 %v995_v51 }
 0x298   :  { %1371 = vmatpush3.msra.mxu1 %v995_v51 }
 0x299   :  { %1372 = vmatprep.subr.mxu1 %v994_v60 }
 0x29a   :  { %1373 = vmatpush3.msra.mxu1 %v994_v60 }
 0x29b   :  { %1374 = vmatprep.subr.mxu1 %v993_v56 }
 0x29c   :  { %1375 = vmatpush3.msra.mxu1 %v993_v56 }
 0x29d   :  { %1376 = vmatprep.subr.mxu1 %v992_v1 }
 0x29e   :  { %1377 = vmatpush3.msra.mxu1 %v992_v1 }
 0x29f   :  { %1378 = vmatprep.subr.mxu1 %v991_v2 }
 0x2a0   :  { %1379 = vmatpush3.msra.mxu1 %v991_v2 }
 0x2f5   :  { %v1004_v3 = vpop.permute.xlu0 %1003 }
 0x2f6   :  { %1380 = vmatprep.mubr.msk.f32.mxu1 %vm1011_vm10, %v1004_v3 }
 0x2f9   :  { %v1008_v4 = vpop.permute.xlu1 %1007 }
 0x2fd   :  { %v1006_v5 = vpop.permute.xlu1 %1005 }
 0x2fe   :  { %1381 = vmatmul.mubr.msk.f32.vlgmr.msra.gmra.mxu1 %vm1011_vm10, %v1006_v5 }
 0x2ff   :  { %1383 = vmatprep.mubr.msk.f32.mxu1 %vm1011_vm10, %v1008_v4 }
 0x301   :  { %v1010_v6 = vpop.permute.xlu1 %1009 }
 0x302   :  { %1384 = vmatmul.mubr.msk.f32.gmra.mxu1 %vm1011_vm10, %v1010_v6 }
 0x351   :  { %v1360_v7 = vpop.f32.mrf.mxu1 }
 0x352   :  { %v887_v8 = vsel %vm883_vm11, %v1360_v7, -inf }
 0x353   :  { %v864_v9 = vpop.f32.mrf.mxu1  ;;  %888 = vmax.xlane.f32.xlu1 %v887_v8 }
 0x354   :  { %v884_v10 = vsel %vm883_vm11, %v864_v9, -inf }
 0x355   :  { %v1363_v11 = vpop.f32.mrf.mxu1  ;;  %885 = vmax.xlane.f32.xlu0 %v884_v10 }
 0x356   :  { %v893_v14 = vsel %vm883_vm11, %v1363_v11, -inf }
 0x357   :  { %v874_v12 = vpop.f32.mrf.mxu1 }
 0x358   :  { %v890_v13 = vsel %vm883_vm11, %v874_v12, -inf }
 0x359   :  { %891 = vmax.xlane.f32.xlu0 %v890_v13 }
 0x35d   :  { %894 = vmax.xlane.f32.xlu0 %v893_v14 }
 0x3be   :  { %v1382_v37 = vpop.f32.mrf.mxu1 }
 0x3c0   :  { %v1086_v38 = vpop.f32.mrf.mxu1 }
 0x3c2   :  { %v1385_v39 = vpop.f32.mrf.mxu1 }
 0x3c4   :  { %v1096_v40 = vpop.f32.mrf.mxu1 }
 0x3dc   :  { %v1817_v17 = vpop.xlane.xlu1 %888 }
 0x3dd   :  { %vm899_vm12 = vcmp.ge.f32.partialorder %v1360_v7, %v1817_v17 }
 0x3de   :  { %v903_v18 = vsel %vm899_vm12, %v897_v16, 8  ;;  %v1820_v19 = vpop.xlane.xlu0 %885 }
 0x3df   :  { %vm898_vm13 = vcmp.ge.f32.partialorder %v864_v9, %v1820_v19  ;;  %v921_v20 = vsel %vm883_vm11, %v903_v18, 2147483647 }
 0x3e0   :  { %v902_v21 = vsel %vm898_vm13, %v897_v16, 8  ;;  %v923_v22 = vshra.s32 %v921_v20, 16  ;;  %v922_v41 = vand.u32 65535, %v921_v20 }
 0x3e1   :  { %v906_v23 = vsel %vm883_vm11, %v902_v21, 2147483647 }
 0x3e2   :  { %v1825_v24 = vpop.xlane.xlu0 %891  ;;  %v925_v25 = vcvt.s32.f32 %v923_v22  ;;  %v908_v26 = vshra.s32 %v906_v23, 16  ;;  %v907_v42 = vand.u32 65535, %v906_v23  ;;  %v924_v44 = vcvt.s32.f32 %v922_v41 }
 0x3e3   :  { %vm900_vm14 = vcmp.ge.f32.partialorder %v874_v12, %v1825_v24 }
 0x3e4   :  { %v904_v27 = vsel %vm900_vm14, %v897_v16, 8  ;;  %926 = vmin.xlane.f32.xlu1 %v925_v25  ;;  %v910_v28 = vcvt.s32.f32 %v908_v26  ;;  %v909_v47 = vcvt.s32.f32 %v907_v42 }
 0x3e5   :  { %v936_v29 = vsel %vm883_vm11, %v904_v27, 2147483647 }
 0x3e6   :  { %911 = vmin.xlane.f32.xlu0 %v910_v28  ;;  %v1829_v30 = vpop.xlane.xlu0 %894  ;;  %v938_v31 = vshra.s32 %v936_v29, 16  ;;  %v937_v55 = vand.u32 65535, %v936_v29 }
 0x3e7   :  { %vm901_vm15 = vcmp.ge.f32.partialorder %v1363_v11, %v1829_v30 }
 0x3e8   :  { %v905_v32 = vsel %vm901_vm15, %v897_v16, 8  ;;  %v940_v33 = vcvt.s32.f32 %v938_v31  ;;  %v939_v59 = vcvt.s32.f32 %v937_v55 }
 0x3e9   :  { %v951_v34 = vsel %vm883_vm11, %v905_v32, 2147483647 }
 0x3ea   :  { %941 = vmin.xlane.f32.xlu0 %v940_v33  ;;  %v953_v35 = vshra.s32 %v951_v34, 16  ;;  %v952_v49 = vand.u32 65535, %v951_v34 }
 0x3ec   :  { %v955_v36 = vcvt.s32.f32 %v953_v35  ;;  %v954_v54 = vcvt.s32.f32 %v952_v49 }
 0x3ee   :  { %956 = vmin.xlane.f32.xlu1 %v955_v36 }
 0x3ff   :  { %1111 = vrot.lane.b32.xlu1 %v1382_v37, %s1489_s6 }
 0x400   :  { %1109 = vrot.lane.b32.xlu0 %v1086_v38, %s1489_s6 }
 0x403   :  { %1113 = vrot.lane.b32.xlu1 %v1096_v40, %s1489_s6 }
 0x407   :  { %1115 = vrot.lane.b32.xlu1 %v1385_v39, %s1489_s6 }
 0x46d   :  { %v927_v43 = vpop.xlane.xlu1 %926 }
 0x46e   :  { %vm928_vm0 = vcmp.eq.f32.partialorder %v925_v25, %v927_v43  ;;  %v933_v5 = vcvt.f32.s32 %v927_v43 }
 0x46f   :  { %v1833_v45 = vpop.xlane.xlu0 %911  ;;  %v929_v46 = vsel %vm928_vm0, %v924_v44, inf }
 0x470   :  { %930 = vmin.xlane.f32.xlu1 %v929_v46  ;;  %vm913_vm1 = vcmp.eq.f32.partialorder %v910_v28, %v1833_v45  ;;  %v934_v7 = vshll.u32 %v933_v5, 16  ;;  %v918_v14 = vcvt.f32.s32 %v1833_v45 }
 0x471   :  { %v914_v48 = vsel %vm913_vm1, %v909_v47, inf }
 0x472   :  { %915 = vmin.xlane.f32.xlu0 %v914_v48  ;;  %v919_v22 = vshll.u32 %v918_v14, 16 }
 0x473   :  { %v942_v50 = vpop.xlane.xlu0 %941 }
 0x474   :  { %vm943_vm3 = vcmp.eq.f32.partialorder %v940_v33, %v942_v50  ;;  %v948_v18 = vcvt.f32.s32 %v942_v50 }
 0x475   :  { %v944_v61 = vsel %vm943_vm3, %v939_v59, inf }
 0x476   :  { %v949_v27 = vshll.u32 %v948_v18, 16 }
 0x477   :  { %v957_v52 = vpop.xlane.xlu1 %956  ;;  %v1110_v62 = vpop.permute.xlu0 %1109 }
 0x478   :  { %vm958_vm2 = vcmp.eq.f32.partialorder %v955_v36, %v957_v52  ;;  %v963_v13 = vcvt.f32.s32 %v957_v52 }
 0x479   :  { %v959_v57 = vsel %vm958_vm2, %v954_v54, inf }
 0x47a   :  { %960 = vmin.xlane.f32.xlu0 %v959_v57  ;;  %v964_v20 = vshll.u32 %v963_v13, 16 }
 0x47b   :  { %v1112_v58 = vpop.permute.xlu1 %1111 }
 0x47c   :  { %1480 = vrcp.f32 %v1112_v58 }
 0x47e   :  { %945 = vmin.xlane.f32.xlu0 %v944_v61 }
 0x47f   :  { %v1114_v63 = vpop.permute.xlu1 %1113 }
 0x480   :  { %1482 = vrcp.f32 %v1114_v63 }
 0x481   :  { %1484 = vrcp.f32 %v1110_v62 }
 0x483   :  { %v1116_v53 = vpop.permute.xlu1 %1115 }
 0x484   :  { %1486 = vrcp.f32 %v1116_v53 }
 0x489   :  { %v1481_v0 = vpop.eup %1480 }
 0x48a   :  { %v1124_v51 = vmul.f32 %v1481_v0, %v1382_v37 }
 0x48c   :  { %1135 = vrot.lane.b32.xlu1 %v1124_v51, %s1488_s5 }
 0x48d   :  { %v1483_v60 = vpop.eup %1482 }
 0x48e   :  { %v1126_v56 = vmul.f32 %v1483_v60, %v1096_v40  ;;  %v1485_v1 = vpop.eup %1484 }
 0x48f   :  { %v1122_v4 = vmul.f32 %v1485_v1, %v1086_v38 }
 0x490   :  { %1137 = vrot.lane.b32.xlu1 %v1126_v56, %s1488_s5 }
 0x491   :  { %v1487_v2 = vpop.eup %1486 }
 0x492   :  { %v1128_v3 = vmul.f32 %v1487_v2, %v1385_v39 }
 0x494   :  { %1139 = vrot.lane.b32.xlu1 %v1128_v3, %s1488_s5  ;;  %1133 = vrot.lane.b32.xlu0 %v1122_v4, %s1488_s5 }
 0x4f9   :  { %v931_v6 = vpop.xlane.xlu1 %930 }
 0x4fa   :  { %v932_v8 = vcvt.f32.s32 %v931_v6 }
 0x4fb   :  { %v916_v12 = vpop.xlane.xlu0 %915 }
 0x4fc   :  { %v935_v9 = vadd.s32 %v934_v7, %v932_v8  ;;  %v917_v21 = vcvt.f32.s32 %v916_v12 }
 0x4fe   :  { %v1156_v10 = vcvt.s32.f32 %v935_v9  ;;  %v1136_v11 = vpop.permute.xlu1 %1135  ;;  %v920_v28 = vadd.s32 %v919_v22, %v917_v21 }
 0x4ff   :  { %1147 = vst.msk [vmem:[%s1898_s7 + $0x8] sm:$0xff] %vm1145_vm4, %v1136_v11 }
 0x500   :  { %1152 = vst.msk [vmem:[%s1898_s7 + $0x8] sm:$0xff] %vm1150_vm5, %v1817_v17  ;;  %v1155_v33 = vcvt.s32.f32 %v920_v28 }
 0x501   :  { %1161 = vst.msk [vmem:[%s1898_s7 + $0x8] sm:$0xff] %vm1159_vm6, %v1156_v10 }
 0x502   :  { %v1138_v15 = vpop.permute.xlu1 %1137 }
 0x503   :  { %1148 = vst.msk [vmem:[%s1898_s7 + $0x10] sm:$0xff] %vm1145_vm4, %v1138_v15  ;;  %v961_v16 = vpop.xlane.xlu0 %960 }
 0x504   :  { %1153 = vst.msk [vmem:[%s1898_s7 + $0x10] sm:$0xff] %vm1150_vm5, %v1825_v24  ;;  %v962_v17 = vcvt.f32.s32 %v961_v16 }
 0x506   :  { %v965_v23 = vadd.s32 %v964_v20, %v962_v17  ;;  %v1140_v25 = vpop.permute.xlu1 %1139 }
 0x507   :  { %1149 = vst.msk [vmem:[%s1898_s7 + $0x18] sm:$0xff] %vm1145_vm4, %v1140_v25  ;;  %v946_v26 = vpop.xlane.xlu0 %945 }
 0x508   :  { %v1158_v29 = vcvt.s32.f32 %v965_v23  ;;  %1154 = vst.msk [vmem:[%s1898_s7 + $0x18] sm:$0xff] %vm1150_vm5, %v1829_v30  ;;  %v947_v24 = vcvt.f32.s32 %v946_v26 }
 0x50a   :  { %1163 = vst.msk [vmem:[%s1898_s7 + $0x18] sm:$0xff] %vm1159_vm6, %v1158_v29  ;;  %v950_v31 = vadd.s32 %v949_v27, %v947_v24 }
 0x50b   :  { %v1134_v32 = vpop.permute.xlu0 %1133 }
 0x50c   :  { %v1157_v34 = vcvt.s32.f32 %v950_v31  ;;  %1146 = vst.msk [vmem:[%s1898_s7] sm:$0xff] %vm1145_vm4, %v1134_v32 }
 0x50d   :  { %1151 = vst.msk [vmem:[%s1898_s7] sm:$0xff] %vm1150_vm5, %v1820_v19 }
 0x50e   :  { %1162 = vst.msk [vmem:[%s1898_s7 + $0x10] sm:$0xff] %vm1159_vm6, %v1157_v34  ;;  %1160 = vst.msk [vmem:[%s1898_s7] sm:$0xff] %vm1159_vm6, %v1155_v33 }

// kernel: yolo_clip_forward.7
= control target key start
LH: loop header
LB: loop body
LE: loop exit
PB: predicated region body
PF: predicated region fallthrough
CT: control target
= control target key end

     0   :  { %vm3233_vm0 = vmmov 0   ;;  %vm2186_vm1 = vcmask 523264   ;;  %vm2232_vm2 = vcmask 261120   ;;  %vm2347_vm3 = vcmask 785664   ;;  %s3971_s1 = inlined_call_operand.vmem [shape: bf16[3072,64], index: 1, kind: input, shape index: {}]   ;;  %s3972_s0 = inlined_call_operand.vmem [shape: bf16[8,3072], index: 0, kind: input, shape index: {}]   ;;  %s3973_s2 = inlined_call_operand.vmem [shape: f32[1,64], index: 2, kind: input, shape index: {}]   ;;  %s3974_s3 = inlined_call_operand.vmem [shape: bf16[64,128], index: 3, kind: input, shape index: {}]   ;;  %s3975_s4 = inlined_call_operand.vmem [shape: f32[1,128], index: 4, kind: input, shape index: {}]   ;;  %s3976_s7 = inlined_call_operand.vmem [shape: f32[8,128], index: 7, kind: output, shape index: {}]   ;;  %s3977_s5 = inlined_call_operand.vmem [shape: f32[8,32], index: 5, kind: input, shape index: {}]   ;;  %s3978_s6 = inlined_call_operand.vmem [shape: f32[64,8], index: 6, kind: input, shape index: {}]  }
   0x1   :  { %v3004_v0 = vld [vmem:[%s3971_s1 + $0x78] sm:$0xff]   ;;  %v3008_v4 = vld [vmem:[%s3971_s1 + $0x70] sm:$0xff]   ;;  %v3012_v8 = vld [vmem:[%s3971_s1 + $0x68] sm:$0xff]   ;;  %vm2324_vm6 = vcmask 64512   ;;  %vm2447_vm9 = vcmask 818944   ;;  %vm2449_vm10 = vcmask 827168  }
   0x2   :  { %v3005_v1 = vld [vmem:[%s3971_s1 + $0xf8] sm:$0xff]   ;;  %2684 = vmatprep.subr.bf16.mxu0 %v3004_v0  ;;  %v3009_v5 = vld [vmem:[%s3971_s1 + $0xf0] sm:$0xff]   ;;  %v3013_v9 = vld [vmem:[%s3971_s1 + $0xe8] sm:$0xff]   ;;  %vm2452_vm11 = vcmask 835368  }
   0x3   :  { %v3006_v2 = vld [vmem:[%s3971_s1 + $0x38] sm:$0xff]   ;;  %2706 = vmatprep.subr.bf16.mxu1 %v3005_v1  ;;  %v3010_v6 = vld [vmem:[%s3971_s1 + $0x30] sm:$0xff]   ;;  %v3014_v10 = vld [vmem:[%s3971_s1 + $0x28] sm:$0xff]  }
   0x4   :  { %v3007_v3 = vld [vmem:[%s3971_s1 + $0xb8] sm:$0xff]   ;;  %2685 = vmatpush3.bf16.msra.mxu0 %v3006_v2  ;;  %v3011_v7 = vld [vmem:[%s3971_s1 + $0xb0] sm:$0xff]   ;;  %v3015_v11 = vld [vmem:[%s3971_s1 + $0xa8] sm:$0xff]  }
   0x5   :  { %2707 = vmatpush3.bf16.msra.mxu1 %v3007_v3  ;;  %2686 = vmatprep.subr.bf16.mxu0 %v3008_v4  ;;  %v3016_v12 = vld [vmem:[%s3971_s1 + $0x60] sm:$0xff]   ;;  %v3020_v16 = vld [vmem:[%s3971_s1 + $0x58] sm:$0xff]   ;;  %v3024_v20 = vld [vmem:[%s3971_s1 + $0x50] sm:$0xff]  }
   0x6   :  { %2708 = vmatprep.subr.bf16.mxu1 %v3009_v5  ;;  %v3017_v13 = vld [vmem:[%s3971_s1 + $0xe0] sm:$0xff]   ;;  %v3021_v17 = vld [vmem:[%s3971_s1 + $0xd8] sm:$0xff]   ;;  %v3025_v21 = vld [vmem:[%s3971_s1 + $0xd0] sm:$0xff]  }
   0x7   :  { %v3018_v14 = vld [vmem:[%s3971_s1 + $0x20] sm:$0xff]   ;;  %v3022_v18 = vld [vmem:[%s3971_s1 + $0x18] sm:$0xff]   ;;  %v3026_v22 = vld [vmem:[%s3971_s1 + $0x10] sm:$0xff]  }
   0x8   :  { %2687 = vmatpush3.bf16.msra.mxu0 %v3010_v6  ;;  %v3019_v15 = vld [vmem:[%s3971_s1 + $0xa0] sm:$0xff]   ;;  %v3023_v19 = vld [vmem:[%s3971_s1 + $0x98] sm:$0xff]   ;;  %v3027_v23 = vld [vmem:[%s3971_s1 + $0x90] sm:$0xff]  }
   0x9   :  { %2709 = vmatpush3.bf16.msra.mxu1 %v3011_v7  ;;  %2688 = vmatprep.subr.bf16.mxu0 %v3012_v8  ;;  %v3028_v24 = vld [vmem:[%s3971_s1 + $0x48] sm:$0xff]   ;;  %v3032_v28 = vld [vmem:[%s3971_s1 + $0x40] sm:$0xff]   ;;  %v3040_v38 = vld [vmem:[%s3971_s1 + $0x178] sm:$0xff]  }
   0xa   :  { %2710 = vmatprep.subr.bf16.mxu1 %v3013_v9  ;;  %v3029_v25 = vld [vmem:[%s3971_s1 + $0xc8] sm:$0xff]   ;;  %v3033_v29 = vld [vmem:[%s3971_s1 + $0xc0] sm:$0xff]   ;;  %v3041_v39 = vld [vmem:[%s3971_s1 + $0x1f8] sm:$0xff]  }
   0xb   :  { %v3030_v26 = vld [vmem:[%s3971_s1 + $0x8] sm:$0xff]   ;;  %v3034_v30 = vld [vmem:[%s3971_s1] sm:$0xff]   ;;  %v3042_v40 = vld [vmem:[%s3971_s1 + $0x138] sm:$0xff]  }
   0xc   :  { %2689 = vmatpush3.bf16.msra.mxu0 %v3014_v10  ;;  %v3031_v27 = vld [vmem:[%s3971_s1 + $0x88] sm:$0xff]   ;;  %v3035_v31 = vld [vmem:[%s3971_s1 + $0x80] sm:$0xff]   ;;  %v3043_v41 = vld [vmem:[%s3971_s1 + $0x1b8] sm:$0xff]  }
   0xd   :  { %2711 = vmatpush3.bf16.msra.mxu1 %v3015_v11  ;;  %2690 = vmatprep.subr.bf16.mxu0 %v3016_v12  ;;  %v27_v32 = vld [vmem:[%s3972_s0] sm:$0xff]  ;;  %v28_v33 = vld [vmem:[%s3972_s0 + $0x8] sm:$0xff]  ;;  %v3044_v42 = vld [vmem:[%s3971_s1 + $0x170] sm:$0xff]  }
   0xe   :  { %2712 = vmatprep.subr.bf16.mxu1 %v3017_v13  ;;  %v2459_v34 = vcombine.low %v27_v32, %v27_v32  ;;  %v2460_v35 = vcombine.high %v27_v32, %v27_v32  ;;  %v2461_v36 = vcombine.low %v28_v33, %v28_v33  ;;  %v2462_v37 = vcombine.high %v28_v33, %v28_v33  ;;  %v3045_v43 = vld [vmem:[%s3971_s1 + $0x1f0] sm:$0xff]   ;;  %v3048_v46 = vld [vmem:[%s3971_s1 + $0x168] sm:$0xff]   ;;  %v3052_v50 = vld [vmem:[%s3971_s1 + $0x160] sm:$0xff]  }
   0xf   :  { %v3046_v44 = vld [vmem:[%s3971_s1 + $0x130] sm:$0xff]   ;;  %v3049_v47 = vld [vmem:[%s3971_s1 + $0x1e8] sm:$0xff]   ;;  %v3053_v51 = vld [vmem:[%s3971_s1 + $0x1e0] sm:$0xff]  }
  0x10   :  { %2691 = vmatpush3.bf16.msra.mxu0 %v3018_v14  ;;  %1698 = vmatprep.mubr.bf16.mxu0 %v2460_v35  ;;  %v3047_v45 = vld [vmem:[%s3971_s1 + $0x1b0] sm:$0xff]   ;;  %v3050_v48 = vld [vmem:[%s3971_s1 + $0x128] sm:$0xff]   ;;  %v3054_v52 = vld [vmem:[%s3971_s1 + $0x120] sm:$0xff]  }
  0x11   :  { %2713 = vmatpush3.bf16.msra.mxu1 %v3019_v15  ;;  %2692 = vmatprep.subr.bf16.mxu0 %v3020_v16  ;;  %v3051_v49 = vld [vmem:[%s3971_s1 + $0x1a8] sm:$0xff]   ;;  %v3055_v53 = vld [vmem:[%s3971_s1 + $0x1a0] sm:$0xff]   ;;  %v3056_v54 = vld [vmem:[%s3971_s1 + $0x158] sm:$0xff]  }
  0x12   :  { %2714 = vmatprep.subr.bf16.mxu1 %v3021_v17  ;;  %1738 = vmatprep.mubr.bf16.mxu1 %v2462_v37  ;;  %v3057_v55 = vld [vmem:[%s3971_s1 + $0x1d8] sm:$0xff]   ;;  %v3060_v58 = vld [vmem:[%s3971_s1 + $0x150] sm:$0xff]   ;;  %v3064_v62 = vld [vmem:[%s3971_s1 + $0x148] sm:$0xff]  }
  0x13   :  { %v3058_v56 = vld [vmem:[%s3971_s1 + $0x118] sm:$0xff]   ;;  %v3061_v59 = vld [vmem:[%s3971_s1 + $0x1d0] sm:$0xff]   ;;  %v3065_v63 = vld [vmem:[%s3971_s1 + $0x1c8] sm:$0xff]  }
  0x14   :  { %2693 = vmatpush3.bf16.msra.mxu0 %v3022_v18  ;;  %v3059_v57 = vld [vmem:[%s3971_s1 + $0x198] sm:$0xff]   ;;  %v3062_v60 = vld [vmem:[%s3971_s1 + $0x110] sm:$0xff]   ;;  %v3066_v0 = vld [vmem:[%s3971_s1 + $0x108] sm:$0xff]  }
  0x15   :  { %2715 = vmatpush3.bf16.msra.mxu1 %v3023_v19  ;;  %2694 = vmatprep.subr.bf16.mxu0 %v3024_v20  ;;  %v3063_v61 = vld [vmem:[%s3971_s1 + $0x190] sm:$0xff]   ;;  %v3067_v1 = vld [vmem:[%s3971_s1 + $0x188] sm:$0xff]   ;;  %v3068_v2 = vld [vmem:[%s3971_s1 + $0x140] sm:$0xff]  }
  0x16   :  { %2716 = vmatprep.subr.bf16.mxu1 %v3025_v21  ;;  %v3069_v3 = vld [vmem:[%s3971_s1 + $0x1c0] sm:$0xff]   ;;  %v29_v6 = vld [vmem:[%s3972_s0 + $0x10] sm:$0xff]  ;;  %v30_v9 = vld [vmem:[%s3972_s0 + $0x18] sm:$0xff] }
  0x17   :  { %v3070_v4 = vld [vmem:[%s3971_s1 + $0x100] sm:$0xff]   ;;  %v2463_v7 = vcombine.low %v29_v6, %v29_v6  ;;  %v2464_v8 = vcombine.high %v29_v6, %v29_v6  ;;  %v2465_v10 = vcombine.low %v30_v9, %v30_v9  ;;  %v2466_v11 = vcombine.high %v30_v9, %v30_v9  ;;  %v3076_v12 = vld [vmem:[%s3971_s1 + $0x278] sm:$0xff]   ;;  %v3080_v16 = vld [vmem:[%s3971_s1 + $0x270] sm:$0xff]  }
  0x18   :  { %2695 = vmatpush3.bf16.msra.mxu0 %v3026_v22  ;;  %v3071_v5 = vld [vmem:[%s3971_s1 + $0x180] sm:$0xff]   ;;  %v3077_v13 = vld [vmem:[%s3971_s1 + $0x2f8] sm:$0xff]   ;;  %v3081_v17 = vld [vmem:[%s3971_s1 + $0x2f0] sm:$0xff]  }
  0x19   :  { %2717 = vmatpush3.bf16.msra.mxu1 %v3027_v23  ;;  %2696 = vmatprep.subr.bf16.mxu0 %v3028_v24  ;;  %v3078_v14 = vld [vmem:[%s3971_s1 + $0x238] sm:$0xff]   ;;  %v3082_v18 = vld [vmem:[%s3971_s1 + $0x230] sm:$0xff]   ;;  %v3084_v20 = vld [vmem:[%s3971_s1 + $0x268] sm:$0xff]  }
  0x1a   :  { %2718 = vmatprep.subr.bf16.mxu1 %v3029_v25  ;;  %v3079_v15 = vld [vmem:[%s3971_s1 + $0x2b8] sm:$0xff]   ;;  %v3083_v19 = vld [vmem:[%s3971_s1 + $0x2b0] sm:$0xff]   ;;  %v3085_v21 = vld [vmem:[%s3971_s1 + $0x2e8] sm:$0xff]  }
  0x1b   :  { %v3086_v22 = vld [vmem:[%s3971_s1 + $0x228] sm:$0xff]   ;;  %v3088_v24 = vld [vmem:[%s3971_s1 + $0x260] sm:$0xff]   ;;  %v3096_v32 = vld [vmem:[%s3971_s1 + $0x250] sm:$0xff]  }
  0x1c   :  { %2697 = vmatpush3.bf16.msra.mxu0 %v3030_v26  ;;  %v3087_v23 = vld [vmem:[%s3971_s1 + $0x2a8] sm:$0xff]   ;;  %v3089_v25 = vld [vmem:[%s3971_s1 + $0x2e0] sm:$0xff]   ;;  %v3097_v33 = vld [vmem:[%s3971_s1 + $0x2d0] sm:$0xff]  }
  0x1d   :  { %2719 = vmatpush3.bf16.msra.mxu1 %v3031_v27  ;;  %2698 = vmatprep.subr.bf16.mxu0 %v3032_v28  ;;  %v3090_v26 = vld [vmem:[%s3971_s1 + $0x220] sm:$0xff]   ;;  %v3092_v28 = vld [vmem:[%s3971_s1 + $0x258] sm:$0xff]   ;;  %v3099_v35 = vld [vmem:[%s3971_s1 + $0x290] sm:$0xff]  }
  0x1e   :  { %2720 = vmatprep.subr.bf16.mxu1 %v3033_v29  ;;  %v3091_v27 = vld [vmem:[%s3971_s1 + $0x2a0] sm:$0xff]   ;;  %v3093_v29 = vld [vmem:[%s3971_s1 + $0x2d8] sm:$0xff]   ;;  %v3101_v37 = vld [vmem:[%s3971_s1 + $0x2c8] sm:$0xff]  }
  0x1f   :  { %v3132_v6 = vld [vmem:[%s3971_s1 + $0x350] sm:$0xff]  }
  0x20   :  { %2699 = vmatpush3.bf16.msra.mxu0 %v3034_v30  ;;  %v3094_v30 = vld [vmem:[%s3971_s1 + $0x218] sm:$0xff]   ;;  %v3135_v9 = vld [vmem:[%s3971_s1 + $0x390] sm:$0xff]  }
  0x21   :  { %2721 = vmatpush3.bf16.msra.mxu1 %v3035_v31  ;;  %2728 = vmatprep.subr.bf16.mxu0 %v3040_v38  ;;  %v3095_v31 = vld [vmem:[%s3971_s1 + $0x298] sm:$0xff]   ;;  %v3102_v38 = vld [vmem:[%s3971_s1 + $0x208] sm:$0xff]  }
  0x22   :  { %2750 = vmatprep.subr.bf16.mxu1 %v3041_v39  ;;  %v3103_v39 = vld [vmem:[%s3971_s1 + $0x288] sm:$0xff]  }
  0x23   :  { %1699 = vmatmul.mubr.bf16.vlgmr.msra.gmra.mxu0 %v2459_v34  ;;  %v3098_v34 = vld [vmem:[%s3971_s1 + $0x210] sm:$0xff]  }
  0x24   :  { %1739 = vmatmul.mubr.bf16.vlgmr.msra.gmra.mxu1 %v2461_v36  ;;  %2729 = vmatpush3.bf16.msra.mxu0 %v3042_v40  ;;  %v3100_v36 = vld [vmem:[%s3971_s1 + $0x248] sm:$0xff]   ;;  %v3104_v40 = vld [vmem:[%s3971_s1 + $0x240] sm:$0xff]  }
  0x25   :  { %2751 = vmatpush3.bf16.msra.mxu1 %v3043_v41  ;;  %2730 = vmatprep.subr.bf16.mxu0 %v3044_v42  ;;  %v3105_v41 = vld [vmem:[%s3971_s1 + $0x2c0] sm:$0xff]  }
  0x26   :  { %2752 = vmatprep.subr.bf16.mxu1 %v3045_v43  ;;  %1778 = vmatprep.mubr.bf16.mxu0 %v2464_v8  ;;  %v3106_v42 = vld [vmem:[%s3971_s1 + $0x200] sm:$0xff]   ;;  %v3134_v8 = vld [vmem:[%s3971_s1 + $0x310] sm:$0xff]  }
  0x27   :  { %1818 = vmatprep.mubr.bf16.mxu1 %v2466_v11  ;;  %v3107_v43 = vld [vmem:[%s3971_s1 + $0x280] sm:$0xff]   ;;  %v3137_v11 = vld [vmem:[%s3971_s1 + $0x3c8] sm:$0xff]  }
  0x28   :  { %2731 = vmatpush3.bf16.msra.mxu0 %v3046_v44  ;;  %v31_v44 = vld [vmem:[%s3972_s0 + $0x20] sm:$0xff] }
  0x29   :  { %2753 = vmatpush3.bf16.msra.mxu1 %v3047_v45  ;;  %2732 = vmatprep.subr.bf16.mxu0 %v3048_v46  ;;  %v32_v45 = vld [vmem:[%s3972_s0 + $0x28] sm:$0xff]  ;;  %v2467_v46 = vcombine.low %v31_v44, %v31_v44 }
  0x2a   :  { %2754 = vmatprep.subr.bf16.mxu1 %v3049_v47  ;;  %v2468_v47 = vcombine.high %v31_v44, %v31_v44  ;;  %v3168_v44 = vld [vmem:[%s3971_s1 + $0x450] sm:$0xff]  }
  0x2c   :  { %2733 = vmatpush3.bf16.msra.mxu0 %v3050_v48  ;;  %v2469_v48 = vcombine.low %v32_v45, %v32_v45 }
  0x2d   :  { %2755 = vmatpush3.bf16.msra.mxu1 %v3051_v49  ;;  %2734 = vmatprep.subr.bf16.mxu0 %v3052_v50  ;;  %v2470_v49 = vcombine.high %v32_v45, %v32_v45  ;;  %v3112_v50 = vld [vmem:[%s3971_s1 + $0x378] sm:$0xff]   ;;  %v3169_v45 = vld [vmem:[%s3971_s1 + $0x4d0] sm:$0xff]  }
  0x2e   :  { %2756 = vmatprep.subr.bf16.mxu1 %v3053_v51  ;;  %v3113_v51 = vld [vmem:[%s3971_s1 + $0x3f8] sm:$0xff]  }
  0x30   :  { %2735 = vmatpush3.bf16.msra.mxu0 %v3054_v52  ;;  %v3114_v52 = vld [vmem:[%s3971_s1 + $0x338] sm:$0xff]  }
  0x31   :  { %2757 = vmatpush3.bf16.msra.mxu1 %v3055_v53  ;;  %2736 = vmatprep.subr.bf16.mxu0 %v3056_v54  ;;  %v3115_v53 = vld [vmem:[%s3971_s1 + $0x3b8] sm:$0xff]   ;;  %v3116_v54 = vld [vmem:[%s3971_s1 + $0x370] sm:$0xff]  }
  0x32   :  { %2758 = vmatprep.subr.bf16.mxu1 %v3057_v55  ;;  %v3117_v55 = vld [vmem:[%s3971_s1 + $0x3f0] sm:$0xff]  }
  0x34   :  { %2737 = vmatpush3.bf16.msra.mxu0 %v3058_v56  ;;  %v3118_v56 = vld [vmem:[%s3971_s1 + $0x330] sm:$0xff]  }
  0x35   :  { %2759 = vmatpush3.bf16.msra.mxu1 %v3059_v57  ;;  %2738 = vmatprep.subr.bf16.mxu0 %v3060_v58  ;;  %v3119_v57 = vld [vmem:[%s3971_s1 + $0x3b0] sm:$0xff]   ;;  %v3120_v58 = vld [vmem:[%s3971_s1 + $0x368] sm:$0xff]  }
  0x36   :  { %2760 = vmatprep.subr.bf16.mxu1 %v3061_v59  ;;  %v3121_v59 = vld [vmem:[%s3971_s1 + $0x3e8] sm:$0xff]  }
  0x38   :  { %2739 = vmatpush3.bf16.msra.mxu0 %v3062_v60  ;;  %v3122_v60 = vld [vmem:[%s3971_s1 + $0x328] sm:$0xff]  }
  0x39   :  { %2761 = vmatpush3.bf16.msra.mxu1 %v3063_v61  ;;  %2740 = vmatprep.subr.bf16.mxu0 %v3064_v62  ;;  %v3123_v61 = vld [vmem:[%s3971_s1 + $0x3a8] sm:$0xff]   ;;  %v3124_v62 = vld [vmem:[%s3971_s1 + $0x360] sm:$0xff]  }
  0x3a   :  { %2762 = vmatprep.subr.bf16.mxu1 %v3065_v63  ;;  %v3125_v63 = vld [vmem:[%s3971_s1 + $0x3e0] sm:$0xff]  }
  0x3c   :  { %2741 = vmatpush3.bf16.msra.mxu0 %v3066_v0  ;;  %v3126_v0 = vld [vmem:[%s3971_s1 + $0x320] sm:$0xff]  }
  0x3d   :  { %2763 = vmatpush3.bf16.msra.mxu1 %v3067_v1  ;;  %2742 = vmatprep.subr.bf16.mxu0 %v3068_v2  ;;  %v3127_v1 = vld [vmem:[%s3971_s1 + $0x3a0] sm:$0xff]   ;;  %v3128_v2 = vld [vmem:[%s3971_s1 + $0x358] sm:$0xff]  }
  0x3e   :  { %2764 = vmatprep.subr.bf16.mxu1 %v3069_v3  ;;  %v3129_v3 = vld [vmem:[%s3971_s1 + $0x3d8] sm:$0xff]  }
  0x40   :  { %2743 = vmatpush3.bf16.msra.mxu0 %v3070_v4  ;;  %v3130_v4 = vld [vmem:[%s3971_s1 + $0x318] sm:$0xff]  }
  0x41   :  { %2765 = vmatpush3.bf16.msra.mxu1 %v3071_v5  ;;  %2772 = vmatprep.subr.bf16.mxu0 %v3076_v12  ;;  %v3131_v5 = vld [vmem:[%s3971_s1 + $0x398] sm:$0xff]   ;;  %v3138_v12 = vld [vmem:[%s3971_s1 + $0x308] sm:$0xff]  }
  0x42   :  { %2794 = vmatprep.subr.bf16.mxu1 %v3077_v13  ;;  %v3139_v13 = vld [vmem:[%s3971_s1 + $0x388] sm:$0xff]  }
  0x43   :  { %1779 = vmatmul.mubr.bf16.vlgmr.msra.gmra.mxu0 %v2463_v7  ;;  %v3133_v7 = vld [vmem:[%s3971_s1 + $0x3d0] sm:$0xff]  }
  0x44   :  { %1819 = vmatmul.mubr.bf16.vlgmr.msra.gmra.mxu1 %v2465_v10  ;;  %2773 = vmatpush3.bf16.msra.mxu0 %v3078_v14  ;;  %v3136_v10 = vld [vmem:[%s3971_s1 + $0x348] sm:$0xff]   ;;  %v3140_v14 = vld [vmem:[%s3971_s1 + $0x340] sm:$0xff]  }
  0x45   :  { %2795 = vmatpush3.bf16.msra.mxu1 %v3079_v15  ;;  %2774 = vmatprep.subr.bf16.mxu0 %v3080_v16  ;;  %v3141_v15 = vld [vmem:[%s3971_s1 + $0x3c0] sm:$0xff]  }
  0x46   :  { %2796 = vmatprep.subr.bf16.mxu1 %v3081_v17  ;;  %1858 = vmatprep.mubr.bf16.mxu0 %v2468_v47  ;;  %v3142_v16 = vld [vmem:[%s3971_s1 + $0x300] sm:$0xff]   ;;  %v3171_v47 = vld [vmem:[%s3971_s1 + $0x490] sm:$0xff]  }
  0x47   :  { %1898 = vmatprep.mubr.bf16.mxu1 %v2470_v49  ;;  %v3143_v17 = vld [vmem:[%s3971_s1 + $0x380] sm:$0xff]   ;;  %v3173_v49 = vld [vmem:[%s3971_s1 + $0x4c8] sm:$0xff]  }
  0x48   :  { %2775 = vmatpush3.bf16.msra.mxu0 %v3082_v18  ;;  %v33_v18 = vld [vmem:[%s3972_s0 + $0x30] sm:$0xff] }
  0x49   :  { %2797 = vmatpush3.bf16.msra.mxu1 %v3083_v19  ;;  %2776 = vmatprep.subr.bf16.mxu0 %v3084_v20  ;;  %v34_v19 = vld [vmem:[%s3972_s0 + $0x38] sm:$0xff]  ;;  %v2471_v20 = vcombine.low %v33_v18, %v33_v18 }
  0x4a   :  { %2798 = vmatprep.subr.bf16.mxu1 %v3085_v21  ;;  %v2472_v21 = vcombine.high %v33_v18, %v33_v18  ;;  %v3204_v18 = vld [vmem:[%s3971_s1 + $0x550] sm:$0xff]  }
  0x4c   :  { %2777 = vmatpush3.bf16.msra.mxu0 %v3086_v22  ;;  %v2473_v22 = vcombine.low %v34_v19, %v34_v19 }
  0x4d   :  { %2799 = vmatpush3.bf16.msra.mxu1 %v3087_v23  ;;  %2778 = vmatprep.subr.bf16.mxu0 %v3088_v24  ;;  %v3148_v23 = vld [vmem:[%s3971_s1 + $0x478] sm:$0xff]   ;;  %v2474_v24 = vcombine.high %v34_v19, %v34_v19  ;;  %v3205_v19 = vld [vmem:[%s3971_s1 + $0x5d0] sm:$0xff]  }
  0x4e   :  { %2800 = vmatprep.subr.bf16.mxu1 %v3089_v25  ;;  %v3149_v25 = vld [vmem:[%s3971_s1 + $0x4f8] sm:$0xff]  }
  0x50   :  { %2779 = vmatpush3.bf16.msra.mxu0 %v3090_v26  ;;  %v3150_v26 = vld [vmem:[%s3971_s1 + $0x438] sm:$0xff]  }
  0x51   :  { %2801 = vmatpush3.bf16.msra.mxu1 %v3091_v27  ;;  %2780 = vmatprep.subr.bf16.mxu0 %v3092_v28  ;;  %v3151_v27 = vld [vmem:[%s3971_s1 + $0x4b8] sm:$0xff]   ;;  %v3152_v28 = vld [vmem:[%s3971_s1 + $0x470] sm:$0xff]  }
  0x52   :  { %2802 = vmatprep.subr.bf16.mxu1 %v3093_v29  ;;  %v3153_v29 = vld [vmem:[%s3971_s1 + $0x4f0] sm:$0xff]  }
  0x54   :  { %2781 = vmatpush3.bf16.msra.mxu0 %v3094_v30  ;;  %v3154_v30 = vld [vmem:[%s3971_s1 + $0x430] sm:$0xff]  }
  0x55   :  { %2803 = vmatpush3.bf16.msra.mxu1 %v3095_v31  ;;  %2782 = vmatprep.subr.bf16.mxu0 %v3096_v32  ;;  %v3155_v31 = vld [vmem:[%s3971_s1 + $0x4b0] sm:$0xff]   ;;  %v3156_v32 = vld [vmem:[%s3971_s1 + $0x468] sm:$0xff]  }
  0x56   :  { %2804 = vmatprep.subr.bf16.mxu1 %v3097_v33  ;;  %v3157_v33 = vld [vmem:[%s3971_s1 + $0x4e8] sm:$0xff]  }
  0x58   :  { %2783 = vmatpush3.bf16.msra.mxu0 %v3098_v34  ;;  %v3158_v34 = vld [vmem:[%s3971_s1 + $0x428] sm:$0xff]  }
  0x59   :  { %2805 = vmatpush3.bf16.msra.mxu1 %v3099_v35  ;;  %2784 = vmatprep.subr.bf16.mxu0 %v3100_v36  ;;  %v3159_v35 = vld [vmem:[%s3971_s1 + $0x4a8] sm:$0xff]   ;;  %v3160_v36 = vld [vmem:[%s3971_s1 + $0x460] sm:$0xff]  }
  0x5a   :  { %2806 = vmatprep.subr.bf16.mxu1 %v3101_v37  ;;  %v3161_v37 = vld [vmem:[%s3971_s1 + $0x4e0] sm:$0xff]  }
  0x5c   :  { %2785 = vmatpush3.bf16.msra.mxu0 %v3102_v38  ;;  %v3162_v38 = vld [vmem:[%s3971_s1 + $0x420] sm:$0xff]  }
  0x5d   :  { %2807 = vmatpush3.bf16.msra.mxu1 %v3103_v39  ;;  %2786 = vmatprep.subr.bf16.mxu0 %v3104_v40  ;;  %v3163_v39 = vld [vmem:[%s3971_s1 + $0x4a0] sm:$0xff]   ;;  %v3164_v40 = vld [vmem:[%s3971_s1 + $0x458] sm:$0xff]  }
  0x5e   :  { %2808 = vmatprep.subr.bf16.mxu1 %v3105_v41  ;;  %v3165_v41 = vld [vmem:[%s3971_s1 + $0x4d8] sm:$0xff]  }
  0x60   :  { %2787 = vmatpush3.bf16.msra.mxu0 %v3106_v42  ;;  %v3166_v42 = vld [vmem:[%s3971_s1 + $0x418] sm:$0xff]  }
  0x61   :  { %2809 = vmatpush3.bf16.msra.mxu1 %v3107_v43  ;;  %2816 = vmatprep.subr.bf16.mxu0 %v3112_v50  ;;  %v3167_v43 = vld [vmem:[%s3971_s1 + $0x498] sm:$0xff]   ;;  %v3174_v50 = vld [vmem:[%s3971_s1 + $0x408] sm:$0xff]  }
  0x62   :  { %2838 = vmatprep.subr.bf16.mxu1 %v3113_v51  ;;  %v3175_v51 = vld [vmem:[%s3971_s1 + $0x488] sm:$0xff]  }
  0x63   :  { %1859 = vmatmul.mubr.bf16.vlgmr.msra.gmra.mxu0 %v2467_v46  ;;  %v3170_v46 = vld [vmem:[%s3971_s1 + $0x410] sm:$0xff]  }
  0x64   :  { %1899 = vmatmul.mubr.bf16.vlgmr.msra.gmra.mxu1 %v2469_v48  ;;  %2817 = vmatpush3.bf16.msra.mxu0 %v3114_v52  ;;  %v3172_v48 = vld [vmem:[%s3971_s1 + $0x448] sm:$0xff]   ;;  %v3176_v52 = vld [vmem:[%s3971_s1 + $0x440] sm:$0xff]  }
  0x65   :  { %2839 = vmatpush3.bf16.msra.mxu1 %v3115_v53  ;;  %2818 = vmatprep.subr.bf16.mxu0 %v3116_v54  ;;  %v3177_v53 = vld [vmem:[%s3971_s1 + $0x4c0] sm:$0xff]  }
  0x66   :  { %2840 = vmatprep.subr.bf16.mxu1 %v3117_v55  ;;  %1938 = vmatprep.mubr.bf16.mxu0 %v2472_v21  ;;  %v3178_v54 = vld [vmem:[%s3971_s1 + $0x400] sm:$0xff]   ;;  %v3207_v21 = vld [vmem:[%s3971_s1 + $0x590] sm:$0xff]  }
  0x67   :  { %1978 = vmatprep.mubr.bf16.mxu1 %v2474_v24  ;;  %v3179_v55 = vld [vmem:[%s3971_s1 + $0x480] sm:$0xff]   ;;  %v3210_v24 = vld [vmem:[%s3971_s1 + $0x508] sm:$0xff]  }
  0x68   :  { %2819 = vmatpush3.bf16.msra.mxu0 %v3118_v56  ;;  %v35_v56 = vld [vmem:[%s3972_s0 + $0x40] sm:$0xff] }
  0x69   :  { %2841 = vmatpush3.bf16.msra.mxu1 %v3119_v57  ;;  %2820 = vmatprep.subr.bf16.mxu0 %v3120_v58  ;;  %v2475_v57 = vcombine.low %v35_v56, %v35_v56  ;;  %v2476_v58 = vcombine.high %v35_v56, %v35_v56 }
  0x6a   :  { %2842 = vmatprep.subr.bf16.mxu1 %v3121_v59  ;;  %v36_v59 = vld [vmem:[%s3972_s0 + $0x48] sm:$0xff] }
  0x6c   :  { %2821 = vmatpush3.bf16.msra.mxu0 %v3122_v60  ;;  %v2477_v60 = vcombine.low %v36_v59, %v36_v59 }
  0x6d   :  { %2843 = vmatpush3.bf16.msra.mxu1 %v3123_v61  ;;  %2822 = vmatprep.subr.bf16.mxu0 %v3124_v62  ;;  %v2478_v61 = vcombine.high %v36_v59, %v36_v59  ;;  %v3184_v62 = vld [vmem:[%s3971_s1 + $0x578] sm:$0xff]  }
  0x6e   :  { %2844 = vmatprep.subr.bf16.mxu1 %v3125_v63  ;;  %v3185_v63 = vld [vmem:[%s3971_s1 + $0x5f8] sm:$0xff]  }
  0x70   :  { %2823 = vmatpush3.bf16.msra.mxu0 %v3126_v0  ;;  %v3186_v0 = vld [vmem:[%s3971_s1 + $0x538] sm:$0xff]  }
  0x71   :  { %2845 = vmatpush3.bf16.msra.mxu1 %v3127_v1  ;;  %2824 = vmatprep.subr.bf16.mxu0 %v3128_v2  ;;  %v3187_v1 = vld [vmem:[%s3971_s1 + $0x5b8] sm:$0xff]   ;;  %v3188_v2 = vld [vmem:[%s3971_s1 + $0x570] sm:$0xff]  }
  0x72   :  { %2846 = vmatprep.subr.bf16.mxu1 %v3129_v3  ;;  %v3189_v3 = vld [vmem:[%s3971_s1 + $0x5f0] sm:$0xff]  }
  0x74   :  { %2825 = vmatpush3.bf16.msra.mxu0 %v3130_v4  ;;  %v3190_v4 = vld [vmem:[%s3971_s1 + $0x530] sm:$0xff]  }
  0x75   :  { %2847 = vmatpush3.bf16.msra.mxu1 %v3131_v5  ;;  %2826 = vmatprep.subr.bf16.mxu0 %v3132_v6  ;;  %v3191_v5 = vld [vmem:[%s3971_s1 + $0x5b0] sm:$0xff]   ;;  %v3192_v6 = vld [vmem:[%s3971_s1 + $0x568] sm:$0xff]  }
  0x76   :  { %2848 = vmatprep.subr.bf16.mxu1 %v3133_v7  ;;  %v3193_v7 = vld [vmem:[%s3971_s1 + $0x5e8] sm:$0xff]  }
  0x78   :  { %2827 = vmatpush3.bf16.msra.mxu0 %v3134_v8  ;;  %v3194_v8 = vld [vmem:[%s3971_s1 + $0x528] sm:$0xff]  }
  0x79   :  { %2849 = vmatpush3.bf16.msra.mxu1 %v3135_v9  ;;  %2828 = vmatprep.subr.bf16.mxu0 %v3136_v10  ;;  %v3195_v9 = vld [vmem:[%s3971_s1 + $0x5a8] sm:$0xff]   ;;  %v3196_v10 = vld [vmem:[%s3971_s1 + $0x560] sm:$0xff]  }
  0x7a   :  { %2850 = vmatprep.subr.bf16.mxu1 %v3137_v11  ;;  %v3197_v11 = vld [vmem:[%s3971_s1 + $0x5e0] sm:$0xff]  }
  0x7c   :  { %2829 = vmatpush3.bf16.msra.mxu0 %v3138_v12  ;;  %v3198_v12 = vld [vmem:[%s3971_s1 + $0x520] sm:$0xff]  }
  0x7d   :  { %2851 = vmatpush3.bf16.msra.mxu1 %v3139_v13  ;;  %2830 = vmatprep.subr.bf16.mxu0 %v3140_v14  ;;  %v3199_v13 = vld [vmem:[%s3971_s1 + $0x5a0] sm:$0xff]   ;;  %v3200_v14 = vld [vmem:[%s3971_s1 + $0x558] sm:$0xff]  }
  0x7e   :  { %2852 = vmatprep.subr.bf16.mxu1 %v3141_v15  ;;  %v3201_v15 = vld [vmem:[%s3971_s1 + $0x5d8] sm:$0xff]  }
  0x80   :  { %2831 = vmatpush3.bf16.msra.mxu0 %v3142_v16  ;;  %v3202_v16 = vld [vmem:[%s3971_s1 + $0x518] sm:$0xff]  }
  0x81   :  { %2853 = vmatpush3.bf16.msra.mxu1 %v3143_v17  ;;  %2860 = vmatprep.subr.bf16.mxu0 %v3148_v23  ;;  %v3203_v17 = vld [vmem:[%s3971_s1 + $0x598] sm:$0xff]   ;;  %v3209_v23 = vld [vmem:[%s3971_s1 + $0x5c8] sm:$0xff]  }
  0x82   :  { %2882 = vmatprep.subr.bf16.mxu1 %v3149_v25  ;;  %v3211_v25 = vld [vmem:[%s3971_s1 + $0x588] sm:$0xff]  }
  0x83   :  { %1939 = vmatmul.mubr.bf16.vlgmr.msra.gmra.mxu0 %v2471_v20  ;;  %v3206_v20 = vld [vmem:[%s3971_s1 + $0x510] sm:$0xff]  }
  0x84   :  { %1979 = vmatmul.mubr.bf16.vlgmr.msra.gmra.mxu1 %v2473_v22  ;;  %2861 = vmatpush3.bf16.msra.mxu0 %v3150_v26  ;;  %v3208_v22 = vld [vmem:[%s3971_s1 + $0x548] sm:$0xff]   ;;  %v3212_v26 = vld [vmem:[%s3971_s1 + $0x540] sm:$0xff]  }
  0x85   :  { %2883 = vmatpush3.bf16.msra.mxu1 %v3151_v27  ;;  %2862 = vmatprep.subr.bf16.mxu0 %v3152_v28  ;;  %v3213_v27 = vld [vmem:[%s3971_s1 + $0x5c0] sm:$0xff]  }
  0x86   :  { %2884 = vmatprep.subr.bf16.mxu1 %v3153_v29  ;;  %2018 = vmatprep.mubr.bf16.mxu0 %v2476_v58  ;;  %v3214_v28 = vld [vmem:[%s3971_s1 + $0x500] sm:$0xff]  }
  0x87   :  { %2058 = vmatprep.mubr.bf16.mxu1 %v2478_v61  ;;  %v3215_v29 = vld [vmem:[%s3971_s1 + $0x580] sm:$0xff]   ;;  %v3222_v61 = vld [vmem:[%s3974_s3 + $0x8] sm:$0xff]  }
  0x88   :  { %2863 = vmatpush3.bf16.msra.mxu0 %v3154_v30  ;;  %v37_v30 = vld [vmem:[%s3972_s0 + $0x50] sm:$0xff] }
  0x89   :  { %2885 = vmatpush3.bf16.msra.mxu1 %v3155_v31  ;;  %2864 = vmatprep.subr.bf16.mxu0 %v3156_v32  ;;  %v38_v31 = vld [vmem:[%s3972_s0 + $0x58] sm:$0xff]  ;;  %v2479_v32 = vcombine.low %v37_v30, %v37_v30 }
  0x8a   :  { %2886 = vmatprep.subr.bf16.mxu1 %v3157_v33  ;;  %v2480_v33 = vcombine.high %v37_v30, %v37_v30 }
  0x8c   :  { %2865 = vmatpush3.bf16.msra.mxu0 %v3158_v34  ;;  %v2481_v34 = vcombine.low %v38_v31, %v38_v31 }
  0x8d   :  { %2887 = vmatpush3.bf16.msra.mxu1 %v3159_v35  ;;  %2866 = vmatprep.subr.bf16.mxu0 %v3160_v36  ;;  %v2482_v35 = vcombine.high %v38_v31, %v38_v31 }
  0x8e   :  { %2888 = vmatprep.subr.bf16.mxu1 %v3161_v37 }
  0x90   :  { %2867 = vmatpush3.bf16.msra.mxu0 %v3162_v38  ;;  %v2458_v38 = vld [vmem:[%s3973_s2] ss:$0 sm:$0xff] }
  0x91   :  { %2889 = vmatpush3.bf16.msra.mxu1 %v3163_v39  ;;  %2868 = vmatprep.subr.bf16.mxu0 %v3164_v40 }
  0x92   :  { %2890 = vmatprep.subr.bf16.mxu1 %v3165_v41 }
  0x94   :  { %2869 = vmatpush3.bf16.msra.mxu0 %v3166_v42 }
  0x95   :  { %2891 = vmatpush3.bf16.msra.mxu1 %v3167_v43  ;;  %2870 = vmatprep.subr.bf16.mxu0 %v3168_v44 }
  0x96   :  { %2892 = vmatprep.subr.bf16.mxu1 %v3169_v45 }
  0x98   :  { %2871 = vmatpush3.bf16.msra.mxu0 %v3170_v46 }
  0x99   :  { %2893 = vmatpush3.bf16.msra.mxu1 %v3171_v47  ;;  %2872 = vmatprep.subr.bf16.mxu0 %v3172_v48 }
  0x9a   :  { %2894 = vmatprep.subr.bf16.mxu1 %v3173_v49  ;;  %v3232_v49 = vmov 0.0  }
  0x9c   :  { %2873 = vmatpush3.bf16.msra.mxu0 %v3174_v50  ;;  %v3220_v50 = vld [vmem:[%s3974_s3 + $0x18] sm:$0xff]  }
  0x9d   :  { %2895 = vmatpush3.bf16.msra.mxu1 %v3175_v51  ;;  %2874 = vmatprep.subr.bf16.mxu0 %v3176_v52 }
  0x9e   :  { %2896 = vmatprep.subr.bf16.mxu1 %v3177_v53  ;;  %v3221_v53 = vld [vmem:[%s3974_s3 + $0x10] sm:$0xff]  }
  0xa0   :  { %2875 = vmatpush3.bf16.msra.mxu0 %v3178_v54 }
  0xa1   :  { %2897 = vmatpush3.bf16.msra.mxu1 %v3179_v55  ;;  %2904 = vmatprep.subr.bf16.mxu0 %v3184_v62 }
  0xa2   :  { %2926 = vmatprep.subr.bf16.mxu1 %v3185_v63 }
  0xa3   :  { %2019 = vmatmul.mubr.bf16.vlgmr.msra.gmra.mxu0 %v2475_v57 }
  0xa4   :  { %2059 = vmatmul.mubr.bf16.vlgmr.msra.gmra.mxu1 %v2477_v60  ;;  %2905 = vmatpush3.bf16.msra.mxu0 %v3186_v0 }
  0xa5   :  { %2927 = vmatpush3.bf16.msra.mxu1 %v3187_v1  ;;  %2906 = vmatprep.subr.bf16.mxu0 %v3188_v2  ;;  %v3223_v1 = vld [vmem:[%s3974_s3] sm:$0xff]  }
  0xa6   :  { %2928 = vmatprep.subr.bf16.mxu1 %v3189_v3  ;;  %2098 = vmatprep.mubr.bf16.mxu0 %v2480_v33 }
  0xa7   :  { %2138 = vmatprep.mubr.bf16.mxu1 %v2482_v35 }
  0xa8   :  { %2907 = vmatpush3.bf16.msra.mxu0 %v3190_v4 }
  0xa9   :  { %2929 = vmatpush3.bf16.msra.mxu1 %v3191_v5  ;;  %2908 = vmatprep.subr.bf16.mxu0 %v3192_v6 }
  0xaa   :  { %2930 = vmatprep.subr.bf16.mxu1 %v3193_v7 }
  0xac   :  { %2909 = vmatpush3.bf16.msra.mxu0 %v3194_v8 }
  0xad   :  { %2931 = vmatpush3.bf16.msra.mxu1 %v3195_v9  ;;  %2910 = vmatprep.subr.bf16.mxu0 %v3196_v10 }
  0xae   :  { %2932 = vmatprep.subr.bf16.mxu1 %v3197_v11 }
  0xb0   :  { %2911 = vmatpush3.bf16.msra.mxu0 %v3198_v12 }
  0xb1   :  { %2933 = vmatpush3.bf16.msra.mxu1 %v3199_v13  ;;  %2912 = vmatprep.subr.bf16.mxu0 %v3200_v14 }
  0xb2   :  { %2934 = vmatprep.subr.bf16.mxu1 %v3201_v15 }
  0xb4   :  { %2913 = vmatpush3.bf16.msra.mxu0 %v3202_v16 }
  0xb5   :  { %2935 = vmatpush3.bf16.msra.mxu1 %v3203_v17  ;;  %2914 = vmatprep.subr.bf16.mxu0 %v3204_v18 }
  0xb6   :  { %2936 = vmatprep.subr.bf16.mxu1 %v3205_v19 }
  0xb8   :  { %2915 = vmatpush3.bf16.msra.mxu0 %v3206_v20 }
  0xb9   :  { %2937 = vmatpush3.bf16.msra.mxu1 %v3207_v21  ;;  %2916 = vmatprep.subr.bf16.mxu0 %v3208_v22 }
  0xba   :  { %2938 = vmatprep.subr.bf16.mxu1 %v3209_v23 }
  0xbc   :  { %2917 = vmatpush3.bf16.msra.mxu0 %v3210_v24 }
  0xbd   :  { %2939 = vmatpush3.bf16.msra.mxu1 %v3211_v25  ;;  %2918 = vmatprep.subr.bf16.mxu0 %v3212_v26 }
  0xbe   :  { %2940 = vmatprep.subr.bf16.mxu1 %v3213_v27 }
  0xc0   :  { %2919 = vmatpush3.bf16.msra.mxu0 %v3214_v28 }
  0xc1   :  { %2941 = vmatpush3.bf16.msra.mxu1 %v3215_v29  ;;  %2964 = vmatprep.subr.bf16.mxu0 %v3232_v49 }
  0xc2   :  { %2976 = vmatprep.subr.mxu1 %v3232_v49 }
  0xc3   :  { %2099 = vmatmul.mubr.bf16.vlgmr.msra.gmra.mxu0 %v2479_v32 }
  0xc4   :  { %2139 = vmatmul.mubr.bf16.vlgmr.msra.gmra.mxu1 %v2481_v34  ;;  %2965 = vmatpush3.bf16.msra.mxu0 %v3220_v50 }
  0xc5   :  { %2966 = vmatprep.subr.bf16.mxu0 %v3232_v49  ;;  %2972 = vmatprep.mubr.msk.bf16.mxu0 %vm3233_vm0, %v3232_v49 }
  0xc6   :  { %2978 = vmatprep.mubr.msk.f32.mxu1 %vm3233_vm0, %v3232_v49 }
  0xc8   :  { %2967 = vmatpush3.bf16.msra.mxu0 %v3221_v53 }
  0xc9   :  { %2968 = vmatprep.subr.bf16.mxu0 %v3232_v49 }
  0xcc   :  { %2969 = vmatpush3.bf16.msra.mxu0 %v3222_v61  ;;  %v2247_v61 = vld [vmem:[%s3977_s5] sm:$0xff] }
  0xcd   :  { %2970 = vmatprep.subr.bf16.mxu0 %v3232_v49  ;;  %2977 = vmatpush3.xpose.msk.msra.mxu1 %vm2232_vm2, %v2247_v61 }
  0xce   :  { %2981 = vmatprep.subr.mxu1 %v3232_v49 }
  0xd0   :  { %2971 = vmatpush3.bf16.msra.mxu0 %v3223_v1 }
  0xe3   :  { %v2700_v36 = vpop.f32.mrf.mxu0 }
  0xe4   :  { %v2722_v37 = vpop.f32.mrf.mxu1 }
  0xe5   :  { %v2701_v39 = vpop.f32.mrf.mxu0 }
  0xe6   :  { %v2723_v40 = vpop.f32.mrf.mxu1  ;;  %v2702_v41 = vadd.f32 %v2701_v39, %v2700_v36 }
  0xe7   :  { %v2724_v42 = vadd.f32 %v2723_v40, %v2722_v37  ;;  %v2703_v43 = vpop.f32.mrf.mxu0 }
  0xe8   :  { %v2725_v44 = vpop.f32.mrf.mxu1  ;;  %v1701_v45 = vadd.f32 %v2702_v41, %v2458_v38 }
  0xe9   :  { %v2704_v46 = vpop.f32.mrf.mxu0 }
  0xea   :  { %v2726_v47 = vpop.f32.mrf.mxu1  ;;  %v1741_v48 = vadd.f32 %v2724_v42, %v1701_v45 }
 0x103   :  { %v2744_v51 = vpop.f32.mrf.mxu0 }
 0x104   :  { %v2766_v52 = vpop.f32.mrf.mxu1 }
 0x105   :  { %v2745_v54 = vpop.f32.mrf.mxu0 }
 0x106   :  { %v2767_v55 = vpop.f32.mrf.mxu1  ;;  %v2746_v56 = vadd.f32 %v2745_v54, %v2744_v51 }
 0x107   :  { %v2768_v57 = vadd.f32 %v2767_v55, %v2766_v52  ;;  %v2747_v58 = vpop.f32.mrf.mxu0  ;;  %v2675_v52 = vld [vmem:[%s3975_s4] ss:$0 sm:$0xff]  ;;  %s3234_s4 = smov 96  }
 0x108   :  { %v2769_v59 = vpop.f32.mrf.mxu1  ;;  %v1781_v60 = vadd.f32 %v2746_v56, %v1741_v48 }
 0x109   :  { %v2748_v62 = vpop.f32.mrf.mxu0 }
 0x10a   :  { %v2770_v63 = vpop.f32.mrf.mxu1  ;;  %v1821_v0 = vadd.f32 %v2768_v57, %v1781_v60 }
 0x123   :  { %v2788_v2 = vpop.f32.mrf.mxu0 }
 0x124   :  { %v2810_v3 = vpop.f32.mrf.mxu1 }
 0x125   :  { %v2789_v4 = vpop.f32.mrf.mxu0 }
 0x126   :  { %v2790_v5 = vadd.f32 %v2789_v4, %v2788_v2  ;;  %v2811_v6 = vpop.f32.mrf.mxu1 }
 0x127   :  { %v2812_v7 = vadd.f32 %v2811_v6, %v2810_v3  ;;  %v2791_v8 = vpop.f32.mrf.mxu0 }
 0x128   :  { %v1861_v9 = vadd.f32 %v2790_v5, %v1821_v0  ;;  %v2813_v10 = vpop.f32.mrf.mxu1 }
 0x129   :  { %v2792_v11 = vpop.f32.mrf.mxu0 }
 0x12a   :  { %v1901_v12 = vadd.f32 %v2812_v7, %v1861_v9  ;;  %v2814_v13 = vpop.f32.mrf.mxu1  ;;  %v2361_v11 = vld [vmem:[%s3978_s6 + $0x38] sm:$0xff] }
 0x12b   :  { %v2359_v13 = vld [vmem:[%s3978_s6 + $0x28] sm:$0xff] }
 0x143   :  { %v2832_v14 = vpop.f32.mrf.mxu0 }
 0x144   :  { %v2854_v15 = vpop.f32.mrf.mxu1 }
 0x145   :  { %v2833_v16 = vpop.f32.mrf.mxu0 }
 0x146   :  { %v2855_v17 = vpop.f32.mrf.mxu1  ;;  %v2834_v30 = vadd.f32 %v2833_v16, %v2832_v14  ;;  %v2358_v14 = vld [vmem:[%s3978_s6 + $0x20] sm:$0xff]  ;;  %v2356_v16 = vld [vmem:[%s3978_s6 + $0x10] sm:$0xff] }
 0x147   :  { %v2835_v18 = vpop.f32.mrf.mxu0  ;;  %v2856_v32 = vadd.f32 %v2855_v17, %v2854_v15  ;;  %v2357_v15 = vld [vmem:[%s3978_s6 + $0x18] sm:$0xff]  ;;  %v2355_v17 = vld [vmem:[%s3978_s6 + $0x8] sm:$0xff] }
 0x148   :  { %v2857_v19 = vpop.f32.mrf.mxu1  ;;  %v1941_v31 = vadd.f32 %v2834_v30, %v1901_v12  ;;  %v2360_v12 = vld [vmem:[%s3978_s6 + $0x30] sm:$0xff]  ;;  %v2354_v18 = vld [vmem:[%s3978_s6] sm:$0xff]  ;;  %s3235_s6 = smov 124  }
 0x149   :  { %v2836_v20 = vpop.f32.mrf.mxu0 }
 0x14a   :  { %v2858_v21 = vpop.f32.mrf.mxu1  ;;  %v1981_v34 = vadd.f32 %v2856_v32, %v1941_v31 }
 0x163   :  { %v2876_v22 = vpop.f32.mrf.mxu0 }
 0x164   :  { %v2898_v23 = vpop.f32.mrf.mxu1 }
 0x165   :  { %v2877_v24 = vpop.f32.mrf.mxu0 }
 0x166   :  { %v2899_v25 = vpop.f32.mrf.mxu1  ;;  %v2878_v33 = vadd.f32 %v2877_v24, %v2876_v22 }
 0x167   :  { %v2879_v26 = vpop.f32.mrf.mxu0  ;;  %v2900_v36 = vadd.f32 %v2899_v25, %v2898_v23  ;;  %v2328_v25 = vlaneseq }
 0x168   :  { %v2901_v27 = vpop.f32.mrf.mxu1  ;;  %v2021_v35 = vadd.f32 %v2878_v33, %v1981_v34 }
 0x169   :  { %v2880_v28 = vpop.f32.mrf.mxu0  ;;  %v2329_v26 = vand.u32 127, %v2328_v25 }
 0x16a   :  { %v2902_v29 = vpop.f32.mrf.mxu1  ;;  %v2061_v40 = vadd.f32 %v2900_v36, %v2021_v35 }
 0x183   :  { %v2920_v37 = vpop.f32.mrf.mxu0 }
 0x184   :  { %v2942_v38 = vpop.f32.mrf.mxu1 }
 0x185   :  { %v2921_v39 = vpop.f32.mrf.mxu0 }
 0x186   :  { %v2922_v41 = vadd.f32 %v2921_v39, %v2920_v37  ;;  %v2943_v42 = vpop.f32.mrf.mxu1 }
 0x187   :  { %v2923_v43 = vpop.f32.mrf.mxu0  ;;  %v2944_v45 = vadd.f32 %v2943_v42, %v2942_v38 }
 0x188   :  { %v2101_v44 = vadd.f32 %v2922_v41, %v2061_v40  ;;  %v2945_v46 = vpop.f32.mrf.mxu1 }
 0x189   :  { %v2924_v47 = vpop.f32.mrf.mxu0 }
 0x18a   :  { %v2141_v48 = vadd.f32 %v2944_v45, %v2101_v44  ;;  %v2946_v50 = vpop.f32.mrf.mxu1 }
 0x18c   :  { %v2146_v51 = vpack.c.bf16 %v2141_v48, %v2141_v48 }
 0x18e   :  { %2973 = vmatmul.mubr.msk.bf16.vlgmr.msra.gmra.mxu0 %vm2186_vm1, %v2146_v51 }
 0x24e   :  { %v2224_v53 = vpop.f32.mrf.mxu0 }
 0x24f   :  { %v2225_v54 = vadd.f32 %v2675_v52, %v2224_v53 }
 0x250   :  { %v2974_v55 = vpop.f32.mrf.mxu0 }
 0x251   :  { %v2231_v56 = vmul.f32 %v2225_v54, %v2225_v54  ;;  %2230 = vst [vmem:[%s3976_s7] sm:$0xff] %v2225_v54  ;;  %v2348_v60 = vsel %vm2347_vm3, %v2225_v54, -inf }
 0x252   :  { %v2227_v57 = vpop.f32.mrf.mxu0 }
 0x253   :  { %v2233_v58 = vsel %vm2232_vm2, %v2231_v56, 0.0 }
 0x254   :  { %2234 = vadd.xlane.f32.xlu0 %v2233_v58  ;;  %v2975_v59 = vpop.f32.mrf.mxu0 }
 0x258   :  { %2349 = vmax.xlane.f32.xlu0 %v2348_v60 }
 0x2dd   :  { %v2235_v62 = vpop.xlane.xlu0 %2234 }
 0x2de   :  { %3224 = vrsqrt.f32 %v2235_v62  ;;  %vm2238_vm4 = vcmp.eq.f32.partialorder %v2235_v62, inf  ;;  %v2241_v4 = vand.u32 2147483648, %v2235_v62  ;;  %vm2240_vm5 = vcmp.eq.f32.partialorder %v2235_v62, 0.0 }
 0x2e1   :  { %v2350_v63 = vpop.xlane.xlu0 %2349 }
 0x2e2   :  { %v2351_v0 = vsub.f32 %v2225_v54, %v2350_v63 }
 0x2e4   :  { %v2352_v1 = vmul.f32 1.442695, %v2351_v0 }
 0x2e6   :  { %3226 = vpow2.f32 %v2352_v1 }
 0x2eb   :  { %v3225_v2 = vpop.eup %3224 }
 0x2ec   :  { %v2237_v3 = vmul.f32 %v3225_v2, %v2235_v62 }
 0x2ee   :  { %v2239_v5 = vsel %vm2238_vm4, %v2235_v62, %v2237_v3 }
 0x2ef   :  { %v2242_v6 = vsel %vm2240_vm5, %v2241_v4, %v2239_v5 }
 0x2f0   :  { %v2243_v7 = vmax.f32 %v2242_v6, 1e-08 }
 0x2f2   :  { %3228 = vrcp.f32 %v2243_v7 }
 0x2f3   :  { %v3227_v8 = vpop.eup %3226 }
 0x2f4   :  { %2363 = vrot.lane.b32.xlu1 %v3227_v8, %s3234_s4 }
 0x2ff   :  { %v3229_v9 = vpop.eup %3228 }
 0x300   :  { %v2246_v10 = vmul.f32 %v3229_v9, %v2225_v54 }
 0x302   :  { %2979 = vmatmul.mubr.msk.f32.vlgmr.msra.gmra.mxu1 %vm2232_vm2, %v2246_v10 }
 0x303   :  { %2982 = vmatpush3.msra.mxu1 %v2361_v11  ;;  %2997 = vmatprep.mubr.msk.f32.mxu1 %vm3233_vm0, %v3232_v49 }
 0x304   :  { %2983 = vmatprep.subr.mxu1 %v3232_v49 }
 0x305   :  { %2984 = vmatpush3.msra.mxu1 %v2360_v12 }
 0x306   :  { %2985 = vmatprep.subr.mxu1 %v3232_v49 }
 0x307   :  { %2986 = vmatpush3.msra.mxu1 %v2359_v13 }
 0x308   :  { %2987 = vmatprep.subr.mxu1 %v3232_v49 }
 0x309   :  { %2988 = vmatpush3.msra.mxu1 %v2358_v14 }
 0x30a   :  { %2989 = vmatprep.subr.mxu1 %v3232_v49 }
 0x30b   :  { %2990 = vmatpush3.msra.mxu1 %v2357_v15 }
 0x30c   :  { %2991 = vmatprep.subr.mxu1 %v3232_v49 }
 0x30d   :  { %2992 = vmatpush3.msra.mxu1 %v2356_v16 }
 0x30e   :  { %2993 = vmatprep.subr.mxu1 %v3232_v49 }
 0x30f   :  { %2994 = vmatpush3.msra.mxu1 %v2355_v17 }
 0x310   :  { %2995 = vmatprep.subr.mxu1 %v3232_v49 }
 0x311   :  { %2996 = vmatpush3.msra.mxu1 %v2354_v18 }
 0x366   :  { %v2364_v19 = vpop.permute.xlu1 %2363 }
 0x367   :  { %2998 = vmatmul.mubr.msk.f32.vlgmr.msra.gmra.mxu1 %vm2186_vm1, %v2364_v19 }
 0x3c2   :  { %v2320_v20 = vpop.f32.mrf.mxu1 }
 0x3c3   :  { %v2325_v21 = vsel %vm2324_vm6, %v2320_v20, -inf }
 0x3c4   :  { %v2980_v22 = vpop.f32.mrf.mxu1  ;;  %2326 = vmax.xlane.f32.xlu1 %v2325_v21 }
 0x427   :  { %v2433_v23 = vpop.f32.mrf.mxu1 }
 0x429   :  { %v2999_v24 = vpop.f32.mrf.mxu1 }
 0x44d   :  { %v2327_v27 = vpop.xlane.xlu1 %2326 }
 0x44e   :  { %vm2330_vm7 = vcmp.ge.f32.partialorder %v2320_v20, %v2327_v27 }
 0x44f   :  { %v2331_v28 = vsel %vm2330_vm7, %v2329_v26, 8 }
 0x450   :  { %v2332_v29 = vsel %vm2324_vm6, %v2331_v28, 2147483647 }
 0x451   :  { %v2334_v30 = vshra.s32 %v2332_v29, 16  ;;  %v2333_v49 = vand.u32 65535, %v2332_v29 }
 0x453   :  { %v2336_v31 = vcvt.s32.f32 %v2334_v30  ;;  %v2335_v33 = vcvt.s32.f32 %v2333_v49 }
 0x455   :  { %2337 = vmin.xlane.f32.xlu0 %v2336_v31 }
 0x46b   :  { %2438 = vrot.lane.b32.xlu0 %v2433_v23, %s3235_s6 }
 0x4de   :  { %v2338_v32 = vpop.xlane.xlu0 %2337 }
 0x4df   :  { %vm2339_vm8 = vcmp.eq.f32.partialorder %v2336_v31, %v2338_v32  ;;  %v2344_v39 = vcvt.f32.s32 %v2338_v32 }
 0x4e0   :  { %v2340_v34 = vsel %vm2339_vm8, %v2335_v33, inf }
 0x4e1   :  { %2341 = vmin.xlane.f32.xlu0 %v2340_v34  ;;  %v2345_v41 = vshll.u32 %v2344_v39, 16 }
 0x4e2   :  { %v2439_v35 = vpop.permute.xlu0 %2438 }
 0x4e3   :  { %3230 = vrcp.f32 %v2439_v35 }
 0x4f0   :  { %v3231_v36 = vpop.eup %3230 }
 0x4f1   :  { %v2442_v37 = vmul.f32 %v3231_v36, %v2433_v23 }
 0x4f3   :  { %2444 = vrot.lane.b32.xlu1 %v2442_v37, %s3234_s4 }
 0x565   :  { %v2445_v38 = vpop.permute.xlu1 %2444 }
 0x566   :  { %2448 = vst.msk [vmem:[%s3976_s7] sm:$0xff] %vm2447_vm9, %v2445_v38 }
 0x567   :  { %2450 = vst.msk [vmem:[%s3976_s7] sm:$0xff] %vm2449_vm10, %v2327_v27 }
 0x56a   :  { %v2342_v40 = vpop.xlane.xlu0 %2341 }
 0x56b   :  { %v2343_v42 = vcvt.f32.s32 %v2342_v40 }
 0x56d   :  { %v2346_v43 = vadd.s32 %v2345_v41, %v2343_v42 }
 0x56f   :  { %v2451_v44 = vcvt.s32.f32 %v2346_v43 }
 0x571   :  { %2453 = vst.msk [vmem:[%s3976_s7] sm:$0xff] %vm2452_vm11, %v2451_v44 }

// kernel: yolo_clip_forward.5
= control target key start
LH: loop header
LB: loop body
LE: loop exit
PB: predicated region body
PF: predicated region fallthrough
CT: control target
= control target key end

     0   :  { %v2205_v0 = vmov 0   ;;  %vm218_vm0 = vcmask 523264   ;;  %vm363_vm1 = vcmask 130048   ;;  %vm517_vm2 = vcmask 261120   ;;  %s2207_s9 = smov 124   ;;  %s3407_s1 = inlined_call_operand.vmem [shape: bf16[192,16], index: 1, kind: input, shape index: {}]   ;;  %s3408_s0 = inlined_call_operand.vmem [shape: bf16[128,192], index: 0, kind: input, shape index: {}]   ;;  %s3409_s3 = inlined_call_operand.vmem [shape: bf16[16,128], index: 3, kind: input, shape index: {}]   ;;  %s3410_s2 = inlined_call_operand.vmem [shape: f32[1,16], index: 2, kind: input, shape index: {}]   ;;  %s3411_s4 = inlined_call_operand.vmem [shape: f32[1,128], index: 4, kind: input, shape index: {}]   ;;  %s3412_s7 = inlined_call_operand.vmem [shape: f32[128,128], index: 7, kind: output, shape index: {}]   ;;  %s3413_s5 = inlined_call_operand.vmem [shape: f32[8,32], index: 5, kind: input, shape index: {}]   ;;  %s3414_s6 = inlined_call_operand.vmem [shape: f32[64,8], index: 6, kind: input, shape index: {}]  }
   0x1   :  { %243 = vmatprep.subr.bf16.mxu0 %v2205_v0  ;;  %v2040_v1 = vld [vmem:[%s3407_s1 + $0x38] sm:$0xff]   ;;  %v2041_v2 = vld [vmem:[%s3407_s1 + $0x30] sm:$0xff]   ;;  %v2042_v3 = vld [vmem:[%s3407_s1 + $0x28] sm:$0xff]   ;;  %vm1262_vm3 = vcmask 785664  }
   0x2   :  { %244 = vmatpush1.bf16.msra.mxu0 %v2040_v1  ;;  %v2043_v4 = vld [vmem:[%s3407_s1 + $0x20] sm:$0xff]   ;;  %v2044_v6 = vld [vmem:[%s3407_s1 + $0x18] sm:$0xff]   ;;  %v2045_v7 = vld [vmem:[%s3407_s1 + $0x10] sm:$0xff]  }
   0x3   :  { %245 = vmatprep.subr.bf16.mxu0 %v2205_v0  ;;  %v2054_v5 = vld [vmem:[%s3408_s0 + $0x4] ss:$8 sps:$4 sm:$0xff]   ;;  %v2048_v10 = vld [vmem:[%s3407_s1 + $0x58] sm:$0xff]   ;;  %v2049_v11 = vld [vmem:[%s3407_s1 + $0x50] sm:$0xff]  }
   0x4   :  { %1852 = vmatprep.mubr.msk.bf16.mxu0 %vm218_vm0, %v2054_v5  ;;  %v2046_v8 = vld [vmem:[%s3407_s1 + $0x8] sm:$0xff]   ;;  %v2047_v9 = vld [vmem:[%s3407_s1] sm:$0xff]   ;;  %v2055_v15 = vld [vmem:[%s3408_s0 + $0x14] ss:$8 sps:$4 sm:$0xff]  }
   0x5   :  { %v2050_v12 = vld [vmem:[%s3407_s1 + $0x48] sm:$0xff]   ;;  %v2051_v13 = vld [vmem:[%s3407_s1 + $0x40] sm:$0xff]   ;;  %v2057_v16 = vld [vmem:[%s3408_s0 + $0x10] ss:$8 sps:$4 sm:$0xff]  }
   0x6   :  { %246 = vmatpush1.bf16.msra.mxu0 %v2041_v2  ;;  %v2052_v14 = vld [vmem:[%s3408_s0] ss:$8 sps:$4 sm:$0xff]   ;;  %v2058_v17 = vld [vmem:[%s3408_s0 + $0x24] ss:$8 sps:$4 sm:$0xff]   ;;  %v2061_v19 = vld [vmem:[%s3408_s0 + $0x34] ss:$8 sps:$4 sm:$0xff]  }
   0x7   :  { %247 = vmatprep.subr.bf16.mxu0 %v2205_v0  ;;  %v2060_v18 = vld [vmem:[%s3408_s0 + $0x20] ss:$8 sps:$4 sm:$0xff]   ;;  %v2063_v20 = vld [vmem:[%s3408_s0 + $0x30] ss:$8 sps:$4 sm:$0xff]   ;;  %v2064_v21 = vld [vmem:[%s3408_s0 + $0x44] ss:$8 sps:$4 sm:$0xff]  }
   0x8   :  { %v2066_v22 = vld [vmem:[%s3408_s0 + $0x40] ss:$8 sps:$4 sm:$0xff]   ;;  %v2067_v23 = vld [vmem:[%s3408_s0 + $0x54] ss:$8 sps:$4 sm:$0xff]   ;;  %v2069_v24 = vld [vmem:[%s3408_s0 + $0x50] ss:$8 sps:$4 sm:$0xff]  }
   0x9   :  { %v2070_v25 = vld [vmem:[%s3408_s0 + $0x64] ss:$8 sps:$4 sm:$0xff]   ;;  %v2072_v26 = vld [vmem:[%s3408_s0 + $0x60] ss:$8 sps:$4 sm:$0xff]   ;;  %v2073_v27 = vld [vmem:[%s3408_s0 + $0x74] ss:$8 sps:$4 sm:$0xff]  }
   0xa   :  { %248 = vmatpush1.bf16.msra.mxu0 %v2042_v3  ;;  %v2075_v28 = vld [vmem:[%s3408_s0 + $0x70] ss:$8 sps:$4 sm:$0xff]   ;;  %v2076_v29 = vld [vmem:[%s3409_s3] sm:$0xff]  }
   0xb   :  { %249 = vmatprep.subr.bf16.mxu0 %v2205_v0  ;;  %1953 = vmatprep.subr.bf16.mxu1 %v2076_v29  ;;  %v1823_v31 = vld [vmem:[%s3410_s2] ss:$0 sm:$0xff] }
   0xc   :  { %1954 = vmatpush3.bf16.msra.mxu1 %v2076_v29 }
   0xe   :  { %250 = vmatpush1.bf16.msra.mxu0 %v2043_v4 }
   0xf   :  { %251 = vmatprep.subr.bf16.mxu0 %v2205_v0 }
  0x12   :  { %252 = vmatpush1.bf16.msra.mxu0 %v2044_v6 }
  0x13   :  { %253 = vmatprep.subr.bf16.mxu0 %v2205_v0 }
  0x16   :  { %254 = vmatpush1.bf16.msra.mxu0 %v2045_v7 }
  0x17   :  { %255 = vmatprep.subr.bf16.mxu0 %v2205_v0 }
  0x1a   :  { %256 = vmatpush1.bf16.msra.mxu0 %v2046_v8 }
  0x1b   :  { %257 = vmatprep.subr.bf16.mxu0 %v2205_v0 }
  0x1e   :  { %258 = vmatpush1.bf16.msra.mxu0 %v2047_v9 }
  0x1f   :  { %267 = vmatprep.subr.bf16.mxu0 %v2205_v0 }
  0x22   :  { %268 = vmatpush2.bf16.msra.mxu0 %v2048_v10 }
  0x23   :  { %269 = vmatprep.subr.bf16.mxu0 %v2205_v0 }
  0x26   :  { %270 = vmatpush2.bf16.msra.mxu0 %v2049_v11 }
  0x27   :  { %271 = vmatprep.subr.bf16.mxu0 %v2205_v0 }
  0x2a   :  { %272 = vmatpush2.bf16.msra.mxu0 %v2050_v12 }
  0x2b   :  { %273 = vmatprep.subr.bf16.mxu0 %v2205_v0 }
  0x2e   :  { %274 = vmatpush2.bf16.msra.mxu0 %v2051_v13 }
  0x31   :  { %276 = vmatmul.mubr.bf16.vlgmr.msra.gmra.mxu0 %v2052_v14 }
  0x32   :  { %1853 = vmatprep.mubr.msk.bf16.mxu0 %vm218_vm0, %v2055_v15 }
  0x39   :  { %284 = vmatmul.mubr.bf16.gmra.mxu0 %v2057_v16 }
  0x3a   :  { %1854 = vmatprep.mubr.msk.bf16.mxu0 %vm218_vm0, %v2058_v17 }
  0x41   :  { %292 = vmatmul.mubr.bf16.gmra.mxu0 %v2060_v18 }
  0x42   :  { %1855 = vmatprep.mubr.msk.bf16.mxu0 %vm218_vm0, %v2061_v19 }
  0x49   :  { %300 = vmatmul.mubr.bf16.gmra.mxu0 %v2063_v20 }
  0x4a   :  { %1856 = vmatprep.mubr.msk.bf16.mxu0 %vm218_vm0, %v2064_v21 }
  0x51   :  { %308 = vmatmul.mubr.bf16.gmra.mxu0 %v2066_v22 }
  0x52   :  { %1857 = vmatprep.mubr.msk.bf16.mxu0 %vm218_vm0, %v2067_v23  ;;  %v2357_v23 = vld [vmem:[%s3411_s4] ss:$0 sm:$0xff] }
  0x59   :  { %316 = vmatmul.mubr.bf16.gmra.mxu0 %v2069_v24 }
  0x5a   :  { %1858 = vmatprep.mubr.msk.bf16.mxu0 %vm218_vm0, %v2070_v25 }
  0x61   :  { %324 = vmatmul.mubr.bf16.gmra.mxu0 %v2072_v26 }
  0x62   :  { %1859 = vmatprep.mubr.msk.bf16.mxu0 %vm218_vm0, %v2073_v27 }
  0x69   :  { %332 = vmatmul.mubr.bf16.gmra.mxu0 %v2075_v28 }
  0xf1   :  { %v277_v30 = vpop.f32.mrf.mxu0 }
  0xf2   :  { %v278_v34 = vadd.f32 %v1823_v31, %v277_v30 }
  0xf3   :  { %v279_v32 = vpop.f32.mrf.mxu0 }
  0xf5   :  { %v280_v33 = vpop.f32.mrf.mxu0 }
  0xf6   :  { %v281_v35 = vadd.f32 %v1823_v31, %v280_v33 }
  0xf7   :  { %v282_v36 = vpop.f32.mrf.mxu0 }
  0xf8   :  { %v340_v37 = vpack.c.bf16 %v281_v35, %v278_v34 }
  0xf9   :  { %v285_v38 = vpop.f32.mrf.mxu0 }
  0xfa   :  { %1955 = vmatprep.mubr.msk.bf16.mxu1 %vm363_vm1, %v340_v37  ;;  %v286_v41 = vadd.f32 %v1823_v31, %v285_v38 }
  0xfb   :  { %v287_v39 = vpop.f32.mrf.mxu0 }
  0xfd   :  { %v288_v40 = vpop.f32.mrf.mxu0 }
  0xfe   :  { %v289_v42 = vadd.f32 %v1823_v31, %v288_v40 }
  0xff   :  { %v290_v43 = vpop.f32.mrf.mxu0 }
 0x100   :  { %v341_v44 = vpack.c.bf16 %v289_v42, %v286_v41 }
 0x101   :  { %v293_v45 = vpop.f32.mrf.mxu0 }
 0x102   :  { %1956 = vmatmul.mubr.msk.bf16.vlgmr.msra.gmra.mxu1 %vm363_vm1, %v341_v44  ;;  %v294_v48 = vadd.f32 %v1823_v31, %v293_v45 }
 0x103   :  { %v295_v46 = vpop.f32.mrf.mxu0 }
 0x105   :  { %v296_v47 = vpop.f32.mrf.mxu0 }
 0x106   :  { %v297_v49 = vadd.f32 %v1823_v31, %v296_v47 }
 0x107   :  { %v298_v50 = vpop.f32.mrf.mxu0 }
 0x108   :  { %v342_v51 = vpack.c.bf16 %v297_v49, %v294_v48 }
 0x109   :  { %v301_v52 = vpop.f32.mrf.mxu0 }
 0x10a   :  { %1959 = vmatprep.mubr.msk.bf16.mxu1 %vm363_vm1, %v342_v51  ;;  %v302_v55 = vadd.f32 %v1823_v31, %v301_v52 }
 0x10b   :  { %v303_v53 = vpop.f32.mrf.mxu0 }
 0x10d   :  { %v304_v54 = vpop.f32.mrf.mxu0 }
 0x10e   :  { %v305_v56 = vadd.f32 %v1823_v31, %v304_v54 }
 0x10f   :  { %v306_v57 = vpop.f32.mrf.mxu0 }
 0x110   :  { %v343_v58 = vpack.c.bf16 %v305_v56, %v302_v55 }
 0x111   :  { %v309_v59 = vpop.f32.mrf.mxu0 }
 0x112   :  { %1960 = vmatmul.mubr.msk.bf16.gmra.mxu1 %vm363_vm1, %v343_v58  ;;  %v310_v62 = vadd.f32 %v1823_v31, %v309_v59 }
 0x113   :  { %v311_v60 = vpop.f32.mrf.mxu0 }
 0x115   :  { %v312_v61 = vpop.f32.mrf.mxu0 }
 0x116   :  { %v313_v63 = vadd.f32 %v1823_v31, %v312_v61 }
 0x117   :  { %v314_v0 = vpop.f32.mrf.mxu0 }
 0x118   :  { %v344_v1 = vpack.c.bf16 %v313_v63, %v310_v62 }
 0x119   :  { %v317_v2 = vpop.f32.mrf.mxu0 }
 0x11a   :  { %1963 = vmatprep.mubr.msk.bf16.mxu1 %vm363_vm1, %v344_v1  ;;  %v318_v5 = vadd.f32 %v1823_v31, %v317_v2 }
 0x11b   :  { %v319_v3 = vpop.f32.mrf.mxu0 }
 0x11d   :  { %v320_v4 = vpop.f32.mrf.mxu0 }
 0x11e   :  { %v321_v6 = vadd.f32 %v1823_v31, %v320_v4 }
 0x11f   :  { %v322_v7 = vpop.f32.mrf.mxu0 }
 0x120   :  { %v345_v8 = vpack.c.bf16 %v321_v6, %v318_v5 }
 0x121   :  { %v325_v9 = vpop.f32.mrf.mxu0 }
 0x122   :  { %1964 = vmatmul.mubr.msk.bf16.gmra.mxu1 %vm363_vm1, %v345_v8  ;;  %v326_v12 = vadd.f32 %v1823_v31, %v325_v9 }
 0x123   :  { %v327_v10 = vpop.f32.mrf.mxu0 }
 0x125   :  { %v328_v11 = vpop.f32.mrf.mxu0 }
 0x126   :  { %v329_v13 = vadd.f32 %v1823_v31, %v328_v11 }
 0x127   :  { %v330_v14 = vpop.f32.mrf.mxu0 }
 0x128   :  { %v346_v15 = vpack.c.bf16 %v329_v13, %v326_v12 }
 0x129   :  { %v333_v16 = vpop.f32.mrf.mxu0 }
 0x12a   :  { %1967 = vmatprep.mubr.msk.bf16.mxu1 %vm363_vm1, %v346_v15  ;;  %v334_v19 = vadd.f32 %v1823_v31, %v333_v16 }
 0x12b   :  { %v335_v17 = vpop.f32.mrf.mxu0 }
 0x12d   :  { %v336_v18 = vpop.f32.mrf.mxu0 }
 0x12e   :  { %v337_v20 = vadd.f32 %v1823_v31, %v336_v18 }
 0x12f   :  { %v338_v21 = vpop.f32.mrf.mxu0 }
 0x130   :  { %v347_v22 = vpack.c.bf16 %v337_v20, %v334_v19  ;;  %v742_v19 = vld [vmem:[%s3413_s5] sm:$0xff] }
 0x131   :  { %1971 = vmatprep.subr.msk.mxu1 %vm517_vm2, %v742_v19 }
 0x132   :  { %1968 = vmatmul.mubr.msk.bf16.gmra.mxu1 %vm363_vm1, %v347_v22 }
 0x133   :  { %1972 = vmatpush3.xpose.msk.msra.mxu1 %vm517_vm2, %v742_v19 }
 0x1c2   :  { %v1957_v24 = vpop.f32.mrf.mxu1 }
 0x1c3   :  { %v2360_v25 = vadd.f32 %v1957_v24, %v2357_v23 }
 0x1c4   :  { %v422_v26 = vpop.f32.mrf.mxu1 }
 0x1c5   :  { %v2363_v27 = vadd.f32 %v2357_v23, %v422_v26  ;;  %v503_v28 = vmul.f32 %v2360_v25, %v2360_v25  ;;  %487 = vst [vmem:[%s3412_s7 + $0x10] sm:$0xff] %v2360_v25 }
 0x1c6   :  { %v1958_v29 = vpop.f32.mrf.mxu1 }
 0x1c7   :  { %v2372_v30 = vadd.f32 %v1958_v29, %v2357_v23  ;;  %v524_v31 = vsel %vm517_vm2, %v503_v28, 0.0  ;;  %v501_v32 = vmul.f32 %v2363_v27, %v2363_v27  ;;  %485 = vst [vmem:[%s3412_s7] sm:$0xff] %v2363_v27  ;;  %v1263_v26 = vsel %vm1262_vm3, %v2363_v27, -inf }
 0x1c8   :  { %525 = vadd.xlane.f32.xlu1 %v524_v31  ;;  %v425_v33 = vpop.f32.mrf.mxu1  ;;  %v1269_v29 = vsel %vm1262_vm3, %v2360_v25, -inf }
 0x1c9   :  { %v2382_v34 = vadd.f32 %v2357_v23, %v425_v33  ;;  %v518_v35 = vsel %vm517_vm2, %v501_v32, 0.0  ;;  %v504_v36 = vmul.f32 %v2372_v30, %v2372_v30  ;;  %488 = vst [vmem:[%s3412_s7 + $0x18] sm:$0xff] %v2372_v30  ;;  %v1272_v31 = vsel %vm1262_vm3, %v2372_v30, -inf }
 0x1ca   :  { %519 = vadd.xlane.f32.xlu0 %v518_v35 }
 0x1cb   :  { %v527_v37 = vsel %vm517_vm2, %v504_v36, 0.0  ;;  %v502_v38 = vmul.f32 %v2382_v34, %v2382_v34  ;;  %486 = vst [vmem:[%s3412_s7 + $0x8] sm:$0xff] %v2382_v34  ;;  %v1266_v28 = vsel %vm1262_vm3, %v2382_v34, -inf }
 0x1cc   :  { %528 = vadd.xlane.f32.xlu1 %v527_v37 }
 0x1cd   :  { %v521_v39 = vsel %vm517_vm2, %v502_v38, 0.0 }
 0x1ce   :  { %522 = vadd.xlane.f32.xlu0 %v521_v39 }
 0x1d2   :  { %v1961_v40 = vpop.f32.mrf.mxu1 }
 0x1d3   :  { %v2400_v41 = vadd.f32 %v1961_v40, %v2357_v23 }
 0x1d4   :  { %v438_v42 = vpop.f32.mrf.mxu1 }
 0x1d5   :  { %v2403_v43 = vadd.f32 %v2357_v23, %v438_v42  ;;  %491 = vst [vmem:[%s3412_s7 + $0x30] sm:$0xff] %v2400_v41  ;;  %v507_v50 = vmul.f32 %v2400_v41, %v2400_v41  ;;  %v1281_v35 = vsel %vm1262_vm3, %v2400_v41, -inf }
 0x1d6   :  { %v1962_v44 = vpop.f32.mrf.mxu1 }
 0x1d7   :  { %v2410_v45 = vadd.f32 %v1962_v44, %v2357_v23  ;;  %v505_v46 = vmul.f32 %v2403_v43, %v2403_v43  ;;  %489 = vst [vmem:[%s3412_s7 + $0x20] sm:$0xff] %v2403_v43  ;;  %v536_v53 = vsel %vm517_vm2, %v507_v50, 0.0  ;;  %v1275_v32 = vsel %vm1262_vm3, %v2403_v43, -inf }
 0x1d8   :  { %v441_v47 = vpop.f32.mrf.mxu1 }
 0x1d9   :  { %v2419_v48 = vadd.f32 %v2357_v23, %v441_v47  ;;  %v530_v49 = vsel %vm517_vm2, %v505_v46, 0.0  ;;  %492 = vst [vmem:[%s3412_s7 + $0x38] sm:$0xff] %v2410_v45  ;;  %v508_v54 = vmul.f32 %v2410_v45, %v2410_v45  ;;  %v1284_v36 = vsel %vm1262_vm3, %v2410_v45, -inf }
 0x1da   :  { %531 = vadd.xlane.f32.xlu0 %v530_v49  ;;  %v2559_v49 = vld [vmem:[%s3414_s6 + $0x38] sm:$0xff] }
 0x1db   :  { %v506_v51 = vmul.f32 %v2419_v48, %v2419_v48  ;;  %490 = vst [vmem:[%s3412_s7 + $0x28] sm:$0xff] %v2419_v48  ;;  %v539_v55 = vsel %vm517_vm2, %v508_v54, 0.0  ;;  %v1278_v33 = vsel %vm1262_vm3, %v2419_v48, -inf  ;;  %1997 = vmatprep.subr.mxu1 %v2559_v49 }
 0x1dd   :  { %v533_v52 = vsel %vm517_vm2, %v506_v51, 0.0 }
 0x1de   :  { %534 = vadd.xlane.f32.xlu1 %v533_v52  ;;  %537 = vadd.xlane.f32.xlu0 %v536_v53 }
 0x1e2   :  { %v1965_v56 = vpop.f32.mrf.mxu1  ;;  %540 = vadd.xlane.f32.xlu1 %v539_v55 }
 0x1e3   :  { %v2440_v57 = vadd.f32 %v1965_v56, %v2357_v23 }
 0x1e4   :  { %v454_v58 = vpop.f32.mrf.mxu1 }
 0x1e5   :  { %v2443_v59 = vadd.f32 %v2357_v23, %v454_v58  ;;  %495 = vst [vmem:[%s3412_s7 + $0x50] sm:$0xff] %v2440_v57  ;;  %v511_v2 = vmul.f32 %v2440_v57, %v2440_v57  ;;  %v1293_v39 = vsel %vm1262_vm3, %v2440_v57, -inf }
 0x1e6   :  { %v1966_v60 = vpop.f32.mrf.mxu1 }
 0x1e7   :  { %v2450_v61 = vadd.f32 %v1966_v60, %v2357_v23  ;;  %v509_v62 = vmul.f32 %v2443_v59, %v2443_v59  ;;  %493 = vst [vmem:[%s3412_s7 + $0x40] sm:$0xff] %v2443_v59  ;;  %v548_v5 = vsel %vm517_vm2, %v511_v2, 0.0  ;;  %v1287_v37 = vsel %vm1262_vm3, %v2443_v59, -inf }
 0x1e8   :  { %v457_v63 = vpop.f32.mrf.mxu1 }
 0x1e9   :  { %v2459_v0 = vadd.f32 %v2357_v23, %v457_v63  ;;  %v542_v1 = vsel %vm517_vm2, %v509_v62, 0.0  ;;  %496 = vst [vmem:[%s3412_s7 + $0x58] sm:$0xff] %v2450_v61  ;;  %v512_v6 = vmul.f32 %v2450_v61, %v2450_v61  ;;  %v1296_v40 = vsel %vm1262_vm3, %v2450_v61, -inf }
 0x1ea   :  { %543 = vadd.xlane.f32.xlu0 %v542_v1 }
 0x1eb   :  { %v510_v3 = vmul.f32 %v2459_v0, %v2459_v0  ;;  %494 = vst [vmem:[%s3412_s7 + $0x48] sm:$0xff] %v2459_v0  ;;  %v551_v7 = vsel %vm517_vm2, %v512_v6, 0.0  ;;  %v1290_v38 = vsel %vm1262_vm3, %v2459_v0, -inf }
 0x1ed   :  { %v545_v4 = vsel %vm517_vm2, %v510_v3, 0.0 }
 0x1ee   :  { %546 = vadd.xlane.f32.xlu1 %v545_v4  ;;  %549 = vadd.xlane.f32.xlu0 %v548_v5 }
 0x1f2   :  { %v1969_v8 = vpop.f32.mrf.mxu1  ;;  %552 = vadd.xlane.f32.xlu1 %v551_v7 }
 0x1f3   :  { %v2480_v9 = vadd.f32 %v1969_v8, %v2357_v23 }
 0x1f4   :  { %v470_v10 = vpop.f32.mrf.mxu1 }
 0x1f5   :  { %v2483_v11 = vadd.f32 %v2357_v23, %v470_v10  ;;  %499 = vst [vmem:[%s3412_s7 + $0x70] sm:$0xff] %v2480_v9  ;;  %v515_v18 = vmul.f32 %v2480_v9, %v2480_v9  ;;  %v1305_v46 = vsel %vm1262_vm3, %v2480_v9, -inf }
 0x1f6   :  { %v1970_v12 = vpop.f32.mrf.mxu1 }
 0x1f7   :  { %v2490_v13 = vadd.f32 %v1970_v12, %v2357_v23  ;;  %v513_v14 = vmul.f32 %v2483_v11, %v2483_v11  ;;  %497 = vst [vmem:[%s3412_s7 + $0x60] sm:$0xff] %v2483_v11  ;;  %v560_v22 = vsel %vm517_vm2, %v515_v18, 0.0  ;;  %v1299_v42 = vsel %vm1262_vm3, %v2483_v11, -inf }
 0x1f8   :  { %v473_v15 = vpop.f32.mrf.mxu1 }
 0x1f9   :  { %v2499_v16 = vadd.f32 %v2357_v23, %v473_v15  ;;  %v554_v17 = vsel %vm517_vm2, %v513_v14, 0.0  ;;  %500 = vst [vmem:[%s3412_s7 + $0x78] sm:$0xff] %v2490_v13  ;;  %v516_v23 = vmul.f32 %v2490_v13, %v2490_v13  ;;  %v1308_v47 = vsel %vm1262_vm3, %v2490_v13, -inf }
 0x1fa   :  { %555 = vadd.xlane.f32.xlu0 %v554_v17 }
 0x1fb   :  { %v514_v20 = vmul.f32 %v2499_v16, %v2499_v16  ;;  %498 = vst [vmem:[%s3412_s7 + $0x68] sm:$0xff] %v2499_v16  ;;  %v563_v24 = vsel %vm517_vm2, %v516_v23, 0.0  ;;  %v1302_v44 = vsel %vm1262_vm3, %v2499_v16, -inf }
 0x1fd   :  { %v557_v21 = vsel %vm517_vm2, %v514_v20, 0.0 }
 0x1fe   :  { %558 = vadd.xlane.f32.xlu1 %v557_v21  ;;  %561 = vadd.xlane.f32.xlu0 %v560_v22 }
 0x202   :  { %564 = vadd.xlane.f32.xlu1 %v563_v24  ;;  %1264 = vmax.xlane.f32.xlu0 %v1263_v26 }
 0x206   :  { %1267 = vmax.xlane.f32.xlu1 %v1266_v28  ;;  %1270 = vmax.xlane.f32.xlu0 %v1269_v29 }
 0x20a   :  { %1273 = vmax.xlane.f32.xlu1 %v1272_v31  ;;  %1276 = vmax.xlane.f32.xlu0 %v1275_v32 }
 0x20e   :  { %1279 = vmax.xlane.f32.xlu1 %v1278_v33  ;;  %1282 = vmax.xlane.f32.xlu0 %v1281_v35 }
 0x212   :  { %1285 = vmax.xlane.f32.xlu1 %v1284_v36  ;;  %1288 = vmax.xlane.f32.xlu0 %v1287_v37 }
 0x216   :  { %1291 = vmax.xlane.f32.xlu1 %v1290_v38  ;;  %1294 = vmax.xlane.f32.xlu0 %v1293_v39 }
 0x21a   :  { %1297 = vmax.xlane.f32.xlu1 %v1296_v40  ;;  %1300 = vmax.xlane.f32.xlu0 %v1299_v42 }
 0x21e   :  { %1303 = vmax.xlane.f32.xlu1 %v1302_v44  ;;  %1306 = vmax.xlane.f32.xlu0 %v1305_v46 }
 0x222   :  { %1309 = vmax.xlane.f32.xlu1 %v1308_v47 }
 0x251   :  { %v526_v50 = vpop.xlane.xlu1 %525 }
 0x252   :  { %2077 = vrsqrt.f32 %v526_v50  ;;  %vm582_vm4 = vcmp.eq.f32.partialorder %v526_v50, inf  ;;  %v585_v58 = vand.u32 2147483648, %v526_v50  ;;  %vm584_vm5 = vcmp.eq.f32.partialorder %v526_v50, 0.0 }
 0x253   :  { %v520_v51 = vpop.xlane.xlu0 %519 }
 0x254   :  { %2079 = vrsqrt.f32 %v520_v51  ;;  %vm568_vm6 = vcmp.eq.f32.partialorder %v520_v51, inf  ;;  %v571_v2 = vand.u32 2147483648, %v520_v51  ;;  %vm570_vm7 = vcmp.eq.f32.partialorder %v520_v51, 0.0 }
 0x255   :  { %v529_v52 = vpop.xlane.xlu1 %528 }
 0x256   :  { %2081 = vrsqrt.f32 %v529_v52  ;;  %vm589_vm8 = vcmp.eq.f32.partialorder %v529_v52, inf  ;;  %v592_v8 = vand.u32 2147483648, %v529_v52  ;;  %vm591_vm9 = vcmp.eq.f32.partialorder %v529_v52, 0.0 }
 0x257   :  { %v523_v53 = vpop.xlane.xlu0 %522 }
 0x258   :  { %2083 = vrsqrt.f32 %v523_v53  ;;  %vm575_vm10 = vcmp.eq.f32.partialorder %v523_v53, inf  ;;  %v578_v17 = vand.u32 2147483648, %v523_v53  ;;  %vm577_vm11 = vcmp.eq.f32.partialorder %v523_v53, 0.0 }
 0x25f   :  { %v2078_v54 = vpop.eup %2077 }
 0x260   :  { %v581_v55 = vmul.f32 %v2078_v54, %v526_v50 }
 0x261   :  { %v2080_v56 = vpop.eup %2079 }
 0x262   :  { %v583_v60 = vsel %vm582_vm4, %v526_v50, %v581_v55  ;;  %v567_v62 = vmul.f32 %v2080_v56, %v520_v51 }
 0x263   :  { %v2082_v63 = vpop.eup %2081  ;;  %v586_v1 = vsel %vm584_vm5, %v585_v58, %v583_v60  ;;  %v532_v3 = vpop.xlane.xlu0 %531 }
 0x264   :  { %v569_v4 = vsel %vm568_vm6, %v520_v51, %v567_v62  ;;  %v588_v5 = vmul.f32 %v2082_v63, %v529_v52  ;;  %2085 = vrsqrt.f32 %v532_v3  ;;  %v680_v10 = vmax.f32 %v586_v1, 1e-08 }
 0x265   :  { %v2084_v6 = vpop.eup %2083  ;;  %v572_v7 = vsel %vm570_vm7, %v571_v2, %v569_v4  ;;  %vm596_vm12 = vcmp.eq.f32.partialorder %v532_v3, inf  ;;  %v599_v31 = vand.u32 2147483648, %v532_v3  ;;  %vm598_vm13 = vcmp.eq.f32.partialorder %v532_v3, 0.0 }
 0x266   :  { %v678_v12 = vmax.f32 %v572_v7, 1e-08  ;;  %v590_v14 = vsel %vm589_vm8, %v529_v52, %v588_v5  ;;  %v574_v15 = vmul.f32 %v2084_v6, %v523_v53  ;;  %v1365_v6 = vld [vmem:[%s3414_s6 + $0x30] sm:$0xff] }
 0x267   :  { %v535_v18 = vpop.xlane.xlu1 %534  ;;  %v593_v19 = vsel %vm591_vm9, %v592_v8, %v590_v14  ;;  %v538_v21 = vpop.xlane.xlu0 %537 }
 0x268   :  { %2087 = vrcp.f32 %v678_v12  ;;  %v576_v20 = vsel %vm575_vm10, %v523_v53, %v574_v15  ;;  %v681_v24 = vmax.f32 %v593_v19, 1e-08  ;;  %vm603_vm14 = vcmp.eq.f32.partialorder %v535_v18, inf  ;;  %v1364_v12 = vld [vmem:[%s3414_s6 + $0x28] sm:$0xff]  ;;  %v1362_v19 = vld [vmem:[%s3414_s6 + $0x18] sm:$0xff] }
 0x269   :  { %v579_v22 = vsel %vm577_vm11, %v578_v17, %v576_v20  ;;  %2089 = vrsqrt.f32 %v535_v18  ;;  %vm605_vm15 = vcmp.eq.f32.partialorder %v535_v18, 0.0  ;;  %v606_v50 = vand.u32 2147483648, %v535_v18  ;;  %v1363_v17 = vld [vmem:[%s3414_s6 + $0x20] sm:$0xff] }
 0x26a   :  { %2091 = vrcp.f32 %v680_v10  ;;  %v679_v23 = vmax.f32 %v579_v22, 1e-08  ;;  %vm610_vm1 = vcmp.eq.f32.partialorder %v538_v21, inf  ;;  %vm612_vm3 = vcmp.eq.f32.partialorder %v538_v21, 0.0 }
 0x26b   :  { %2093 = vrsqrt.f32 %v538_v21  ;;  %v541_v26 = vpop.xlane.xlu1 %540  ;;  %v613_v56 = vand.u32 2147483648, %v538_v21 }
 0x26c   :  { %2095 = vrcp.f32 %v679_v23  ;;  %vm617_vm4 = vcmp.eq.f32.partialorder %v541_v26, inf  ;;  %v620_v4 = vand.u32 2147483648, %v541_v26  ;;  %vm619_vm5 = vcmp.eq.f32.partialorder %v541_v26, 0.0  ;;  %v1361_v23 = vld [vmem:[%s3414_s6 + $0x10] sm:$0xff] }
 0x26d   :  { %2097 = vrsqrt.f32 %v541_v26 }
 0x26e   :  { %2099 = vrcp.f32 %v681_v24 }
 0x271   :  { %v2086_v28 = vpop.eup %2085 }
 0x272   :  { %v595_v29 = vmul.f32 %v2086_v28, %v532_v3 }
 0x273   :  { %v2562_v32 = vpop.xlane.xlu0 %543 }
 0x274   :  { %v597_v33 = vsel %vm596_vm12, %v532_v3, %v595_v29  ;;  %2101 = vrsqrt.f32 %v2562_v32  ;;  %vm624_vm6 = vcmp.eq.f32.partialorder %v2562_v32, inf  ;;  %v627_v20 = vand.u32 2147483648, %v2562_v32 }
 0x275   :  { %v2088_v35 = vpop.eup %2087  ;;  %v600_v36 = vsel %vm598_vm13, %v599_v31, %v597_v33  ;;  %vm626_vm7 = vcmp.eq.f32.partialorder %v2562_v32, 0.0 }
 0x276   :  { %v2090_v37 = vpop.eup %2089  ;;  %v682_v38 = vmax.f32 %v600_v36, 1e-08  ;;  %v726_v39 = vmul.f32 %v2088_v35, %v2363_v27 }
 0x277   :  { %v2092_v40 = vpop.eup %2091  ;;  %v602_v42 = vmul.f32 %v2090_v37, %v535_v18  ;;  %v2566_v44 = vpop.xlane.xlu1 %546 }
 0x278   :  { %v2568_v46 = vpop.xlane.xlu0 %549  ;;  %v2094_v47 = vpop.eup %2093  ;;  %2103 = vrcp.f32 %v682_v38  ;;  %1973 = vmatprep.mubr.msk.f32.mxu1 %vm517_vm2, %v726_v39  ;;  %v728_v5 = vmul.f32 %v2092_v40, %v2360_v25  ;;  %vm631_vm8 = vcmp.eq.f32.partialorder %v2566_v44, inf  ;;  %vm633_vm9 = vcmp.eq.f32.partialorder %v2566_v44, 0.0 }
 0x279   :  { %v2096_v51 = vpop.eup %2095  ;;  %v604_v52 = vsel %vm603_vm14, %v535_v18, %v602_v42  ;;  %v609_v53 = vmul.f32 %v2094_v47, %v538_v21  ;;  %2105 = vrsqrt.f32 %v2566_v44  ;;  %v634_v37 = vand.u32 2147483648, %v2566_v44 }
 0x27a   :  { %v2098_v54 = vpop.eup %2097  ;;  %v607_v55 = vsel %vm605_vm15, %v606_v50, %v604_v52  ;;  %2107 = vrsqrt.f32 %v2568_v46  ;;  %v727_v1 = vmul.f32 %v2096_v51, %v2382_v34  ;;  %vm638_vm10 = vcmp.eq.f32.partialorder %v2568_v46, inf }
 0x27b   :  { %v683_v58 = vmax.f32 %v607_v55, 1e-08  ;;  %v611_v60 = vsel %vm610_vm1, %v538_v21, %v609_v53  ;;  %v616_v62 = vmul.f32 %v2098_v54, %v541_v26  ;;  %v2573_v63 = vpop.xlane.xlu1 %552  ;;  %v2100_v2 = vpop.eup %2099  ;;  %vm640_vm11 = vcmp.eq.f32.partialorder %v2568_v46, 0.0 }
 0x27c   :  { %v614_v3 = vsel %vm612_vm3, %v613_v56, %v611_v60  ;;  %2109 = vrsqrt.f32 %v2573_v63  ;;  %1974 = vmatmul.mubr.msk.f32.vlgmr.msra.gmra.mxu1 %vm517_vm2, %v727_v1  ;;  %v729_v15 = vmul.f32 %v2100_v2, %v2372_v30  ;;  %v641_v42 = vand.u32 2147483648, %v2568_v46 }
 0x27d   :  { %v684_v7 = vmax.f32 %v614_v3, 1e-08  ;;  %v618_v8 = vsel %vm617_vm4, %v541_v26, %v616_v62  ;;  %2111 = vrcp.f32 %v683_v58  ;;  %1976 = vmatprep.mubr.msk.f32.mxu1 %vm517_vm2, %v728_v5  ;;  %1998 = vmatpush3.msra.mxu1 %v2559_v49  ;;  %vm645_vm12 = vcmp.eq.f32.partialorder %v2573_v63, inf }
 0x27e   :  { %v621_v10 = vsel %vm619_vm5, %v620_v4, %v618_v8  ;;  %1999 = vmatprep.subr.mxu1 %v1365_v6  ;;  %vm647_vm13 = vcmp.eq.f32.partialorder %v2573_v63, 0.0 }
 0x27f   :  { %2113 = vrcp.f32 %v684_v7  ;;  %v685_v14 = vmax.f32 %v621_v10, 1e-08  ;;  %2000 = vmatpush3.msra.mxu1 %v1365_v6 }
 0x280   :  { %1977 = vmatmul.mubr.msk.f32.gmra.mxu1 %vm517_vm2, %v729_v15  ;;  %2001 = vmatprep.subr.mxu1 %v1364_v12 }
 0x281   :  { %v2102_v18 = vpop.eup %2101  ;;  %2115 = vrcp.f32 %v685_v14  ;;  %2002 = vmatpush3.msra.mxu1 %v1364_v12 }
 0x282   :  { %v623_v49 = vmul.f32 %v2102_v18, %v2562_v32  ;;  %2003 = vmatprep.subr.mxu1 %v1363_v17 }
 0x283   :  { %v2598_v21 = vpop.xlane.xlu0 %555  ;;  %2004 = vmatpush3.msra.mxu1 %v1363_v17 }
 0x284   :  { %v625_v22 = vsel %vm624_vm6, %v2562_v32, %v623_v49  ;;  %2117 = vrsqrt.f32 %v2598_v21  ;;  %2005 = vmatprep.subr.mxu1 %v1362_v19  ;;  %vm652_vm14 = vcmp.eq.f32.partialorder %v2598_v21, inf  ;;  %v655_v15 = vand.u32 2147483648, %v2598_v21 }
 0x285   :  { %v2104_v24 = vpop.eup %2103  ;;  %v628_v26 = vsel %vm626_vm7, %v627_v20, %v625_v22  ;;  %2006 = vmatpush3.msra.mxu1 %v1362_v19  ;;  %vm654_vm15 = vcmp.eq.f32.partialorder %v2598_v21, 0.0 }
 0x286   :  { %v2106_v28 = vpop.eup %2105  ;;  %v686_v29 = vmax.f32 %v628_v26, 1e-08  ;;  %v730_v31 = vmul.f32 %v2104_v24, %v2403_v43  ;;  %2007 = vmatprep.subr.mxu1 %v1361_v23 }
 0x287   :  { %v2108_v33 = vpop.eup %2107  ;;  %v630_v35 = vmul.f32 %v2106_v28, %v2566_v44  ;;  %v2610_v32 = vpop.xlane.xlu1 %558  ;;  %2008 = vmatpush3.msra.mxu1 %v1361_v23 }
 0x288   :  { %v2612_v36 = vpop.xlane.xlu0 %561  ;;  %2119 = vrcp.f32 %v686_v29  ;;  %v637_v38 = vmul.f32 %v2108_v33, %v2568_v46  ;;  %1979 = vmatprep.mubr.msk.f32.mxu1 %vm517_vm2, %v730_v31  ;;  %vm659_vm1 = vcmp.eq.f32.partialorder %v2610_v32, inf  ;;  %vm661_vm3 = vcmp.eq.f32.partialorder %v2610_v32, 0.0 }
 0x289   :  { %v2110_v39 = vpop.eup %2109  ;;  %v632_v40 = vsel %vm631_vm8, %v2566_v44, %v630_v35  ;;  %2121 = vrsqrt.f32 %v2610_v32  ;;  %v648_v44 = vand.u32 2147483648, %v2573_v63  ;;  %vm666_vm4 = vcmp.eq.f32.partialorder %v2612_v36, inf }
 0x28a   :  { %v635_v47 = vsel %vm633_vm9, %v634_v37, %v632_v40  ;;  %v639_v50 = vsel %vm638_vm10, %v2568_v46, %v637_v38  ;;  %v644_v51 = vmul.f32 %v2110_v39, %v2573_v63  ;;  %2123 = vrsqrt.f32 %v2612_v36  ;;  %v2112_v52 = vpop.eup %2111 }
 0x28b   :  { %v687_v53 = vmax.f32 %v635_v47, 1e-08  ;;  %v642_v54 = vsel %vm640_vm11, %v641_v42, %v639_v50  ;;  %v2627_v55 = vpop.xlane.xlu1 %564  ;;  %v731_v4 = vmul.f32 %v2112_v52, %v2419_v48  ;;  %vm668_vm5 = vcmp.eq.f32.partialorder %v2612_v36, 0.0 }
 0x28c   :  { %v1265_v56 = vpop.xlane.xlu0 %1264  ;;  %v2114_v58 = vpop.eup %2113  ;;  %v688_v60 = vmax.f32 %v642_v54, 1e-08  ;;  %v646_v62 = vsel %vm645_vm12, %v2573_v63, %v644_v51  ;;  %2125 = vrsqrt.f32 %v2627_v55  ;;  %v669_v39 = vand.u32 2147483648, %v2612_v36 }
 0x28d   :  { %2127 = vrcp.f32 %v687_v53  ;;  %v649_v46 = vsel %vm647_vm13, %v648_v44, %v646_v62  ;;  %v1311_v3 = vsub.f32 %v2363_v27, %v1265_v56  ;;  %v732_v5 = vmul.f32 %v2114_v58, %v2400_v41  ;;  %1980 = vmatmul.mubr.msk.f32.gmra.mxu1 %vm517_vm2, %v731_v4 }
 0x28e   :  { %v2116_v1 = vpop.eup %2115  ;;  %2129 = vrcp.f32 %v688_v60  ;;  %v689_v2 = vmax.f32 %v649_v46, 1e-08  ;;  %vm673_vm6 = vcmp.eq.f32.partialorder %v2627_v55, inf  ;;  %vm675_vm7 = vcmp.eq.f32.partialorder %v2627_v55, 0.0 }
 0x28f   :  { %v1268_v6 = vpop.xlane.xlu1 %1267  ;;  %v1327_v8 = vmul.f32 1.442695, %v1311_v3  ;;  %v733_v10 = vmul.f32 %v2116_v1, %v2410_v45  ;;  %1982 = vmatprep.mubr.msk.f32.mxu1 %vm517_vm2, %v732_v5  ;;  %v676_v53 = vand.u32 2147483648, %v2627_v55 }
 0x290   :  { %v1271_v7 = vpop.xlane.xlu0 %1270  ;;  %2131 = vrcp.f32 %v689_v2  ;;  %v1312_v17 = vsub.f32 %v2382_v34, %v1268_v6  ;;  %v1359_v34 = vld [vmem:[%s3414_s6] sm:$0xff] }
 0x291   :  { %v1313_v63 = vsub.f32 %v2360_v25, %v1271_v7  ;;  %v2118_v12 = vpop.eup %2117  ;;  %2133 = vpow2.f32 %v1327_v8  ;;  %v1360_v25 = vld [vmem:[%s3414_s6 + $0x8] sm:$0xff]  ;;  %1983 = vmatmul.mubr.msk.f32.gmra.mxu1 %vm517_vm2, %v733_v10  ;;  %s2206_s6 = smov 96  }
 0x292   :  { %v651_v14 = vmul.f32 %v2118_v12, %v2598_v21  ;;  %2009 = vmatprep.subr.mxu1 %v1360_v25  ;;  %v1329_v33 = vmul.f32 1.442695, %v1312_v17 }
 0x293   :  { %v1331_v27 = vmul.f32 1.442695, %v1313_v63  ;;  %v1274_v18 = vpop.xlane.xlu1 %1273  ;;  %2010 = vmatpush3.msra.mxu1 %v1360_v25 }
 0x294   :  { %v2643_v49 = vpop.xlane.xlu0 %1276  ;;  %v653_v19 = vsel %vm652_vm14, %v2598_v21, %v651_v14  ;;  %v1314_v20 = vsub.f32 %v2372_v30, %v1274_v18  ;;  %v662_v21 = vand.u32 2147483648, %v2610_v32  ;;  %2011 = vmatprep.subr.mxu1 %v1359_v34 }
 0x295   :  { %v2120_v22 = vpop.eup %2119  ;;  %v656_v23 = vsel %vm654_vm15, %v655_v15, %v653_v19  ;;  %2135 = vpow2.f32 %v1331_v27  ;;  %2012 = vmatpush3.msra.mxu1 %v1359_v34  ;;  %v1315_v58 = vsub.f32 %v2403_v43, %v2643_v49 }
 0x296   :  { %v2122_v24 = vpop.eup %2121  ;;  %v690_v26 = vmax.f32 %v656_v23, 1e-08  ;;  %v1333_v28 = vmul.f32 1.442695, %v1314_v20  ;;  %v734_v30 = vmul.f32 %v2120_v22, %v2443_v59 }
 0x297   :  { %v2124_v29 = vpop.eup %2123  ;;  %v658_v31 = vmul.f32 %v2122_v24, %v2610_v32  ;;  %v1280_v35 = vpop.xlane.xlu1 %1279  ;;  %v1335_v12 = vmul.f32 1.442695, %v1315_v58 }
 0x298   :  { %v1283_v37 = vpop.xlane.xlu0 %1282  ;;  %2137 = vrcp.f32 %v690_v26  ;;  %v665_v38 = vmul.f32 %v2124_v29, %v2612_v36  ;;  %1985 = vmatprep.mubr.msk.f32.mxu1 %vm517_vm2, %v734_v30  ;;  %v1316_v6 = vsub.f32 %v2419_v48, %v1280_v35 }
 0x299   :  { %v1317_v40 = vsub.f32 %v2400_v41, %v1283_v37  ;;  %v2126_v42 = vpop.eup %2125  ;;  %v660_v47 = vsel %vm659_vm1, %v2610_v32, %v658_v31  ;;  %2139 = vpow2.f32 %v1333_v28 }
 0x29a   :  { %v2128_v50 = vpop.eup %2127  ;;  %v663_v51 = vsel %vm661_vm3, %v662_v21, %v660_v47  ;;  %v667_v41 = vsel %vm666_vm4, %v2612_v36, %v665_v38  ;;  %v672_v52 = vmul.f32 %v2126_v42, %v2627_v55  ;;  %2141 = vpow2.f32 %v1329_v33 }
 0x29b   :  { %v2130_v54 = vpop.eup %2129  ;;  %v691_v44 = vmax.f32 %v663_v51, 1e-08  ;;  %v670_v56 = vsel %vm668_vm5, %v669_v39, %v667_v41  ;;  %v1286_v60 = vpop.xlane.xlu1 %1285  ;;  %v1339_v1 = vmul.f32 1.442695, %v1317_v40  ;;  %v735_v4 = vmul.f32 %v2128_v50, %v2459_v0 }
 0x29c   :  { %v1289_v32 = vpop.xlane.xlu0 %1288  ;;  %v692_v62 = vmax.f32 %v670_v56, 1e-08  ;;  %v674_v46 = vsel %vm673_vm6, %v2627_v55, %v672_v52  ;;  %v1318_v2 = vsub.f32 %v2410_v45, %v1286_v60  ;;  %v736_v5 = vmul.f32 %v2130_v54, %v2440_v57 }
 0x29d   :  { %v2132_v3 = vpop.eup %2131  ;;  %2143 = vrcp.f32 %v691_v44  ;;  %v677_v36 = vsel %vm675_vm7, %v676_v53, %v674_v46  ;;  %1986 = vmatmul.mubr.msk.f32.gmra.mxu1 %vm517_vm2, %v735_v4  ;;  %v1337_v48 = vmul.f32 1.442695, %v1316_v6  ;;  %v1319_v25 = vsub.f32 %v2443_v59, %v1289_v32 }
 0x29e   :  { %2145 = vrcp.f32 %v692_v62  ;;  %v693_v43 = vmax.f32 %v677_v36, 1e-08  ;;  %v1341_v7 = vmul.f32 1.442695, %v1318_v2  ;;  %v2134_v8 = vpop.eup %2133  ;;  %v737_v45 = vmul.f32 %v2132_v3, %v2450_v61  ;;  %1988 = vmatprep.mubr.msk.f32.mxu1 %vm517_vm2, %v736_v5 }
 0x29f   :  { %v1292_v63 = vpop.xlane.xlu1 %1291  ;;  %1383 = vrot.lane.b32.xlu0 %v2134_v8, %s2206_s6  ;;  %v1343_v26 = vmul.f32 1.442695, %v1319_v25 }
 0x2a0   :  { %v1295_v10 = vpop.xlane.xlu0 %1294  ;;  %2147 = vrcp.f32 %v693_v43 }
 0x2a1   :  { %v1321_v55 = vsub.f32 %v2440_v57, %v1295_v10  ;;  %2149 = vpow2.f32 %v1339_v1  ;;  %1989 = vmatmul.mubr.msk.f32.gmra.mxu1 %vm517_vm2, %v737_v45  ;;  %v1320_v57 = vsub.f32 %v2459_v0, %v1292_v63 }
 0x2a2   :  { %v2136_v14 = vpop.eup %2135  ;;  %2151 = vpow2.f32 %v1341_v7 }
 0x2a3   :  { %v1347_v27 = vmul.f32 1.442695, %v1321_v55  ;;  %1387 = vrot.lane.b32.xlu1 %v2136_v14, %s2206_s6  ;;  %v1298_v15 = vpop.xlane.xlu1 %1297  ;;  %2153 = vpow2.f32 %v1335_v12  ;;  %v1345_v21 = vmul.f32 1.442695, %v1320_v57 }
 0x2a4   :  { %v1301_v17 = vpop.xlane.xlu0 %1300  ;;  %v1322_v18 = vsub.f32 %v2450_v61, %v1298_v15  ;;  %2155 = vpow2.f32 %v1337_v48 }
 0x2a5   :  { %v2138_v49 = vpop.eup %2137  ;;  %2157 = vpow2.f32 %v1347_v27  ;;  %v1323_v37 = vsub.f32 %v2483_v11, %v1301_v17 }
 0x2a6   :  { %v2140_v19 = vpop.eup %2139  ;;  %v1349_v20 = vmul.f32 1.442695, %v1322_v18  ;;  %v738_v22 = vmul.f32 %v2138_v49, %v2483_v11 }
 0x2a7   :  { %1389 = vrot.lane.b32.xlu1 %v2140_v19, %s2206_s6  ;;  %v1304_v23 = vpop.xlane.xlu1 %1303  ;;  %v2142_v24 = vpop.eup %2141 }
 0x2a8   :  { %v1307_v34 = vpop.xlane.xlu0 %1306  ;;  %2159 = vpow2.f32 %v1349_v20  ;;  %1991 = vmatprep.mubr.msk.f32.mxu1 %vm517_vm2, %v738_v22  ;;  %v1324_v39 = vsub.f32 %v2499_v16, %v1304_v23 }
 0x2a9   :  { %v1325_v61 = vsub.f32 %v2480_v9, %v1307_v34  ;;  %2161 = vpow2.f32 %v1343_v26 }
 0x2aa   :  { %v2144_v59 = vpop.eup %2143  ;;  %2163 = vpow2.f32 %v1345_v21  ;;  %v1353_v50 = vmul.f32 1.442695, %v1324_v39 }
 0x2ab   :  { %v2146_v28 = vpop.eup %2145  ;;  %v1355_v30 = vmul.f32 1.442695, %v1325_v61  ;;  %1385 = vrot.lane.b32.xlu1 %v2142_v24, %s2206_s6  ;;  %v1310_v0 = vpop.xlane.xlu1 %1309  ;;  %v739_v29 = vmul.f32 %v2144_v59, %v2499_v16 }
 0x2ac   :  { %v1326_v31 = vsub.f32 %v2490_v13, %v1310_v0  ;;  %v740_v33 = vmul.f32 %v2146_v28, %v2480_v9  ;;  %v1351_v9 = vmul.f32 1.442695, %v1323_v37 }
 0x2ad   :  { %v2148_v35 = vpop.eup %2147  ;;  %1992 = vmatmul.mubr.msk.f32.gmra.mxu1 %vm517_vm2, %v739_v29  ;;  %2165 = vpow2.f32 %v1355_v30 }
 0x2ae   :  { %v2150_v38 = vpop.eup %2149  ;;  %v1357_v40 = vmul.f32 1.442695, %v1326_v31  ;;  %1994 = vmatprep.mubr.msk.f32.mxu1 %vm517_vm2, %v740_v33  ;;  %v741_v42 = vmul.f32 %v2148_v35, %v2490_v13 }
 0x2af   :  { %v2152_v47 = vpop.eup %2151  ;;  %1395 = vrot.lane.b32.xlu0 %v2150_v38, %s2206_s6 }
 0x2b0   :  { %2167 = vpow2.f32 %v1357_v40  ;;  %1397 = vrot.lane.b32.xlu1 %v2152_v47, %s2206_s6  ;;  %v2154_v11 = vpop.eup %2153 }
 0x2b1   :  { %1995 = vmatmul.mubr.msk.f32.gmra.mxu1 %vm517_vm2, %v741_v42  ;;  %v2156_v51 = vpop.eup %2155  ;;  %2169 = vpow2.f32 %v1351_v9  ;;  %vm939_vm2 = vcmask 64512  }
 0x2b2   :  { %v2158_v16 = vpop.eup %2157  ;;  %2171 = vpow2.f32 %v1353_v50 }
 0x2b3   :  { %1391 = vrot.lane.b32.xlu0 %v2154_v11, %s2206_s6 }
 0x2b4   :  { %1393 = vrot.lane.b32.xlu1 %v2156_v51, %s2206_s6 }
 0x2b5   :  { %v2160_v41 = vpop.eup %2159 }
 0x2b6   :  { %v2162_v13 = vpop.eup %2161 }
 0x2b7   :  { %1403 = vrot.lane.b32.xlu0 %v2158_v16, %s2206_s6  ;;  %v2164_v52 = vpop.eup %2163 }
 0x2b8   :  { %1405 = vrot.lane.b32.xlu1 %v2160_v41, %s2206_s6 }
 0x2ba   :  { %v2166_v53 = vpop.eup %2165 }
 0x2bb   :  { %1399 = vrot.lane.b32.xlu0 %v2162_v13, %s2206_s6 }
 0x2bc   :  { %1401 = vrot.lane.b32.xlu1 %v2164_v52, %s2206_s6 }
 0x2bd   :  { %v2168_v54 = vpop.eup %2167 }
 0x2be   :  { %v2170_v44 = vpop.eup %2169 }
 0x2bf   :  { %1411 = vrot.lane.b32.xlu0 %v2166_v53, %s2206_s6  ;;  %v2172_v56 = vpop.eup %2171 }
 0x2c0   :  { %1413 = vrot.lane.b32.xlu1 %v2168_v54, %s2206_s6 }
 0x2c3   :  { %1407 = vrot.lane.b32.xlu0 %v2170_v44, %s2206_s6  ;;  %v988_v44 = vlaneseq }
 0x2c4   :  { %1409 = vrot.lane.b32.xlu1 %v2172_v56, %s2206_s6 }
 0x311   :  { %v1384_v58 = vpop.permute.xlu0 %1383 }
 0x312   :  { %2013 = vmatprep.mubr.msk.f32.mxu1 %vm218_vm0, %v1384_v58  ;;  %v2867_v58 = vand.u32 127, %v988_v44 }
 0x315   :  { %v1388_v60 = vpop.permute.xlu1 %1387 }
 0x319   :  { %v1390_v32 = vpop.permute.xlu1 %1389 }
 0x31d   :  { %v1386_v62 = vpop.permute.xlu1 %1385 }
 0x31e   :  { %2014 = vmatmul.mubr.msk.f32.vlgmr.msra.gmra.mxu1 %vm218_vm0, %v1386_v62 }
 0x31f   :  { %2016 = vmatprep.mubr.msk.f32.mxu1 %vm218_vm0, %v1388_v60 }
 0x321   :  { %v1396_v46 = vpop.permute.xlu0 %1395 }
 0x322   :  { %v1398_v1 = vpop.permute.xlu1 %1397  ;;  %2017 = vmatmul.mubr.msk.f32.gmra.mxu1 %vm218_vm0, %v1390_v32 }
 0x325   :  { %v1392_v2 = vpop.permute.xlu0 %1391 }
 0x326   :  { %2019 = vmatprep.mubr.msk.f32.mxu1 %vm218_vm0, %v1392_v2  ;;  %v1394_v3 = vpop.permute.xlu1 %1393 }
 0x327   :  { %2020 = vmatmul.mubr.msk.f32.gmra.mxu1 %vm218_vm0, %v1394_v3 }
 0x328   :  { %2022 = vmatprep.mubr.msk.f32.mxu1 %vm218_vm0, %v1396_v46 }
 0x329   :  { %v1404_v36 = vpop.permute.xlu0 %1403 }
 0x32a   :  { %v1406_v4 = vpop.permute.xlu1 %1405 }
 0x32b   :  { %2023 = vmatmul.mubr.msk.f32.gmra.mxu1 %vm218_vm0, %v1398_v1 }
 0x32d   :  { %v1400_v5 = vpop.permute.xlu0 %1399 }
 0x32e   :  { %2025 = vmatprep.mubr.msk.f32.mxu1 %vm218_vm0, %v1400_v5  ;;  %v1402_v43 = vpop.permute.xlu1 %1401 }
 0x32f   :  { %2026 = vmatmul.mubr.msk.f32.gmra.mxu1 %vm218_vm0, %v1402_v43 }
 0x330   :  { %2028 = vmatprep.mubr.msk.f32.mxu1 %vm218_vm0, %v1404_v36 }
 0x331   :  { %v1412_v6 = vpop.permute.xlu0 %1411 }
 0x332   :  { %v1414_v7 = vpop.permute.xlu1 %1413 }
 0x333   :  { %2029 = vmatmul.mubr.msk.f32.gmra.mxu1 %vm218_vm0, %v1406_v4 }
 0x335   :  { %v1408_v8 = vpop.permute.xlu0 %1407 }
 0x336   :  { %2031 = vmatprep.mubr.msk.f32.mxu1 %vm218_vm0, %v1408_v8  ;;  %v1410_v63 = vpop.permute.xlu1 %1409 }
 0x337   :  { %2032 = vmatmul.mubr.msk.f32.gmra.mxu1 %vm218_vm0, %v1410_v63 }
 0x338   :  { %2034 = vmatprep.mubr.msk.f32.mxu1 %vm218_vm0, %v1412_v6 }
 0x33b   :  { %2035 = vmatmul.mubr.msk.f32.gmra.mxu1 %vm218_vm0, %v1414_v7 }
 0x33c   :  { %v2743_v10 = vpop.f32.mrf.mxu1 }
 0x33d   :  { %v943_v45 = vsel %vm939_vm2, %v2743_v10, -inf }
 0x33e   :  { %v2747_v55 = vpop.f32.mrf.mxu1  ;;  %944 = vmax.xlane.f32.xlu1 %v943_v45 }
 0x33f   :  { %v940_v12 = vsel %vm939_vm2, %v2747_v55, -inf }
 0x340   :  { %v2751_v14 = vpop.f32.mrf.mxu1  ;;  %941 = vmax.xlane.f32.xlu0 %v940_v12 }
 0x341   :  { %v949_v48 = vsel %vm939_vm2, %v2751_v14, -inf }
 0x342   :  { %v2755_v27 = vpop.f32.mrf.mxu1 }
 0x343   :  { %v946_v15 = vsel %vm939_vm2, %v2755_v27, -inf }
 0x344   :  { %950 = vmax.xlane.f32.xlu0 %v949_v48 }
 0x348   :  { %947 = vmax.xlane.f32.xlu0 %v946_v15 }
 0x34d   :  { %v2759_v17 = vpop.f32.mrf.mxu1 }
 0x34e   :  { %v955_v18 = vsel %vm939_vm2, %v2759_v17, -inf }
 0x34f   :  { %v2763_v49 = vpop.f32.mrf.mxu1  ;;  %956 = vmax.xlane.f32.xlu1 %v955_v18 }
 0x350   :  { %v952_v25 = vsel %vm939_vm2, %v2763_v49, -inf }
 0x351   :  { %v2767_v19 = vpop.f32.mrf.mxu1  ;;  %953 = vmax.xlane.f32.xlu0 %v952_v25 }
 0x352   :  { %v961_v57 = vsel %vm939_vm2, %v2767_v19, -inf }
 0x353   :  { %v2771_v20 = vpop.f32.mrf.mxu1  ;;  %962 = vmax.xlane.f32.xlu1 %v961_v57 }
 0x354   :  { %v958_v22 = vsel %vm939_vm2, %v2771_v20, -inf }
 0x355   :  { %959 = vmax.xlane.f32.xlu0 %v958_v22 }
 0x35d   :  { %v2775_v23 = vpop.f32.mrf.mxu1 }
 0x35e   :  { %v967_v34 = vsel %vm939_vm2, %v2775_v23, -inf }
 0x35f   :  { %v2779_v24 = vpop.f32.mrf.mxu1  ;;  %968 = vmax.xlane.f32.xlu1 %v967_v34 }
 0x360   :  { %v964_v61 = vsel %vm939_vm2, %v2779_v24, -inf }
 0x361   :  { %v2783_v26 = vpop.f32.mrf.mxu1  ;;  %965 = vmax.xlane.f32.xlu0 %v964_v61 }
 0x362   :  { %v973_v59 = vsel %vm939_vm2, %v2783_v26, -inf }
 0x363   :  { %v2787_v21 = vpop.f32.mrf.mxu1  ;;  %974 = vmax.xlane.f32.xlu1 %v973_v59 }
 0x364   :  { %v970_v28 = vsel %vm939_vm2, %v2787_v21, -inf }
 0x365   :  { %971 = vmax.xlane.f32.xlu0 %v970_v28 }
 0x36d   :  { %v2791_v30 = vpop.f32.mrf.mxu1 }
 0x36e   :  { %v979_v0 = vsel %vm939_vm2, %v2791_v30, -inf }
 0x36f   :  { %v2795_v29 = vpop.f32.mrf.mxu1  ;;  %980 = vmax.xlane.f32.xlu1 %v979_v0 }
 0x370   :  { %v976_v31 = vsel %vm939_vm2, %v2795_v29, -inf }
 0x371   :  { %v2799_v33 = vpop.f32.mrf.mxu1  ;;  %977 = vmax.xlane.f32.xlu0 %v976_v31 }
 0x372   :  { %v985_v35 = vsel %vm939_vm2, %v2799_v33, -inf }
 0x373   :  { %v2803_v37 = vpop.f32.mrf.mxu1  ;;  %986 = vmax.xlane.f32.xlu1 %v985_v35 }
 0x374   :  { %v982_v38 = vsel %vm939_vm2, %v2803_v37, -inf }
 0x375   :  { %983 = vmax.xlane.f32.xlu0 %v982_v38 }
 0x3c7   :  { %v2869_v60 = vpop.xlane.xlu1 %944 }
 0x3c8   :  { %vm991_vm8 = vcmp.ge.f32.partialorder %v2743_v10, %v2869_v60 }
 0x3c9   :  { %v2863_v56 = vpop.xlane.xlu0 %941  ;;  %v1007_v46 = vsel %vm991_vm8, %v2867_v58, 8 }
 0x3ca   :  { %vm990_vm0 = vcmp.ge.f32.partialorder %v2747_v55, %v2863_v56  ;;  %v2880_v2 = vsel %vm939_vm2, %v1007_v46, 2147483647 }
 0x3cb   :  { %v1006_v32 = vsel %vm990_vm0, %v2867_v58, 8  ;;  %v1039_v36 = vshra.s32 %v2880_v2, 16 }
 0x3cc   :  { %v2875_v62 = vsel %vm939_vm2, %v1006_v32, 2147483647 }
 0x3cd   :  { %v1024_v1 = vshra.s32 %v2875_v62, 16  ;;  %v2886_v4 = vcvt.s32.f32 %v1039_v36  ;;  %v2895_v6 = vpop.xlane.xlu0 %950 }
 0x3ce   :  { %3432 = vst [vmem:[#allocation4_spill] sm:$0xff] %v2895_v6  ;;  %vm993_vm11 = vcmp.ge.f32.partialorder %v2751_v14, %v2895_v6 }
 0x3cf   :  { %v2882_v3 = vcvt.s32.f32 %v1024_v1  ;;  %v1009_v18 = vsel %vm993_vm11, %v2867_v58, 8 }
 0x3d0   :  { %v2939_v22 = vsel %vm939_vm2, %v1009_v18, 2147483647 }
 0x3d1   :  { %v2899_v7 = vpop.xlane.xlu0 %947  ;;  %v1069_v0 = vshra.s32 %v2939_v22, 16 }
 0x3d2   :  { %3433 = vst [vmem:[#allocation5_spill] sm:$0xff] %v2899_v7  ;;  %vm992_vm9 = vcmp.ge.f32.partialorder %v2755_v27, %v2899_v7 }
 0x3d3   :  { %v1008_v45 = vsel %vm992_vm9, %v2867_v58, 8 }
 0x3d4   :  { %v2919_v48 = vsel %vm939_vm2, %v1008_v45, 2147483647 }
 0x3d5   :  { %v1054_v25 = vshra.s32 %v2919_v48, 16 }
 0x3d7   :  { %v2944_v61 = vcvt.s32.f32 %v1054_v25 }
 0x3d8   :  { %v2903_v63 = vpop.xlane.xlu1 %956 }
 0x3d9   :  { %3434 = vst [vmem:[#allocation6_spill] sm:$0xff] %v2903_v63  ;;  %vm995_vm13 = vcmp.ge.f32.partialorder %v2759_v17, %v2903_v63 }
 0x3da   :  { %v2901_v8 = vpop.xlane.xlu0 %953 }
 0x3db   :  { %vm994_vm10 = vcmp.ge.f32.partialorder %v2763_v49, %v2901_v8 }
 0x3dc   :  { %v2910_v55 = vpop.xlane.xlu1 %962  ;;  %v1010_v15 = vsel %vm994_vm10, %v2867_v58, 8 }
 0x3dd   :  { %3436 = vst [vmem:[#allocation8_spill] sm:$0xff] %v2910_v55  ;;  %v2931_v49 = vsel %vm939_vm2, %v1010_v15, 2147483647  ;;  %vm997_vm15 = vcmp.ge.f32.partialorder %v2767_v19, %v2910_v55 }
 0x3de   :  { %v2807_v39 = vpop.f32.mrf.mxu1  ;;  %v2907_v10 = vpop.xlane.xlu0 %959  ;;  %v1084_v17 = vshra.s32 %v2931_v49, 16  ;;  %v1013_v35 = vsel %vm997_vm15, %v2867_v58, 8 }
 0x3df   :  { %1610 = vrot.lane.b32.xlu1 %v2807_v39, %s2207_s9  ;;  %3435 = vst [vmem:[#allocation7_spill] sm:$0xff] %v2907_v10  ;;  %vm996_vm12 = vcmp.ge.f32.partialorder %v2771_v20, %v2907_v10  ;;  %v1011_v20 = vsel %vm995_vm13, %v2867_v58, 8  ;;  %v2981_v36 = vsel %vm939_vm2, %v1013_v35, 2147483647 }
 0x3e0   :  { %v2811_v40 = vpop.f32.mrf.mxu1  ;;  %v1012_v14 = vsel %vm996_vm12, %v2867_v58, 8  ;;  %v2960_v31 = vsel %vm939_vm2, %v1011_v20, 2147483647  ;;  %v2965_v38 = vcvt.s32.f32 %v1084_v17  ;;  %v1129_v17 = vshra.s32 %v2981_v36, 16 }
 0x3e1   :  { %1608 = vrot.lane.b32.xlu0 %v2811_v40, %s2207_s9  ;;  %v2950_v59 = vsel %vm939_vm2, %v1012_v14, 2147483647  ;;  %v1099_v1 = vshra.s32 %v2960_v31, 16 }
 0x3e2   :  { %v2815_v42 = vpop.f32.mrf.mxu1  ;;  %v1114_v44 = vshra.s32 %v2950_v59, 16 }
 0x3e3   :  { %1614 = vrot.lane.b32.xlu1 %v2815_v42, %s2207_s9  ;;  %v2999_v20 = vcvt.s32.f32 %v1099_v1  ;;  %v3019_v1 = vcvt.s32.f32 %v1129_v17 }
 0x3e4   :  { %v2819_v47 = vpop.f32.mrf.mxu1  ;;  %v2987_v15 = vcvt.s32.f32 %v1114_v44 }
 0x3e7   :  { %v2821_v9 = vpop.f32.mrf.mxu1  ;;  %1612 = vrot.lane.b32.xlu1 %v2819_v47, %s2207_s9 }
 0x3e8   :  { %v2922_v27 = vpop.xlane.xlu1 %968 }
 0x3e9   :  { %v2825_v11 = vpop.f32.mrf.mxu1  ;;  %3438 = vst [vmem:[#allocation10_spill] sm:$0xff] %v2922_v27  ;;  %vm999_vm3 = vcmp.ge.f32.partialorder %v2775_v23, %v2922_v27 }
 0x3ea   :  { %1616 = vrot.lane.b32.xlu0 %v2825_v11, %s2207_s9  ;;  %v2914_v12 = vpop.xlane.xlu0 %965  ;;  %v1015_v45 = vsel %vm999_vm3, %v2867_v58, 8 }
 0x3eb   :  { %v2829_v50 = vpop.f32.mrf.mxu1  ;;  %1618 = vrot.lane.b32.xlu1 %v2821_v9, %s2207_s9  ;;  %3437 = vst [vmem:[#allocation9_spill] sm:$0xff] %v2914_v12  ;;  %vm998_vm14 = vcmp.ge.f32.partialorder %v2779_v24, %v2914_v12 }
 0x3ec   :  { %v2942_v34 = vpop.xlane.xlu1 %974  ;;  %v1014_v28 = vsel %vm998_vm14, %v2867_v58, 8 }
 0x3ed   :  { %v2833_v51 = vpop.f32.mrf.mxu1  ;;  %3440 = vst [vmem:[#allocation12_spill] sm:$0xff] %v2942_v34  ;;  %v2971_v32 = vsel %vm939_vm2, %v1014_v28, 2147483647  ;;  %vm1001_vm5 = vcmp.ge.f32.partialorder %v2783_v26, %v2942_v34  ;;  %v3005_v28 = vsel %vm939_vm2, %v1015_v45, 2147483647 }
 0x3ee   :  { %1620 = vrot.lane.b32.xlu0 %v2833_v51, %s2207_s9  ;;  %v2934_v57 = vpop.xlane.xlu0 %971  ;;  %v1144_v18 = vshra.s32 %v2971_v32, 16  ;;  %v1017_v26 = vsel %vm1001_vm5, %v2867_v58, 8  ;;  %v1159_v45 = vshra.s32 %v3005_v28, 16  ;;  %vm1752_vm5 = vcmask 818944  }
 0x3ef   :  { %v2837_v16 = vpop.f32.mrf.mxu1  ;;  %1622 = vrot.lane.b32.xlu1 %v2829_v50, %s2207_s9  ;;  %3439 = vst [vmem:[#allocation11_spill] sm:$0xff] %v2934_v57  ;;  %vm1000_vm1 = vcmp.ge.f32.partialorder %v2787_v21, %v2934_v57  ;;  %v2975_v21 = vcvt.s32.f32 %v1069_v0 }
 0x3f0   :  { %v1016_v46 = vsel %vm1000_vm1, %v2867_v58, 8  ;;  %v3009_v0 = vcvt.s32.f32 %v1144_v18  ;;  %v3023_v18 = vsel %vm939_vm2, %v1017_v26, 2147483647  ;;  %v3036_v17 = vcvt.s32.f32 %v1159_v45 }
 0x3f1   :  { %v2841_v41 = vpop.f32.mrf.mxu1  ;;  %v2993_v25 = vsel %vm939_vm2, %v1016_v46, 2147483647  ;;  %v1189_v26 = vshra.s32 %v3023_v18, 16 }
 0x3f2   :  { %1624 = vrot.lane.b32.xlu0 %v2841_v41, %s2207_s9  ;;  %v1174_v35 = vshra.s32 %v2993_v25, 16 }
 0x3f3   :  { %v2845_v13 = vpop.f32.mrf.mxu1  ;;  %1626 = vrot.lane.b32.xlu1 %v2837_v16, %s2207_s9 }
 0x3f5   :  { %v2849_v52 = vpop.f32.mrf.mxu1 }
 0x3f6   :  { %1628 = vrot.lane.b32.xlu0 %v2849_v52, %s2207_s9 }
 0x3f7   :  { %v2853_v53 = vpop.f32.mrf.mxu1  ;;  %1630 = vrot.lane.b32.xlu1 %v2845_v13, %s2207_s9 }
 0x3f8   :  { %v2963_v19 = vpop.xlane.xlu1 %980 }
 0x3f9   :  { %v2857_v54 = vpop.f32.mrf.mxu1  ;;  %3442 = vst [vmem:[#allocation14_spill] sm:$0xff] %v2963_v19  ;;  %vm1003_vm7 = vcmp.ge.f32.partialorder %v2791_v30, %v2963_v19  ;;  %v3027_v30 = vcvt.s32.f32 %v1174_v35 }
 0x3fa   :  { %1632 = vrot.lane.b32.xlu0 %v2857_v54, %s2207_s9  ;;  %v2953_v24 = vpop.xlane.xlu0 %977 }
 0x3fb   :  { %1634 = vrot.lane.b32.xlu1 %v2853_v53, %s2207_s9  ;;  %v2889_v5 = vpop.f32.mrf.mxu1  ;;  %3441 = vst [vmem:[#allocation13_spill] sm:$0xff] %v2953_v24  ;;  %vm1002_vm4 = vcmp.ge.f32.partialorder %v2795_v29, %v2953_v24 }
 0x3fc   :  { %3430 = vst [vmem:[#allocation2_spill] sm:$0xff] %v2889_v5  ;;  %v1018_v29 = vsel %vm1002_vm4, %v2867_v58, 8  ;;  %v2996_v14 = vpop.xlane.xlu1 %986 }
 0x3fd   :  { %v2891_v43 = vpop.f32.mrf.mxu1  ;;  %3444 = vst [vmem:[#allocation16_spill] sm:$0xff] %v2996_v14  ;;  %v3015_v44 = vsel %vm939_vm2, %v1018_v29, 2147483647  ;;  %vm1005_vm0 = vcmp.ge.f32.partialorder %v2799_v33, %v2996_v14 }
 0x3fe   :  { %3431 = vst [vmem:[#allocation3_spill] sm:$0xff] %v2891_v43  ;;  %v2984_v23 = vpop.xlane.xlu0 %983  ;;  %v1204_v29 = vshra.s32 %v3015_v44, 16  ;;  %v1021_v35 = vsel %vm1005_vm0, %v2867_v58, 8 }
 0x3ff   :  { %3443 = vst [vmem:[#allocation15_spill] sm:$0xff] %v2984_v23  ;;  %vm1004_vm6 = vcmp.ge.f32.partialorder %v2803_v37, %v2984_v23  ;;  %v1019_v23 = vsel %vm1003_vm7, %v2867_v58, 8  ;;  %v3052_v24 = vsel %vm939_vm2, %v1021_v35, 2147483647  ;;  %vm1769_vm7 = vcmask 827168  }
 0x400   :  { %v1020_v46 = vsel %vm1004_vm6, %v2867_v58, 8  ;;  %v3044_v55 = vcvt.s32.f32 %v1204_v29 }
 0x401   :  { %v3033_v19 = vsel %vm939_vm2, %v1020_v46, 2147483647  ;;  %v3048_v46 = vcvt.s32.f32 %v1189_v26 }
 0x402   :  { %v1234_v33 = vshra.s32 %v3033_v19, 16 }
 0x404   :  { %v3055_v58 = vcvt.s32.f32 %v1234_v33 }
 0x419   :  { %1027 = vmin.xlane.f32.xlu0 %v2882_v3 }
 0x41f   :  { %1042 = vmin.xlane.f32.xlu1 %v2886_v4 }
 0x42f   :  { %1636 = vrot.lane.b32.xlu0 %v2891_v43, %s2207_s9  ;;  %v3040_v43 = vsel %vm939_vm2, %v1019_v23, 2147483647 }
 0x430   :  { %1638 = vrot.lane.b32.xlu1 %v2889_v5, %s2207_s9  ;;  %v1219_v45 = vshra.s32 %v3040_v43, 16  ;;  %v1249_v5 = vshra.s32 %v3052_v24, 16 }
 0x432   :  { %v3058_v29 = vcvt.s32.f32 %v1219_v45  ;;  %v3062_v63 = vcvt.s32.f32 %v1249_v5 }
 0x44e   :  { %1057 = vmin.xlane.f32.xlu0 %v2944_v61 }
 0x451   :  { %v1611_v37 = vpop.permute.xlu1 %1610 }
 0x452   :  { %1087 = vmin.xlane.f32.xlu0 %v2965_v38 }
 0x453   :  { %v1609_v34 = vpop.permute.xlu0 %1608 }
 0x454   :  { %1072 = vmin.xlane.f32.xlu1 %v2975_v21  ;;  %2173 = vrcp.f32 %v1609_v34 }
 0x455   :  { %v1615_v27 = vpop.permute.xlu1 %1614  ;;  %2175 = vrcp.f32 %v1611_v37 }
 0x456   :  { %1117 = vmin.xlane.f32.xlu0 %v2987_v15 }
 0x458   :  { %1102 = vmin.xlane.f32.xlu1 %v2999_v20 }
 0x459   :  { %v1613_v23 = vpop.permute.xlu1 %1612 }
 0x45a   :  { %1147 = vmin.xlane.f32.xlu0 %v3009_v0 }
 0x45c   :  { %1132 = vmin.xlane.f32.xlu1 %v3019_v1  ;;  %v1617_v14 = vpop.permute.xlu0 %1616 }
 0x45d   :  { %v1619_v35 = vpop.permute.xlu1 %1618  ;;  %2177 = vrcp.f32 %v1617_v14 }
 0x45e   :  { %1177 = vmin.xlane.f32.xlu0 %v3027_v30  ;;  %2179 = vrcp.f32 %v1615_v27 }
 0x460   :  { %1162 = vmin.xlane.f32.xlu1 %v3036_v17  ;;  %v1621_v26 = vpop.permute.xlu0 %1620 }
 0x461   :  { %2181 = vrcp.f32 %v1621_v26  ;;  %v1623_v57 = vpop.permute.xlu1 %1622  ;;  %v2174_v7 = vpop.eup %2173 }
 0x462   :  { %1207 = vmin.xlane.f32.xlu0 %v3044_v55  ;;  %2183 = vrcp.f32 %v1613_v23  ;;  %v2176_v12 = vpop.eup %2175  ;;  %v1657_v5 = vmul.f32 %v2174_v7, %v2811_v40 }
 0x463   :  { %v1659_v10 = vmul.f32 %v2176_v12, %v2807_v39 }
 0x464   :  { %1192 = vmin.xlane.f32.xlu1 %v3048_v46  ;;  %v1625_v33 = vpop.permute.xlu0 %1624 }
 0x465   :  { %2185 = vrcp.f32 %v1625_v33  ;;  %v1627_v6 = vpop.permute.xlu1 %1626 }
 0x466   :  { %1237 = vmin.xlane.f32.xlu0 %v3055_v58  ;;  %2187 = vrcp.f32 %v1619_v35 }
 0x468   :  { %1222 = vmin.xlane.f32.xlu1 %v3058_v29  ;;  %v1629_v45 = vpop.permute.xlu0 %1628 }
 0x469   :  { %2189 = vrcp.f32 %v1629_v45  ;;  %v1631_v27 = vpop.permute.xlu1 %1630 }
 0x46a   :  { %v2178_v34 = vpop.eup %2177  ;;  %2191 = vrcp.f32 %v1623_v57 }
 0x46b   :  { %v2180_v14 = vpop.eup %2179  ;;  %v1665_v23 = vmul.f32 %v2178_v34, %v2825_v11 }
 0x46c   :  { %1252 = vmin.xlane.f32.xlu1 %v3062_v63  ;;  %v1633_v37 = vpop.permute.xlu0 %1632  ;;  %v1663_v35 = vmul.f32 %v2180_v14, %v2815_v42  ;;  %v1023_v14 = vand.u32 65535, %v2875_v62 }
 0x46d   :  { %2193 = vrcp.f32 %v1633_v37  ;;  %v1635_v12 = vpop.permute.xlu1 %1634 }
 0x46e   :  { %v2182_v26 = vpop.eup %2181  ;;  %2195 = vrcp.f32 %v1627_v6 }
 0x46f   :  { %v2184_v33 = vpop.eup %2183  ;;  %v1669_v39 = vmul.f32 %v2182_v26, %v2833_v51  ;;  %2197 = vrcp.f32 %v1631_v27 }
 0x470   :  { %v1661_v7 = vmul.f32 %v2184_v33, %v2819_v47  ;;  %2199 = vrcp.f32 %v1635_v12  ;;  %v1068_v33 = vand.u32 65535, %v2939_v22  ;;  %v1083_v22 = vand.u32 65535, %v2931_v49 }
 0x471   :  { %v1113_v49 = vand.u32 65535, %v2950_v59  ;;  %v1143_v59 = vand.u32 65535, %v2971_v32  ;;  %v1218_v32 = vand.u32 65535, %v3040_v43  ;;  %v1248_v43 = vand.u32 65535, %v3052_v24 }
 0x472   :  { %v2186_v40 = vpop.eup %2185  ;;  %v1233_v24 = vand.u32 65535, %v3033_v19 }
 0x473   :  { %v1673_v11 = vmul.f32 %v2186_v40, %v2841_v41  ;;  %v1098_v40 = vand.u32 65535, %v2960_v31 }
 0x475   :  { %v1100_v31 = vcvt.s32.f32 %v1098_v40 }
 0x47c   :  { %1704 = vrot.lane.b32.xlu0 %v1657_v5, %s2206_s6 }
 0x47d   :  { %1706 = vrot.lane.b32.xlu1 %v1659_v10, %s2206_s6  ;;  %v2188_v10 = vpop.eup %2187 }
 0x47e   :  { %v2190_v42 = vpop.eup %2189  ;;  %v1667_v6 = vmul.f32 %v2188_v10, %v2821_v9 }
 0x47f   :  { %v2192_v57 = vpop.eup %2191  ;;  %v1677_v51 = vmul.f32 %v2190_v42, %v2849_v52 }
 0x480   :  { %1712 = vrot.lane.b32.xlu0 %v1665_v23, %s2206_s6  ;;  %v2194_v47 = vpop.eup %2193  ;;  %v1671_v45 = vmul.f32 %v2192_v57, %v2829_v50  ;;  %v1038_v23 = vand.u32 65535, %v2880_v2  ;;  %v1053_v2 = vand.u32 65535, %v2919_v48 }
 0x481   :  { %1710 = vrot.lane.b32.xlu1 %v1663_v35, %s2206_s6  ;;  %v2196_v5 = vpop.eup %2195  ;;  %v1681_v41 = vmul.f32 %v2194_v47, %v2857_v54  ;;  %v1085_v47 = vcvt.s32.f32 %v1083_v22  ;;  %v3448_v22 = vld [vmem:[#allocation5_spill] sm:$0xff] }
 0x482   :  { %v1675_v34 = vmul.f32 %v2196_v5, %v2837_v16  ;;  %v2198_v9 = vpop.eup %2197  ;;  %v1025_v16 = vcvt.s32.f32 %v1023_v14  ;;  %v1055_v42 = vcvt.s32.f32 %v1053_v2 }
 0x483   :  { %v1679_v37 = vmul.f32 %v2198_v9, %v2845_v13  ;;  %v2200_v52 = vpop.eup %2199 }
 0x484   :  { %1716 = vrot.lane.b32.xlu0 %v1669_v39, %s2206_s6  ;;  %v1683_v50 = vmul.f32 %v2200_v52, %v2853_v53  ;;  %v1040_v53 = vcvt.s32.f32 %v1038_v23  ;;  %v1173_v52 = vand.u32 65535, %v2993_v25  ;;  %v1220_v23 = vcvt.s32.f32 %v1218_v32  ;;  %v3457_v32 = vld [vmem:[#allocation14_spill] sm:$0xff] }
 0x485   :  { %1708 = vrot.lane.b32.xlu1 %v1661_v7, %s2206_s6 }
 0x486   :  { %v1175_v25 = vcvt.s32.f32 %v1173_v52 }
 0x488   :  { %1720 = vrot.lane.b32.xlu0 %v1673_v11, %s2206_s6  ;;  %v1128_v11 = vand.u32 65535, %v2981_v36 }
 0x489   :  { %1714 = vrot.lane.b32.xlu1 %v1667_v6, %s2206_s6 }
 0x48c   :  { %1724 = vrot.lane.b32.xlu0 %v1677_v51, %s2206_s6  ;;  %v1130_v51 = vcvt.s32.f32 %v1128_v11 }
 0x48d   :  { %1718 = vrot.lane.b32.xlu1 %v1671_v45, %s2206_s6 }
 0x490   :  { %1728 = vrot.lane.b32.xlu0 %v1681_v41, %s2206_s6 }
 0x491   :  { %1722 = vrot.lane.b32.xlu1 %v1675_v34, %s2206_s6  ;;  %v1115_v34 = vcvt.s32.f32 %v1113_v49  ;;  %v3451_v49 = vld [vmem:[#allocation2_spill] sm:$0xff] }
 0x495   :  { %1726 = vrot.lane.b32.xlu1 %v1679_v37, %s2206_s6 }
 0x499   :  { %1730 = vrot.lane.b32.xlu1 %v1683_v50, %s2206_s6  ;;  %v1145_v50 = vcvt.s32.f32 %v1143_v59 }
 0x4a2   :  { %v3094_v27 = vpop.xlane.xlu0 %1027 }
 0x4a3   :  { %vm1029_vm2 = vcmp.eq.f32.partialorder %v2882_v3, %v3094_v27 }
 0x4a4   :  { %v1030_v54 = vsel %vm1029_vm2, %v1025_v16, inf }
 0x4a6   :  { %v3103_v35 = vpop.permute.xlu0 %1636 }
 0x4a8   :  { %v3099_v13 = vpop.xlane.xlu1 %1042 }
 0x4a9   :  { %vm1044_vm8 = vcmp.eq.f32.partialorder %v2886_v4, %v3099_v13  ;;  %v1070_v4 = vcvt.s32.f32 %v1068_v33 }
 0x4aa   :  { %v1045_v26 = vsel %vm1044_vm8, %v1040_v53, inf }
 0x4ac   :  { %v3108_v3 = vpop.permute.xlu1 %1638 }
 0x4ad   :  { %2201 = vrcp.f32 %v3108_v3 }
 0x4ae   :  { %2203 = vrcp.f32 %v3103_v35 }
 0x4af   :  { %1031 = vmin.xlane.f32.xlu0 %v1030_v54 }
 0x4ba   :  { %v2202_v11 = vpop.eup %2201 }
 0x4bd   :  { %1046 = vmin.xlane.f32.xlu1 %v1045_v26 }
 0x4d7   :  { %v3105_v62 = vpop.xlane.xlu0 %1057 }
 0x4d8   :  { %vm1059_vm10 = vcmp.eq.f32.partialorder %v2944_v61, %v3105_v62  ;;  %v1158_v61 = vand.u32 65535, %v3005_v28 }
 0x4d9   :  { %v1060_v57 = vsel %vm1059_vm10, %v1055_v42, inf }
 0x4da   :  { %v1160_v41 = vcvt.s32.f32 %v1158_v61  ;;  %v1687_v61 = vmul.f32 %v2202_v11, %v3451_v49 }
 0x4db   :  { %v3110_v39 = vpop.xlane.xlu0 %1087 }
 0x4dc   :  { %vm1089_vm12 = vcmp.eq.f32.partialorder %v2965_v38, %v3110_v39  ;;  %v1188_v38 = vand.u32 65535, %v3023_v18 }
 0x4dd   :  { %v3114_v7 = vpop.xlane.xlu1 %1072  ;;  %v1090_v5 = vsel %vm1089_vm12, %v1085_v47, inf }
 0x4de   :  { %vm1074_vm9 = vcmp.eq.f32.partialorder %v2975_v21, %v3114_v7  ;;  %v1190_v18 = vcvt.s32.f32 %v1188_v38  ;;  %v3454_v38 = vld [vmem:[#allocation10_spill] sm:$0xff] }
 0x4df   :  { %v3118_v10 = vpop.xlane.xlu0 %1117  ;;  %v1075_v12 = vsel %vm1074_vm9, %v1070_v4, inf  ;;  %v3447_v4 = vld [vmem:[#allocation9_spill] sm:$0xff]  ;;  %vm1802_vm9 = vcmask 835368  }
 0x4e0   :  { %1076 = vmin.xlane.f32.xlu0 %v1075_v12  ;;  %vm1119_vm14 = vcmp.eq.f32.partialorder %v2987_v15, %v3118_v10 }
 0x4e1   :  { %v3124_v48 = vpop.xlane.xlu1 %1102  ;;  %v1120_v37 = vsel %vm1119_vm14, %v1115_v34, inf }
 0x4e2   :  { %vm1104_vm11 = vcmp.eq.f32.partialorder %v2999_v20, %v3124_v48 }
 0x4e3   :  { %v3128_v6 = vpop.xlane.xlu0 %1147  ;;  %v1105_v21 = vsel %vm1104_vm11, %v1100_v31, inf  ;;  %v3449_v31 = vld [vmem:[#allocation11_spill] sm:$0xff] }
 0x4e4   :  { %1106 = vmin.xlane.f32.xlu1 %v1105_v21  ;;  %1061 = vmin.xlane.f32.xlu0 %v1060_v57  ;;  %vm1149_vm1 = vcmp.eq.f32.partialorder %v3009_v0, %v3128_v6  ;;  %v1203_v0 = vand.u32 65535, %v3015_v44  ;;  %v3450_v21 = vld [vmem:[#allocation6_spill] sm:$0xff] }
 0x4e5   :  { %v3134_v36 = vpop.xlane.xlu1 %1132  ;;  %v1150_v16 = vsel %vm1149_vm1, %v1145_v50, inf }
 0x4e6   :  { %vm1134_vm13 = vcmp.eq.f32.partialorder %v3019_v1, %v3134_v36 }
 0x4e7   :  { %v3138_v20 = vpop.xlane.xlu0 %1177  ;;  %v1135_v45 = vsel %vm1134_vm13, %v1130_v51, inf  ;;  %v3452_v51 = vld [vmem:[#allocation13_spill] sm:$0xff] }
 0x4e8   :  { %1136 = vmin.xlane.f32.xlu1 %v1135_v45  ;;  %1091 = vmin.xlane.f32.xlu0 %v1090_v5  ;;  %vm1179_vm4 = vcmp.eq.f32.partialorder %v3027_v30, %v3138_v20  ;;  %v1250_v30 = vcvt.s32.f32 %v1248_v43  ;;  %v3453_v45 = vld [vmem:[#allocation8_spill] sm:$0xff]  ;;  %v2204_v5 = vpop.eup %2203  ;;  %v1049_v43 = vcvt.f32.s32 %v3099_v13 }
 0x4e9   :  { %v3144_v28 = vpop.xlane.xlu1 %1162  ;;  %v1180_v26 = vsel %vm1179_vm4, %v1175_v25, inf }
 0x4ea   :  { %vm1164_vm15 = vcmp.eq.f32.partialorder %v3036_v17, %v3144_v28 }
 0x4eb   :  { %v3148_v1 = vpop.xlane.xlu0 %1207  ;;  %v1165_v9 = vsel %vm1164_vm15, %v1160_v41, inf  ;;  %v3455_v41 = vld [vmem:[#allocation3_spill] sm:$0xff] }
 0x4ec   :  { %1166 = vmin.xlane.f32.xlu1 %v1165_v9  ;;  %1121 = vmin.xlane.f32.xlu0 %v1120_v37  ;;  %vm1209_vm0 = vcmp.eq.f32.partialorder %v3044_v55, %v3148_v1  ;;  %v1685_v34 = vmul.f32 %v2204_v5, %v3455_v41  ;;  %v3456_v37 = vld [vmem:[#allocation12_spill] sm:$0xff] }
 0x4ed   :  { %v3154_v15 = vpop.xlane.xlu1 %1192 }
 0x4ee   :  { %vm1194_vm3 = vcmp.eq.f32.partialorder %v3048_v46, %v3154_v15 }
 0x4ef   :  { %v3158_v17 = vpop.xlane.xlu0 %1237  ;;  %v1195_v14 = vsel %vm1194_vm3, %v1190_v18, inf  ;;  %v1034_v18 = vcvt.f32.s32 %v3094_v27  ;;  %v1079_v27 = vcvt.f32.s32 %v3114_v7 }
 0x4f0   :  { %1196 = vmin.xlane.f32.xlu1 %v1195_v14  ;;  %1151 = vmin.xlane.f32.xlu0 %v1150_v16  ;;  %vm1239_vm8 = vcmp.eq.f32.partialorder %v3055_v58, %v3158_v17 }
 0x4f1   :  { %v3164_v54 = vpop.xlane.xlu1 %1222  ;;  %v1035_v14 = vshll.u32 %v1034_v18, 16 }
 0x4f2   :  { %vm1224_vm6 = vcmp.eq.f32.partialorder %v3058_v29, %v3164_v54  ;;  %v1205_v29 = vcvt.s32.f32 %v1203_v0 }
 0x4f3   :  { %v1705_v46 = vpop.permute.xlu0 %1704  ;;  %v1225_v53 = vsel %vm1224_vm6, %v1220_v23, inf }
 0x4f4   :  { %1753 = vst.msk [vmem:[%s3412_s7] sm:$0xff] %vm1752_vm5, %v1705_v46  ;;  %1226 = vmin.xlane.f32.xlu1 %v1225_v53  ;;  %1181 = vmin.xlane.f32.xlu0 %v1180_v26  ;;  %v1210_v2 = vsel %vm1209_vm0, %v1205_v29, inf  ;;  %v1050_v46 = vshll.u32 %v1049_v43, 16 }
 0x4f5   :  { %1770 = vst.msk [vmem:[%s3412_s7] sm:$0xff] %vm1769_vm7, %v2863_v56  ;;  %v3180_v44 = vpop.xlane.xlu1 %1252 }
 0x4f6   :  { %vm1254_vm2 = vcmp.eq.f32.partialorder %v3062_v63, %v3180_v44  ;;  %v1235_v63 = vcvt.s32.f32 %v1233_v24 }
 0x4f7   :  { %v1713_v55 = vpop.permute.xlu0 %1712  ;;  %v1255_v33 = vsel %vm1254_vm2, %v1250_v30, inf  ;;  %v1064_v30 = vcvt.f32.s32 %v3105_v62 }
 0x4f8   :  { %1757 = vst.msk [vmem:[%s3412_s7 + $0x20] sm:$0xff] %vm1752_vm5, %v1713_v55  ;;  %1256 = vmin.xlane.f32.xlu1 %v1255_v33  ;;  %1211 = vmin.xlane.f32.xlu0 %v1210_v2  ;;  %v1240_v58 = vsel %vm1239_vm8, %v1235_v63, inf  ;;  %v1080_v55 = vshll.u32 %v1079_v27, 16  ;;  %v1109_v33 = vcvt.f32.s32 %v3124_v48  ;;  %v1094_v63 = vcvt.f32.s32 %v3110_v39 }
 0x4f9   :  { %1774 = vst.msk [vmem:[%s3412_s7 + $0x20] sm:$0xff] %vm1769_vm7, %v2901_v8  ;;  %v1707_v56 = vpop.permute.xlu1 %1706  ;;  %v3445_v8 = vld [vmem:[#allocation7_spill] sm:$0xff]  ;;  %v1169_v39 = vcvt.f32.s32 %v3144_v28  ;;  %v1154_v28 = vcvt.f32.s32 %v3128_v6 }
 0x4fa   :  { %1754 = vst.msk [vmem:[%s3412_s7 + $0x8] sm:$0xff] %vm1752_vm5, %v1707_v56  ;;  %v1065_v56 = vshll.u32 %v1064_v30, 16  ;;  %v1095_v48 = vshll.u32 %v1094_v63, 16 }
 0x4fb   :  { %1771 = vst.msk [vmem:[%s3412_s7 + $0x8] sm:$0xff] %vm1769_vm7, %v2869_v60  ;;  %v1717_v19 = vpop.permute.xlu0 %1716  ;;  %v3446_v60 = vld [vmem:[#allocation4_spill] sm:$0xff] }
 0x4fc   :  { %1759 = vst.msk [vmem:[%s3412_s7 + $0x30] sm:$0xff] %vm1752_vm5, %v1717_v19  ;;  %1241 = vmin.xlane.f32.xlu0 %v1240_v58  ;;  %v1139_v19 = vcvt.f32.s32 %v3134_v36 }
 0x4fd   :  { %1776 = vst.msk [vmem:[%s3412_s7 + $0x30] sm:$0xff] %vm1769_vm7, %v3445_v8  ;;  %v1711_v3 = vpop.permute.xlu1 %1710 }
 0x4fe   :  { %1756 = vst.msk [vmem:[%s3412_s7 + $0x18] sm:$0xff] %vm1752_vm5, %v1711_v3  ;;  %v1110_v3 = vshll.u32 %v1109_v33, 16 }
 0x4ff   :  { %1773 = vst.msk [vmem:[%s3412_s7 + $0x18] sm:$0xff] %vm1769_vm7, %v3446_v60  ;;  %v1721_v40 = vpop.permute.xlu0 %1720 }
 0x500   :  { %1761 = vst.msk [vmem:[%s3412_s7 + $0x40] sm:$0xff] %vm1752_vm5, %v1721_v40 }
 0x501   :  { %1778 = vst.msk [vmem:[%s3412_s7 + $0x40] sm:$0xff] %vm1769_vm7, %v3447_v4  ;;  %v1709_v12 = vpop.permute.xlu1 %1708 }
 0x502   :  { %1755 = vst.msk [vmem:[%s3412_s7 + $0x10] sm:$0xff] %vm1752_vm5, %v1709_v12  ;;  %v1124_v12 = vcvt.f32.s32 %v3118_v10 }
 0x503   :  { %1772 = vst.msk [vmem:[%s3412_s7 + $0x10] sm:$0xff] %vm1769_vm7, %v3448_v22  ;;  %v1725_v35 = vpop.permute.xlu0 %1724  ;;  %v1140_v22 = vshll.u32 %v1139_v19, 16 }
 0x504   :  { %1763 = vst.msk [vmem:[%s3412_s7 + $0x50] sm:$0xff] %vm1752_vm5, %v1725_v35  ;;  %v1125_v49 = vshll.u32 %v1124_v12, 16  ;;  %v3458_v12 = vld [vmem:[#allocation16_spill] sm:$0xff] }
 0x505   :  { %1780 = vst.msk [vmem:[%s3412_s7 + $0x50] sm:$0xff] %vm1769_vm7, %v3449_v31  ;;  %v1715_v42 = vpop.permute.xlu1 %1714 }
 0x506   :  { %1758 = vst.msk [vmem:[%s3412_s7 + $0x28] sm:$0xff] %vm1752_vm5, %v1715_v42 }
 0x507   :  { %1775 = vst.msk [vmem:[%s3412_s7 + $0x28] sm:$0xff] %vm1769_vm7, %v3450_v21  ;;  %v1729_v57 = vpop.permute.xlu0 %1728 }
 0x508   :  { %1765 = vst.msk [vmem:[%s3412_s7 + $0x60] sm:$0xff] %vm1752_vm5, %v1729_v57 }
 0x509   :  { %1782 = vst.msk [vmem:[%s3412_s7 + $0x60] sm:$0xff] %vm1769_vm7, %v3452_v51  ;;  %1734 = vrot.lane.b32.xlu1 %v1687_v61, %s2206_s6  ;;  %v1719_v47 = vpop.permute.xlu1 %1718  ;;  %v1170_v61 = vshll.u32 %v1169_v39, 16  ;;  %v1199_v51 = vcvt.f32.s32 %v3154_v15  ;;  %v1184_v15 = vcvt.f32.s32 %v3138_v20 }
 0x50a   :  { %1760 = vst.msk [vmem:[%s3412_s7 + $0x38] sm:$0xff] %vm1752_vm5, %v1719_v47 }
 0x50b   :  { %1777 = vst.msk [vmem:[%s3412_s7 + $0x38] sm:$0xff] %vm1769_vm7, %v3453_v45  ;;  %v1185_v43 = vshll.u32 %v1184_v15, 16 }
 0x50d   :  { %v1723_v59 = vpop.permute.xlu1 %1722 }
 0x50e   :  { %1762 = vst.msk [vmem:[%s3412_s7 + $0x48] sm:$0xff] %vm1752_vm5, %v1723_v59 }
 0x50f   :  { %1779 = vst.msk [vmem:[%s3412_s7 + $0x48] sm:$0xff] %vm1769_vm7, %v3454_v38 }
 0x511   :  { %v1727_v9 = vpop.permute.xlu1 %1726 }
 0x512   :  { %1764 = vst.msk [vmem:[%s3412_s7 + $0x58] sm:$0xff] %vm1752_vm5, %v1727_v9  ;;  %1732 = vrot.lane.b32.xlu0 %v1685_v34, %s2206_s6  ;;  %v1155_v9 = vshll.u32 %v1154_v28, 16 }
 0x513   :  { %1781 = vst.msk [vmem:[%s3412_s7 + $0x58] sm:$0xff] %vm1769_vm7, %v3456_v37  ;;  %v1200_v37 = vshll.u32 %v1199_v51, 16 }
 0x515   :  { %v1731_v52 = vpop.permute.xlu1 %1730 }
 0x516   :  { %1766 = vst.msk [vmem:[%s3412_s7 + $0x68] sm:$0xff] %vm1752_vm5, %v1731_v52  ;;  %v1229_v52 = vcvt.f32.s32 %v3164_v54  ;;  %v1214_v54 = vcvt.f32.s32 %v3148_v1 }
 0x517   :  { %1783 = vst.msk [vmem:[%s3412_s7 + $0x68] sm:$0xff] %vm1769_vm7, %v3457_v32 }
 0x518   :  { %v1215_v33 = vshll.u32 %v1214_v54, 16 }
 0x538   :  { %v1032_v50 = vpop.xlane.xlu0 %1031 }
 0x539   :  { %v1033_v16 = vcvt.f32.s32 %v1032_v50 }
 0x53b   :  { %v1036_v25 = vadd.s32 %v1035_v14, %v1033_v16 }
 0x53d   :  { %v1786_v0 = vcvt.s32.f32 %v1036_v25 }
 0x53f   :  { %1803 = vst.msk [vmem:[%s3412_s7] sm:$0xff] %vm1802_vm9, %v1786_v0 }
 0x546   :  { %v1047_v23 = vpop.xlane.xlu1 %1046 }
 0x547   :  { %v1048_v53 = vcvt.f32.s32 %v1047_v23  ;;  %v1230_v23 = vshll.u32 %v1229_v52, 16 }
 0x549   :  { %v1051_v26 = vadd.s32 %v1050_v46, %v1048_v53  ;;  %v1259_v46 = vcvt.f32.s32 %v3180_v44  ;;  %v1244_v44 = vcvt.f32.s32 %v3158_v17 }
 0x54b   :  { %v1787_v24 = vcvt.s32.f32 %v1051_v26 }
 0x54d   :  { %1804 = vst.msk [vmem:[%s3412_s7 + $0x8] sm:$0xff] %vm1802_vm9, %v1787_v24 }
 0x569   :  { %v1077_v29 = vpop.xlane.xlu0 %1076 }
 0x56a   :  { %v1078_v2 = vcvt.f32.s32 %v1077_v29 }
 0x56c   :  { %v1081_v13 = vadd.s32 %v1080_v55, %v1078_v2  ;;  %v1260_v2 = vshll.u32 %v1259_v46, 16 }
 0x56d   :  { %v1107_v58 = vpop.xlane.xlu1 %1106  ;;  %v1062_v8 = vpop.xlane.xlu0 %1061 }
 0x56e   :  { %v1789_v60 = vcvt.s32.f32 %v1081_v13  ;;  %v1108_v40 = vcvt.f32.s32 %v1107_v58  ;;  %v1063_v4 = vcvt.f32.s32 %v1062_v8 }
 0x570   :  { %1806 = vst.msk [vmem:[%s3412_s7 + $0x18] sm:$0xff] %vm1802_vm9, %v1789_v60  ;;  %v1111_v62 = vadd.s32 %v1110_v3, %v1108_v40  ;;  %v1066_v7 = vadd.s32 %v1065_v56, %v1063_v4  ;;  %v1245_v4 = vshll.u32 %v1244_v44, 16 }
 0x571   :  { %v1137_v36 = vpop.xlane.xlu1 %1136  ;;  %v1092_v35 = vpop.xlane.xlu0 %1091 }
 0x572   :  { %v1791_v11 = vcvt.s32.f32 %v1111_v62  ;;  %v1788_v31 = vcvt.s32.f32 %v1066_v7  ;;  %v1138_v42 = vcvt.f32.s32 %v1137_v36  ;;  %v1093_v21 = vcvt.f32.s32 %v1092_v35  ;;  %v3459_v35 = vld [vmem:[#allocation15_spill] sm:$0xff] }
 0x574   :  { %1808 = vst.msk [vmem:[%s3412_s7 + $0x28] sm:$0xff] %vm1802_vm9, %v1791_v11  ;;  %1805 = vst.msk [vmem:[%s3412_s7 + $0x10] sm:$0xff] %vm1802_vm9, %v1788_v31  ;;  %v1141_v10 = vadd.s32 %v1140_v22, %v1138_v42  ;;  %v1096_v57 = vadd.s32 %v1095_v48, %v1093_v21 }
 0x575   :  { %v1167_v47 = vpop.xlane.xlu1 %1166  ;;  %v1122_v45 = vpop.xlane.xlu0 %1121 }
 0x576   :  { %v1793_v5 = vcvt.s32.f32 %v1141_v10  ;;  %v1790_v59 = vcvt.s32.f32 %v1096_v57  ;;  %v1168_v38 = vcvt.f32.s32 %v1167_v47  ;;  %v1123_v41 = vcvt.f32.s32 %v1122_v45 }
 0x578   :  { %1810 = vst.msk [vmem:[%s3412_s7 + $0x38] sm:$0xff] %vm1802_vm9, %v1793_v5  ;;  %1807 = vst.msk [vmem:[%s3412_s7 + $0x20] sm:$0xff] %vm1802_vm9, %v1790_v59  ;;  %v1171_v6 = vadd.s32 %v1170_v61, %v1168_v38  ;;  %v1126_v34 = vadd.s32 %v1125_v49, %v1123_v41 }
 0x579   :  { %v1197_v32 = vpop.xlane.xlu1 %1196  ;;  %v1152_v18 = vpop.xlane.xlu0 %1151 }
 0x57a   :  { %v1795_v50 = vcvt.s32.f32 %v1171_v6  ;;  %v1792_v14 = vcvt.s32.f32 %v1126_v34  ;;  %v1198_v16 = vcvt.f32.s32 %v1197_v32  ;;  %v1153_v25 = vcvt.f32.s32 %v1152_v18 }
 0x57c   :  { %1812 = vst.msk [vmem:[%s3412_s7 + $0x48] sm:$0xff] %vm1802_vm9, %v1795_v50  ;;  %1809 = vst.msk [vmem:[%s3412_s7 + $0x30] sm:$0xff] %vm1802_vm9, %v1792_v14  ;;  %v1201_v20 = vadd.s32 %v1200_v37, %v1198_v16  ;;  %v1156_v0 = vadd.s32 %v1155_v9, %v1153_v25 }
 0x57d   :  { %v1227_v53 = vpop.xlane.xlu1 %1226  ;;  %v1182_v26 = vpop.xlane.xlu0 %1181 }
 0x57e   :  { %v1797_v24 = vcvt.s32.f32 %v1201_v20  ;;  %v1794_v27 = vcvt.s32.f32 %v1156_v0  ;;  %v1228_v30 = vcvt.f32.s32 %v1227_v53  ;;  %v1183_v29 = vcvt.f32.s32 %v1182_v26 }
 0x580   :  { %1814 = vst.msk [vmem:[%s3412_s7 + $0x58] sm:$0xff] %vm1802_vm9, %v1797_v24  ;;  %1811 = vst.msk [vmem:[%s3412_s7 + $0x40] sm:$0xff] %vm1802_vm9, %v1794_v27  ;;  %v1231_v1 = vadd.s32 %v1230_v23, %v1228_v30  ;;  %v1186_v55 = vadd.s32 %v1185_v43, %v1183_v29 }
 0x581   :  { %v1257_v13 = vpop.xlane.xlu1 %1256  ;;  %v1212_v56 = vpop.xlane.xlu0 %1211 }
 0x582   :  { %v1799_v63 = vcvt.s32.f32 %v1231_v1  ;;  %v1796_v19 = vcvt.s32.f32 %v1186_v55  ;;  %v1258_v58 = vcvt.f32.s32 %v1257_v13  ;;  %v1213_v8 = vcvt.f32.s32 %v1212_v56 }
 0x584   :  { %1816 = vst.msk [vmem:[%s3412_s7 + $0x68] sm:$0xff] %vm1802_vm9, %v1799_v63  ;;  %1813 = vst.msk [vmem:[%s3412_s7 + $0x50] sm:$0xff] %vm1802_vm9, %v1796_v19  ;;  %v1261_v3 = vadd.s32 %v1260_v2, %v1258_v58  ;;  %v1216_v60 = vadd.s32 %v1215_v33, %v1213_v8 }
 0x585   :  { %v1735_v17 = vpop.permute.xlu1 %1734  ;;  %v1242_v40 = vpop.xlane.xlu0 %1241 }
 0x586   :  { %v1801_v62 = vcvt.s32.f32 %v1261_v3  ;;  %v1798_v7 = vcvt.s32.f32 %v1216_v60  ;;  %1768 = vst.msk [vmem:[%s3412_s7 + $0x78] sm:$0xff] %vm1752_vm5, %v1735_v17  ;;  %v1243_v48 = vcvt.f32.s32 %v1242_v40 }
 0x587   :  { %1785 = vst.msk [vmem:[%s3412_s7 + $0x78] sm:$0xff] %vm1769_vm7, %v3458_v12 }
 0x588   :  { %1815 = vst.msk [vmem:[%s3412_s7 + $0x60] sm:$0xff] %vm1802_vm9, %v1798_v7  ;;  %1818 = vst.msk [vmem:[%s3412_s7 + $0x78] sm:$0xff] %vm1802_vm9, %v1801_v62  ;;  %v1246_v22 = vadd.s32 %v1245_v4, %v1243_v48 }
 0x589   :  { %v1733_v39 = vpop.permute.xlu0 %1732 }
 0x58a   :  { %v1800_v36 = vcvt.s32.f32 %v1246_v22  ;;  %1767 = vst.msk [vmem:[%s3412_s7 + $0x70] sm:$0xff] %vm1752_vm5, %v1733_v39 }
 0x58b   :  { %1784 = vst.msk [vmem:[%s3412_s7 + $0x70] sm:$0xff] %vm1769_vm7, %v3459_v35 }
 0x58c   :  { %1817 = vst.msk [vmem:[%s3412_s7 + $0x70] sm:$0xff] %vm1802_vm9, %v1800_v36 }

// kernel: squeeze.30
= control target key start
LH: loop header
LB: loop body
LE: loop exit
PB: predicated region body
PF: predicated region fallthrough
CT: control target
= control target key end

     0   :  { %vm8_vm0 = vcmask 31744   ;;  %s42_s0 = inlined_call_operand.vmem [shape: f32[8], index: 0, kind: input, shape index: {}]   ;;  %s43_s1 = inlined_call_operand.vmem [shape: f32[2,4], index: 1, kind: output, shape index: {}]  }
   0x1   :  { %v5_v0 = vld [vmem:[%s42_s0] sm:$0x1]  ;;  %s25_s0 = smov 124  }
   0x2   :  { %6 = vst [vmem:[#allocation1] sm:$0x1] %v5_v0 }
   0x9   :  { %v10_v1 = vld [vmem:[#allocation1] sm:$0x1]  }
   0xa   :  { %v7_v2 = vld [vmem:[#allocation1] sm:$0x1]   ;;  %11 = vrot.lane.b32.xlu0 %v10_v1, %s25_s0 }
   0xb   :  { %9 = vst.msk [vmem:[#allocation0] sm:$0x1] %vm8_vm0, %v7_v2  }
  0x7c   :  { %v12_v3 = vpop.permute.xlu0 %11  }
  0x7d   :  { %15 = vst.msk [vmem:[#allocation0 + $0x1] sm:$0x1] %vm8_vm0, %v12_v3  }
  0x84   :  { %v20_v4 = vld [vmem:[#allocation0] sm:$0x3] }
  0x85   :  { %23 = vst [vmem:[%s43_s1] sm:$0x3] %v20_v4 }

// kernel: squeeze.24
= control target key start
LH: loop header
LB: loop body
LE: loop exit
PB: predicated region body
PF: predicated region fallthrough
CT: control target
= control target key end

     0   :  { %vm8_vm0 = vcmask 130048   ;;  %s42_s0 = inlined_call_operand.vmem [shape: f32[32], index: 0, kind: input, shape index: {}]   ;;  %s43_s1 = inlined_call_operand.vmem [shape: f32[2,16], index: 1, kind: output, shape index: {}]  }
   0x1   :  { %v5_v0 = vld [vmem:[%s42_s0] sm:$0x1]  ;;  %s25_s0 = smov 112  }
   0x2   :  { %6 = vst [vmem:[#allocation1] sm:$0x1] %v5_v0 }
   0x9   :  { %v10_v1 = vld [vmem:[#allocation1] sm:$0x1]  }
   0xa   :  { %v7_v2 = vld [vmem:[#allocation1] sm:$0x1]   ;;  %11 = vrot.lane.b32.xlu0 %v10_v1, %s25_s0 }
   0xb   :  { %9 = vst.msk [vmem:[#allocation0] sm:$0x1] %vm8_vm0, %v7_v2  }
  0x7c   :  { %v12_v3 = vpop.permute.xlu0 %11  }
  0x7d   :  { %15 = vst.msk [vmem:[#allocation0 + $0x1] sm:$0x1] %vm8_vm0, %v12_v3  }
  0x84   :  { %v20_v4 = vld [vmem:[#allocation0] sm:$0x3] }
  0x85   :  { %23 = vst [vmem:[%s43_s1] sm:$0x3] %v20_v4 }

// kernel: squeeze.18
= control target key start
LH: loop header
LB: loop body
LE: loop exit
PB: predicated region body
PF: predicated region fallthrough
CT: control target
= control target key end

     0   :  { %vm8_vm0 = vcmask 523264   ;;  %s42_s0 = inlined_call_operand.vmem [shape: f32[128], index: 0, kind: input, shape index: {}]   ;;  %s43_s1 = inlined_call_operand.vmem [shape: f32[2,64], index: 1, kind: output, shape index: {}]  }
   0x1   :  { %v5_v0 = vld [vmem:[%s42_s0] sm:$0x1]  ;;  %s25_s0 = smov 64  }
   0x2   :  { %6 = vst [vmem:[#allocation1] sm:$0x1] %v5_v0 }
   0x9   :  { %v10_v1 = vld [vmem:[#allocation1] sm:$0x1]  }
   0xa   :  { %v7_v2 = vld [vmem:[#allocation1] sm:$0x1]   ;;  %11 = vrot.lane.b32.xlu0 %v10_v1, %s25_s0 }
   0xb   :  { %9 = vst.msk [vmem:[#allocation0] sm:$0x1] %vm8_vm0, %v7_v2  }
  0x7c   :  { %v12_v3 = vpop.permute.xlu0 %11  }
  0x7d   :  { %15 = vst.msk [vmem:[#allocation0 + $0x1] sm:$0x1] %vm8_vm0, %v12_v3  }
  0x84   :  { %v20_v4 = vld [vmem:[#allocation0] sm:$0x3] }
  0x85   :  { %23 = vst [vmem:[%s43_s1] sm:$0x3] %v20_v4 }

</bundles_post_ra>
